<compile_context>
chip_gen: v6e
topology: v6e:2x2x1
jax: 0.10.0
libtpu: 0.0.40
codegen_flags: <defaults>
</compile_context>

<pallas_src>
from functools import partial

import numpy as np
import jax
import jax.numpy as jnp
from jax.experimental import pallas as pl
from jax.experimental.pallas import tpu as pltpu


# ----------------------------------------------------------------------------
# Chip-aware tiling policy
# ----------------------------------------------------------------------------
def _num_tensorcores():
    try:
        kind = jax.devices()[0].device_kind.lower()
    except Exception:
        return 1
    # v7x (and older v3/v4 megacore) expose 2 TensorCores per device.
    return 2 if any(t in kind for t in ("v7", "7x", "v4", "v3")) else 1


NUM_TC = _num_tensorcores()
MAX_TN = 4096        # lane-tile cap for pointwise kernels (VMEM budget at prod scale)
MAX_MODE_TILE = 512  # lane-tile cap (multiple of 128) for the spectral mode kernel


def _round_up(n, m):
    return ((n + m - 1) // m) * m


def _pick_tile(n, cap=MAX_TN):
    """1-TC chips: single full-extent block (no per-step overhead).
    Multi-TC chips: even 128-aligned split so both cores get balanced work.
    Always bounded by `cap` (a multiple of 128) so blocks fit scoped VMEM."""
    if NUM_TC > 1:
        t = _round_up(pl.cdiv(n, NUM_TC), 128)
        if t < n:
            return min(t, cap)
    if n <= cap:
        return n          # full extent: exempt from the 128-divisibility rule
    return cap


# ----------------------------------------------------------------------------
# In-kernel activation: tanh-form GELU (EUP tanh instead of a VPU erf
# polynomial; ~1e-3 abs deviation from torch's exact erf GELU).
# ----------------------------------------------------------------------------
def _gelu(x):
    c = 0.7978845608028654  # sqrt(2/pi)
    return 0.5 * x * (1.0 + jnp.tanh(c * (x + 0.044715 * x * x * x)))


# ----------------------------------------------------------------------------
# Pallas kernel 1: pointwise channel mixing  y = gelu?(W @ x + b (+ adds...))
# (nn.Linear and every 1x1 nn.Conv2d, with fused residual adds + GELU)
# ----------------------------------------------------------------------------
def _make_pointwise_kernel(act, n_add):
    def kernel(*refs):
        x_ref, w_ref, b_ref = refs[:3]
        add_refs = refs[3:3 + n_add]
        o_ref = refs[3 + n_add]
        y = jnp.dot(w_ref[...], x_ref[...], preferred_element_type=jnp.float32)
        y = y + b_ref[...]                      # (Co, 1) broadcast over lanes
        for a_ref in add_refs:
            y = y + a_ref[...]
        if act:
            y = _gelu(y)
        o_ref[...] = y
    return kernel


def pointwise(x, w, b, adds=(), act=False):
    """x: (Ci, N), w: (Co, Ci), b: (Co,), adds: tuple of (Co, N).  -> (Co, N)."""
    Ci, N = x.shape
    Co = w.shape[0]
    tn = _pick_tile(N)
    nt = pl.cdiv(N, tn)
    args = [x, w, b.reshape(Co, 1)]
    in_specs = [
        pl.BlockSpec((Ci, tn), lambda i: (0, i)),
        pl.BlockSpec((Co, Ci), lambda i: (0, 0)),
        pl.BlockSpec((Co, 1), lambda i: (0, 0)),
    ]
    for a in adds:
        args.append(a)
        in_specs.append(pl.BlockSpec((Co, tn), lambda i: (0, i)))
    n_add = len(adds)
    flops = 2 * N * Ci * Co + N * Co * (1 + n_add)
    bytes_acc = 4 * (N * Ci + Ci * Co + Co + N * Co * (1 + n_add))
    return pl.pallas_call(
        _make_pointwise_kernel(act, n_add),
        out_shape=jax.ShapeDtypeStruct((Co, N), jnp.float32),
        grid=(nt,),
        in_specs=in_specs,
        out_specs=pl.BlockSpec((Co, tn), lambda i: (0, i)),
        compiler_params=pltpu.CompilerParams(dimension_semantics=("parallel",)),
        cost_estimate=pl.CostEstimate(flops=flops,
                                      transcendentals=N * Co if act else 0,
                                      bytes_accessed=bytes_acc),
    )(*args)


# ----------------------------------------------------------------------------
# Pallas kernel 2: fused MLP2d (Conv1x1 -> GELU -> Conv1x1), hidden stays in
# VMEM.  Only used on the add_mlp=True path.
# ----------------------------------------------------------------------------
def _mlp_kernel(x_ref, w1_ref, b1_ref, w2_ref, b2_ref, o_ref):
    h = jnp.dot(w1_ref[...], x_ref[...], preferred_element_type=jnp.float32) + b1_ref[...]
    h = _gelu(h)
    o_ref[...] = jnp.dot(w2_ref[...], h, preferred_element_type=jnp.float32) + b2_ref[...]


def mlp_pointwise(x, w1, b1, w2, b2):
    """x: (Ci, N); w1: (Ch, Ci); w2: (Co, Ch).  -> (Co, N)."""
    Ci, N = x.shape
    Ch = w1.shape[0]
    Co = w2.shape[0]
    tn = _pick_tile(N)
    nt = pl.cdiv(N, tn)
    flops = 2 * N * (Ci * Ch + Ch * Co) + N * (Ch + Co)
    bytes_acc = 4 * (N * Ci + Ch * Ci + Ch + Co * Ch + Co + N * Co)
    return pl.pallas_call(
        _mlp_kernel,
        out_shape=jax.ShapeDtypeStruct((Co, N), jnp.float32),
        grid=(nt,),
        in_specs=[
            pl.BlockSpec((Ci, tn), lambda i: (0, i)),
            pl.BlockSpec((Ch, Ci), lambda i: (0, 0)),
            pl.BlockSpec((Ch, 1), lambda i: (0, 0)),
            pl.BlockSpec((Co, Ch), lambda i: (0, 0)),
            pl.BlockSpec((Co, 1), lambda i: (0, 0)),
        ],
        out_specs=pl.BlockSpec((Co, tn), lambda i: (0, i)),
        compiler_params=pltpu.CompilerParams(dimension_semantics=("parallel",)),
        cost_estimate=pl.CostEstimate(flops=flops, transcendentals=N * Ch,
                                      bytes_accessed=bytes_acc),
    )(x, w1, b1.reshape(Ch, 1), w2, b2.reshape(Co, 1))


# ----------------------------------------------------------------------------
# Pallas kernel 3: fused network tail
#   y = w0 @ z + b0 + x1_spectral ; out = q2 @ gelu(q1 @ y + b1) + b2
# Runs on the padded slab; the crop commutes with 1x1 convs, so only the
# 1-channel output is cropped afterwards.
# ----------------------------------------------------------------------------
def _tail_kernel(z_ref, x1_ref, w0_ref, b0_ref, q1_ref, qb1_ref, q2_ref, qb2_ref, o_ref):
    y = (jnp.dot(w0_ref[...], z_ref[...], preferred_element_type=jnp.float32)
         + b0_ref[...] + x1_ref[...])
    h = _gelu(jnp.dot(q1_ref[...], y, preferred_element_type=jnp.float32) + qb1_ref[...])
    o_ref[...] = jnp.dot(q2_ref[...], h, preferred_element_type=jnp.float32) + qb2_ref[...]


def tail_head(z, x1, w0_w, w0_b, q1_w, q1_b, q2_w, q2_b):
    """z, x1: (C, N); w0: (C, C); q1: (Ch, C); q2: (Co, Ch).  -> (Co, N)."""
    C, N = z.shape
    Ch = q1_w.shape[0]
    Co = q2_w.shape[0]
    tn = _pick_tile(N)
    nt = pl.cdiv(N, tn)
    flops = 2 * N * (C * C + C * Ch + Ch * Co) + N * (2 * C + Ch + Co)
    bytes_acc = 4 * (2 * N * C + C * C + Ch * C + Co * Ch + N * Co + C + Ch + Co)
    return pl.pallas_call(
        _tail_kernel,
        out_shape=jax.ShapeDtypeStruct((Co, N), jnp.float32),
        grid=(nt,),
        in_specs=[
            pl.BlockSpec((C, tn), lambda i: (0, i)),
            pl.BlockSpec((C, tn), lambda i: (0, i)),
            pl.BlockSpec((C, C), lambda i: (0, 0)),
            pl.BlockSpec((C, 1), lambda i: (0, 0)),
            pl.BlockSpec((Ch, C), lambda i: (0, 0)),
            pl.BlockSpec((Ch, 1), lambda i: (0, 0)),
            pl.BlockSpec((Co, Ch), lambda i: (0, 0)),
            pl.BlockSpec((Co, 1), lambda i: (0, 0)),
        ],
        out_specs=pl.BlockSpec((Co, tn), lambda i: (0, i)),
        compiler_params=pltpu.CompilerParams(dimension_semantics=("parallel",)),
        cost_estimate=pl.CostEstimate(flops=flops, transcendentals=N * Ch,
                                      bytes_accessed=bytes_acc),
    )(z, x1, w0_w, w0_b.reshape(C, 1), q1_w, q1_b.reshape(Ch, 1),
      q2_w, q2_b.reshape(Co, 1))


# ----------------------------------------------------------------------------
# Pallas kernel 4: per-mode complex channel mixing, lane-dense over modes.
#   xr/xi: (Ci, B, M)   wr/wi: (Ci, Co, M)   ->  or/oi: (Co, B, M)
#   out[n,b,m] = sum_k (wr[k,n,m] + i*wi[k,n,m]) * (xr[k,b,m] + i*xi[k,b,m])
# Weights are pre-laid-out at init (no in-kernel transpose); the short channel
# contraction is a statically-unrolled VPU MAC with modes on the 128-lane dim.
# ----------------------------------------------------------------------------
def _mode_kernel(xr_ref, xi_ref, wr_ref, wi_ref, or_ref, oi_ref):
    xr = xr_ref[...]
    xi = xi_ref[...]
    wr = wr_ref[...]
    wi = wi_ref[...]
    acc_r = jnp.zeros(or_ref.shape, jnp.float32)
    acc_i = jnp.zeros(oi_ref.shape, jnp.float32)
    for k in range(xr_ref.shape[0]):          # static unroll over Ci (small)
        wrk = wr[k][:, None, :]               # (Co, 1, Mt)
        wik = wi[k][:, None, :]
        xrk = xr[k][None, :, :]               # (1, B, Mt)
        xik = xi[k][None, :, :]
        acc_r = acc_r + wrk * xrk - wik * xik
        acc_i = acc_i + wik * xrk + wrk * xik
    or_ref[...] = acc_r
    oi_ref[...] = acc_i


def _mode_mix(xr, xi, wr, wi):
    """xr, xi: (Ci, B, M); wr, wi: (Ci, Co, M)  ->  (or, oi): (Co, B, M)."""
    Ci, B, M = xr.shape
    Co = wr.shape[1]
    mt = M if M <= MAX_MODE_TILE else MAX_MODE_TILE   # cap keeps blocks in VMEM
    nt = pl.cdiv(M, mt)
    flops = 8 * M * B * Ci * Co
    bytes_acc = 4 * (2 * Ci * B * M + 2 * Ci * Co * M + 2 * Co * B * M)
    return pl.pallas_call(
        _mode_kernel,
        out_shape=(jax.ShapeDtypeStruct((Co, B, M), jnp.float32),
                   jax.ShapeDtypeStruct((Co, B, M), jnp.float32)),
        grid=(nt,),
        in_specs=[pl.BlockSpec((Ci, B, mt), lambda i: (0, 0, i)),
                  pl.BlockSpec((Ci, B, mt), lambda i: (0, 0, i)),
                  pl.BlockSpec((Ci, Co, mt), lambda i: (0, 0, i)),
                  pl.BlockSpec((Ci, Co, mt), lambda i: (0, 0, i))],
        out_specs=(pl.BlockSpec((Co, B, mt), lambda i: (0, 0, i)),
                   pl.BlockSpec((Co, B, mt), lambda i: (0, 0, i))),
        compiler_params=pltpu.CompilerParams(dimension_semantics=("parallel",)),
        cost_estimate=pl.CostEstimate(flops=flops, transcendentals=0,
                                      bytes_accessed=bytes_acc),
    )(xr, xi, wr, wi)


def spectral_conv2d(z, wr, wi, m1, m2):
    """SpectralConv2d on channel-first z: (Ci, B, Hp, Wp) f32.
    wr, wi: (Ci, Co, 2*m1*m2) with modes ordered [low | high] on the minor dim."""
    Ci, B, Hp, Wp = z.shape
    Co = wr.shape[1]
    M = 2 * m1 * m2
    Wf = Wp // 2 + 1
    # TODO(synk): FFT has no Pallas TPU primitive; rfft2/irfft2 and the thin
    # slice/concat glue around them stay in plain JAX (XLA).
    z_ft = jnp.fft.rfft2(z, axes=(-2, -1))                        # (Ci, B, Hp, Wf) c64
    lo = z_ft[:, :, :m1, :m2]
    hi = z_ft[:, :, Hp - m1:, :m2]
    xm = jnp.concatenate([lo, hi], axis=2).reshape(Ci, B, M)      # modes on minor dim
    or_, oi_ = _mode_mix(jnp.real(xm), jnp.imag(xm), wr, wi)      # (Co, B, M) x2
    out_c = jax.lax.complex(or_, oi_).reshape(Co, B, 2, m1, m2)
    mid = jnp.zeros((Co, B, Hp - 2 * m1, m2), jnp.complex64)
    out_ft = jnp.concatenate([out_c[:, :, 0], mid, out_c[:, :, 1]], axis=2)
    out_ft = jnp.pad(out_ft, ((0, 0), (0, 0), (0, 0), (0, Wf - m2)))
    return jnp.fft.irfft2(out_ft, s=(Hp, Wp), axes=(-2, -1)).astype(jnp.float32)


# ----------------------------------------------------------------------------
# Module pieces (glue around the Pallas kernels)
# ----------------------------------------------------------------------------
def basic_block(p, z, x_flat, m1, m2, add_mlp):
    """z <- GELU(SpectralConv(z) (+MLP) + Conv1x1(z) + x_injection)."""
    C, B, Hp, Wp = z.shape
    Np = B * Hp * Wp
    z1 = spectral_conv2d(z, p['conv_wr'], p['conv_wi'], m1, m2)
    z1_flat = z1.reshape(C, Np)
    if add_mlp:
        z1_flat = mlp_pointwise(z1_flat, p['mlp_w1'], p['mlp_b1'],
                                p['mlp_w2'], p['mlp_b2'])
    # both residuals (spectral branch + injection) fused into the matmul kernel
    z_new = pointwise(z.reshape(C, Np), p['w_w'], p['w_b'],
                      adds=(z1_flat, x_flat), act=True)
    return z_new.reshape(C, B, Hp, Wp)


def fno2d_deep_small_forward(params, x, modes1, modes2, width, add_mlp=False, padding=9):
    B, Sx, Sy, _ = x.shape
    # get_grid + cat, built directly in channel-first (3, B, Sx, Sy) layout.
    gx = jnp.broadcast_to(
        jnp.linspace(0.0, 1.0, Sx, dtype=jnp.float32).reshape(1, Sx, 1), (B, Sx, Sy))
    gy = jnp.broadcast_to(
        jnp.linspace(0.0, 1.0, Sy, dtype=jnp.float32).reshape(1, 1, Sy), (B, Sx, Sy))
    xin = jnp.stack([x[..., 0], gx, gy], axis=0)                  # (3, B, Sx, Sy)
    N0 = B * Sx * Sy
    # fc: Linear(3, width)
    h = pointwise(xin.reshape(3, N0), params['fc_w'], params['fc_b'])
    h = h.reshape(width, B, Sx, Sy)
    # F.pad(NCHW, [0,P,0,P]) == pad bottom/right of the spatial dims
    h = jnp.pad(h, ((0, 0), (0, 0), (0, padding), (0, padding)))
    Hp, Wp = Sx + padding, Sy + padding
    Np = B * Hp * Wp
    x_flat = h.reshape(width, Np)
    # z1 = zeros_like(x); next_z1 = deq_block(z1, x)
    z = jnp.zeros_like(h)
    for p_blk in params['blocks']:
        z = basic_block(p_blk, z, x_flat, modes1, modes2, add_mlp)
    # x1 = conv(next_z1) (+ mlp); x2 = w0(next_z1); x = x1 + x2; crop; q(x)
    x1 = spectral_conv2d(z, params['conv_wr'], params['conv_wi'], modes1, modes2)
    x1_flat = x1.reshape(width, Np)
    if add_mlp:
        x1_flat = mlp_pointwise(x1_flat, params['mlp_w1'], params['mlp_b1'],
                                params['mlp_w2'], params['mlp_b2'])
    # Fused tail on the padded slab (1x1 convs commute with the crop): saves a
    # (width, Np) HBM round trip; only the 1-channel result is cropped.
    out = tail_head(z.reshape(width, Np), x1_flat,
                    params['w0_w'], params['w0_b'],
                    params['q1_w'], params['q1_b'],
                    params['q2_w'], params['q2_b'])               # (1, Np)
    out = out.reshape(1, B, Hp, Wp)[:, :, :Sx, :Sy]
    return jnp.transpose(out, (1, 2, 3, 0))                       # (B, Sx, Sy, 1)


# ----------------------------------------------------------------------------
# Deterministic parameter init (synthetic; shapes follow the module __init__)
# ----------------------------------------------------------------------------
def _init_linear(key, ci, co):
    kw, kb = jax.random.split(key)
    bound = 1.0 / np.sqrt(ci)
    w = jax.random.uniform(kw, (co, ci), jnp.float32, -bound, bound)   # torch (out, in)
    b = jax.random.uniform(kb, (co,), jnp.float32, -bound, bound)
    return w, b


def _init_spectral(key, ci, co, m1, m2):
    # torch: scale * rand(ci, co, m1, m2, dtype=cfloat) for weights1/weights2.
    # Stored pre-laid-out as real/imag (ci, co, M) with M = [low | high] modes
    # flattened on the minor (lane) dim -> no transpose at trace or kernel time.
    scale = 1.0 / (ci * co)
    ks = jax.random.split(key, 4)

    def draw(k):
        return scale * jax.random.uniform(k, (ci, co, m1 * m2), jnp.float32)

    w1r, w1i, w2r, w2i = (draw(k) for k in ks)
    wr = jnp.concatenate([w1r, w2r], axis=-1)   # (ci, co, 2*m1*m2)
    wi = jnp.concatenate([w1i, w2i], axis=-1)
    return wr, wi


def init_params(key, modes1, modes2, width, block_depth, add_mlp):
    keys = iter(jax.random.split(key, 64))
    nk = lambda: next(keys)
    p = {}
    p['fc_w'], p['fc_b'] = _init_linear(nk(), 3, width)
    p['conv_wr'], p['conv_wi'] = _init_spectral(nk(), width, width, modes1, modes2)
    p['w0_w'], p['w0_b'] = _init_linear(nk(), width, width)
    if add_mlp:
        p['mlp_w1'], p['mlp_b1'] = _init_linear(nk(), width, width)
        p['mlp_w2'], p['mlp_b2'] = _init_linear(nk(), width, width)
    p['q1_w'], p['q1_b'] = _init_linear(nk(), width, 4 * width)
    p['q2_w'], p['q2_b'] = _init_linear(nk(), 4 * width, 1)
    blocks = []
    for _ in range(block_depth):
        bp = {}
        bp['conv_wr'], bp['conv_wi'] = _init_spectral(nk(), width, width, modes1, modes2)
        bp['w_w'], bp['w_b'] = _init_linear(nk(), width, width)
        if add_mlp:
            bp['mlp_w1'], bp['mlp_b1'] = _init_linear(nk(), width, width)
            bp['mlp_w2'], bp['mlp_b2'] = _init_linear(nk(), width, width)
        blocks.append(bp)
    p['blocks'] = blocks
    return p


# ----------------------------------------------------------------------------
if __name__ == "__main__":
    MODES1 = MODES2 = 4
    WIDTH = 8
    BLOCK_DEPTH = 2
    ADD_MLP = False
    B, S = 2, 16   # input: (batch, x=s, y=s, c=1)

    key = jax.random.PRNGKey(0)
    kx, kp = jax.random.split(key)
    x = jax.random.normal(kx, (B, S, S, 1), dtype=jnp.float32)
    params = init_params(kp, MODES1, MODES2, WIDTH, BLOCK_DEPTH, ADD_MLP)

    fwd = jax.jit(partial(fno2d_deep_small_forward,
                          modes1=MODES1, modes2=MODES2, width=WIDTH,
                          add_mlp=ADD_MLP, padding=9))
    out = fwd(params, x)
    jax.block_until_ready(out)
    assert out.shape == (B, S, S, 1) and out.dtype == jnp.float32
    assert bool(jnp.all(jnp.isfinite(out)))
    print("KERNEL_OK")
</pallas_src>

<mosaic_0001>
module attributes {stable_mosaic.version = 11 : i64} {
  func.func @_mode_kernel(%arg0: i32, %arg1: memref<8x2x32xf32, #tpu.memory_space<vmem>>, %arg2: memref<8x2x32xf32, #tpu.memory_space<vmem>>, %arg3: memref<8x8x32xf32, #tpu.memory_space<vmem>>, %arg4: memref<8x8x32xf32, #tpu.memory_space<vmem>>, %arg5: memref<8x2x32xf32, #tpu.memory_space<vmem>>, %arg6: memref<8x2x32xf32, #tpu.memory_space<vmem>>) attributes {dimension_semantics = [#tpu.dimension_semantics<parallel>], iteration_bounds = array<i64: 1>, scalar_prefetch = 0 : i64, scratch_operands = 0 : i64, tpu.core_type = #tpu.core_type<tc>, window_params = [{transform_indices = @transform_0, window_bounds = array<i64: 8, 2, 32>}, {transform_indices = @transform_1, window_bounds = array<i64: 8, 2, 32>}, {transform_indices = @transform_2, window_bounds = array<i64: 8, 8, 32>}, {transform_indices = @transform_3, window_bounds = array<i64: 8, 8, 32>}, {transform_indices = @transform_4, window_bounds = array<i64: 8, 2, 32>}, {transform_indices = @transform_5, window_bounds = array<i64: 8, 2, 32>}]} {
    %c0 = arith.constant 0 : index
    %c0_0 = arith.constant 0 : index
    %c0_1 = arith.constant 0 : index
    %0 = vector.load %arg1[%c0, %c0_0, %c0_1] : memref<8x2x32xf32, #tpu.memory_space<vmem>>, vector<8x2x32xf32>
    %c0_2 = arith.constant 0 : index
    %c0_3 = arith.constant 0 : index
    %c0_4 = arith.constant 0 : index
    %1 = vector.load %arg2[%c0_2, %c0_3, %c0_4] : memref<8x2x32xf32, #tpu.memory_space<vmem>>, vector<8x2x32xf32>
    %c0_5 = arith.constant 0 : index
    %c0_6 = arith.constant 0 : index
    %c0_7 = arith.constant 0 : index
    %2 = vector.load %arg3[%c0_5, %c0_6, %c0_7] : memref<8x8x32xf32, #tpu.memory_space<vmem>>, vector<8x8x32xf32>
    %c0_8 = arith.constant 0 : index
    %c0_9 = arith.constant 0 : index
    %c0_10 = arith.constant 0 : index
    %3 = vector.load %arg4[%c0_8, %c0_9, %c0_10] : memref<8x8x32xf32, #tpu.memory_space<vmem>>, vector<8x8x32xf32>
    %cst = arith.constant 0.000000e+00 : f32
    %4 = vector.broadcast %cst : f32 to vector<8x2x32xf32>
    %cst_11 = arith.constant 0.000000e+00 : f32
    %5 = vector.broadcast %cst_11 : f32 to vector<8x2x32xf32>
    %6 = vector.extract_strided_slice %2 {offsets = [0, 0, 0], sizes = [1, 8, 32], strides = [1, 1, 1]} : vector<8x8x32xf32> to vector<1x8x32xf32>
    %7 = vector.shape_cast %6 : vector<1x8x32xf32> to vector<8x32xf32>
    %8 = vector.shape_cast %7 : vector<8x32xf32> to vector<8x1x32xf32>
    %9 = vector.extract_strided_slice %3 {offsets = [0, 0, 0], sizes = [1, 8, 32], strides = [1, 1, 1]} : vector<8x8x32xf32> to vector<1x8x32xf32>
    %10 = vector.shape_cast %9 : vector<1x8x32xf32> to vector<8x32xf32>
    %11 = vector.shape_cast %10 : vector<8x32xf32> to vector<8x1x32xf32>
    %12 = vector.extract_strided_slice %0 {offsets = [0, 0, 0], sizes = [1, 2, 32], strides = [1, 1, 1]} : vector<8x2x32xf32> to vector<1x2x32xf32>
    %13 = vector.shape_cast %12 : vector<1x2x32xf32> to vector<2x32xf32>
    %14 = vector.shape_cast %13 : vector<2x32xf32> to vector<1x2x32xf32>
    %15 = vector.extract_strided_slice %1 {offsets = [0, 0, 0], sizes = [1, 2, 32], strides = [1, 1, 1]} : vector<8x2x32xf32> to vector<1x2x32xf32>
    %16 = vector.shape_cast %15 : vector<1x2x32xf32> to vector<2x32xf32>
    %17 = vector.shape_cast %16 : vector<2x32xf32> to vector<1x2x32xf32>
    %18 = vector.broadcast %8 : vector<8x1x32xf32> to vector<8x2x32xf32>
    %19 = vector.broadcast %14 : vector<1x2x32xf32> to vector<8x2x32xf32>
    %20 = arith.mulf %18, %19 : vector<8x2x32xf32>
    %21 = arith.addf %4, %20 : vector<8x2x32xf32>
    %22 = vector.broadcast %11 : vector<8x1x32xf32> to vector<8x2x32xf32>
    %23 = vector.broadcast %17 : vector<1x2x32xf32> to vector<8x2x32xf32>
    %24 = arith.mulf %22, %23 : vector<8x2x32xf32>
    %25 = arith.subf %21, %24 : vector<8x2x32xf32>
    %26 = vector.broadcast %11 : vector<8x1x32xf32> to vector<8x2x32xf32>
    %27 = vector.broadcast %14 : vector<1x2x32xf32> to vector<8x2x32xf32>
    %28 = arith.mulf %26, %27 : vector<8x2x32xf32>
    %29 = arith.addf %5, %28 : vector<8x2x32xf32>
    %30 = vector.broadcast %8 : vector<8x1x32xf32> to vector<8x2x32xf32>
    %31 = vector.broadcast %17 : vector<1x2x32xf32> to vector<8x2x32xf32>
    %32 = arith.mulf %30, %31 : vector<8x2x32xf32>
    %33 = arith.addf %29, %32 : vector<8x2x32xf32>
    %34 = vector.extract_strided_slice %2 {offsets = [1, 0, 0], sizes = [1, 8, 32], strides = [1, 1, 1]} : vector<8x8x32xf32> to vector<1x8x32xf32>
    %35 = vector.shape_cast %34 : vector<1x8x32xf32> to vector<8x32xf32>
    %36 = vector.shape_cast %35 : vector<8x32xf32> to vector<8x1x32xf32>
    %37 = vector.extract_strided_slice %3 {offsets = [1, 0, 0], sizes = [1, 8, 32], strides = [1, 1, 1]} : vector<8x8x32xf32> to vector<1x8x32xf32>
    %38 = vector.shape_cast %37 : vector<1x8x32xf32> to vector<8x32xf32>
    %39 = vector.shape_cast %38 : vector<8x32xf32> to vector<8x1x32xf32>
    %40 = vector.extract_strided_slice %0 {offsets = [1, 0, 0], sizes = [1, 2, 32], strides = [1, 1, 1]} : vector<8x2x32xf32> to vector<1x2x32xf32>
    %41 = vector.shape_cast %40 : vector<1x2x32xf32> to vector<2x32xf32>
    %42 = vector.shape_cast %41 : vector<2x32xf32> to vector<1x2x32xf32>
    %43 = vector.extract_strided_slice %1 {offsets = [1, 0, 0], sizes = [1, 2, 32], strides = [1, 1, 1]} : vector<8x2x32xf32> to vector<1x2x32xf32>
    %44 = vector.shape_cast %43 : vector<1x2x32xf32> to vector<2x32xf32>
    %45 = vector.shape_cast %44 : vector<2x32xf32> to vector<1x2x32xf32>
    %46 = vector.broadcast %36 : vector<8x1x32xf32> to vector<8x2x32xf32>
    %47 = vector.broadcast %42 : vector<1x2x32xf32> to vector<8x2x32xf32>
    %48 = arith.mulf %46, %47 : vector<8x2x32xf32>
    %49 = arith.addf %25, %48 : vector<8x2x32xf32>
    %50 = vector.broadcast %39 : vector<8x1x32xf32> to vector<8x2x32xf32>
    %51 = vector.broadcast %45 : vector<1x2x32xf32> to vector<8x2x32xf32>
    %52 = arith.mulf %50, %51 : vector<8x2x32xf32>
    %53 = arith.subf %49, %52 : vector<8x2x32xf32>
    %54 = vector.broadcast %39 : vector<8x1x32xf32> to vector<8x2x32xf32>
    %55 = vector.broadcast %42 : vector<1x2x32xf32> to vector<8x2x32xf32>
    %56 = arith.mulf %54, %55 : vector<8x2x32xf32>
    %57 = arith.addf %33, %56 : vector<8x2x32xf32>
    %58 = vector.broadcast %36 : vector<8x1x32xf32> to vector<8x2x32xf32>
    %59 = vector.broadcast %45 : vector<1x2x32xf32> to vector<8x2x32xf32>
    %60 = arith.mulf %58, %59 : vector<8x2x32xf32>
    %61 = arith.addf %57, %60 : vector<8x2x32xf32>
    %62 = vector.extract_strided_slice %2 {offsets = [2, 0, 0], sizes = [1, 8, 32], strides = [1, 1, 1]} : vector<8x8x32xf32> to vector<1x8x32xf32>
    %63 = vector.shape_cast %62 : vector<1x8x32xf32> to vector<8x32xf32>
    %64 = vector.shape_cast %63 : vector<8x32xf32> to vector<8x1x32xf32>
    %65 = vector.extract_strided_slice %3 {offsets = [2, 0, 0], sizes = [1, 8, 32], strides = [1, 1, 1]} : vector<8x8x32xf32> to vector<1x8x32xf32>
    %66 = vector.shape_cast %65 : vector<1x8x32xf32> to vector<8x32xf32>
    %67 = vector.shape_cast %66 : vector<8x32xf32> to vector<8x1x32xf32>
    %68 = vector.extract_strided_slice %0 {offsets = [2, 0, 0], sizes = [1, 2, 32], strides = [1, 1, 1]} : vector<8x2x32xf32> to vector<1x2x32xf32>
    %69 = vector.shape_cast %68 : vector<1x2x32xf32> to vector<2x32xf32>
    %70 = vector.shape_cast %69 : vector<2x32xf32> to vector<1x2x32xf32>
    %71 = vector.extract_strided_slice %1 {offsets = [2, 0, 0], sizes = [1, 2, 32], strides = [1, 1, 1]} : vector<8x2x32xf32> to vector<1x2x32xf32>
    %72 = vector.shape_cast %71 : vector<1x2x32xf32> to vector<2x32xf32>
    %73 = vector.shape_cast %72 : vector<2x32xf32> to vector<1x2x32xf32>
    %74 = vector.broadcast %64 : vector<8x1x32xf32> to vector<8x2x32xf32>
    %75 = vector.broadcast %70 : vector<1x2x32xf32> to vector<8x2x32xf32>
    %76 = arith.mulf %74, %75 : vector<8x2x32xf32>
    %77 = arith.addf %53, %76 : vector<8x2x32xf32>
    %78 = vector.broadcast %67 : vector<8x1x32xf32> to vector<8x2x32xf32>
    %79 = vector.broadcast %73 : vector<1x2x32xf32> to vector<8x2x32xf32>
    %80 = arith.mulf %78, %79 : vector<8x2x32xf32>
    %81 = arith.subf %77, %80 : vector<8x2x32xf32>
    %82 = vector.broadcast %67 : vector<8x1x32xf32> to vector<8x2x32xf32>
    %83 = vector.broadcast %70 : vector<1x2x32xf32> to vector<8x2x32xf32>
    %84 = arith.mulf %82, %83 : vector<8x2x32xf32>
    %85 = arith.addf %61, %84 : vector<8x2x32xf32>
    %86 = vector.broadcast %64 : vector<8x1x32xf32> to vector<8x2x32xf32>
    %87 = vector.broadcast %73 : vector<1x2x32xf32> to vector<8x2x32xf32>
    %88 = arith.mulf %86, %87 : vector<8x2x32xf32>
    %89 = arith.addf %85, %88 : vector<8x2x32xf32>
    %90 = vector.extract_strided_slice %2 {offsets = [3, 0, 0], sizes = [1, 8, 32], strides = [1, 1, 1]} : vector<8x8x32xf32> to vector<1x8x32xf32>
    %91 = vector.shape_cast %90 : vector<1x8x32xf32> to vector<8x32xf32>
    %92 = vector.shape_cast %91 : vector<8x32xf32> to vector<8x1x32xf32>
    %93 = vector.extract_strided_slice %3 {offsets = [3, 0, 0], sizes = [1, 8, 32], strides = [1, 1, 1]} : vector<8x8x32xf32> to vector<1x8x32xf32>
    %94 = vector.shape_cast %93 : vector<1x8x32xf32> to vector<8x32xf32>
    %95 = vector.shape_cast %94 : vector<8x32xf32> to vector<8x1x32xf32>
    %96 = vector.extract_strided_slice %0 {offsets = [3, 0, 0], sizes = [1, 2, 32], strides = [1, 1, 1]} : vector<8x2x32xf32> to vector<1x2x32xf32>
    %97 = vector.shape_cast %96 : vector<1x2x32xf32> to vector<2x32xf32>
    %98 = vector.shape_cast %97 : vector<2x32xf32> to vector<1x2x32xf32>
    %99 = vector.extract_strided_slice %1 {offsets = [3, 0, 0], sizes = [1, 2, 32], strides = [1, 1, 1]} : vector<8x2x32xf32> to vector<1x2x32xf32>
    %100 = vector.shape_cast %99 : vector<1x2x32xf32> to vector<2x32xf32>
    %101 = vector.shape_cast %100 : vector<2x32xf32> to vector<1x2x32xf32>
    %102 = vector.broadcast %92 : vector<8x1x32xf32> to vector<8x2x32xf32>
    %103 = vector.broadcast %98 : vector<1x2x32xf32> to vector<8x2x32xf32>
    %104 = arith.mulf %102, %103 : vector<8x2x32xf32>
    %105 = arith.addf %81, %104 : vector<8x2x32xf32>
    %106 = vector.broadcast %95 : vector<8x1x32xf32> to vector<8x2x32xf32>
    %107 = vector.broadcast %101 : vector<1x2x32xf32> to vector<8x2x32xf32>
    %108 = arith.mulf %106, %107 : vector<8x2x32xf32>
    %109 = arith.subf %105, %108 : vector<8x2x32xf32>
    %110 = vector.broadcast %95 : vector<8x1x32xf32> to vector<8x2x32xf32>
    %111 = vector.broadcast %98 : vector<1x2x32xf32> to vector<8x2x32xf32>
    %112 = arith.mulf %110, %111 : vector<8x2x32xf32>
    %113 = arith.addf %89, %112 : vector<8x2x32xf32>
    %114 = vector.broadcast %92 : vector<8x1x32xf32> to vector<8x2x32xf32>
    %115 = vector.broadcast %101 : vector<1x2x32xf32> to vector<8x2x32xf32>
    %116 = arith.mulf %114, %115 : vector<8x2x32xf32>
    %117 = arith.addf %113, %116 : vector<8x2x32xf32>
    %118 = vector.extract_strided_slice %2 {offsets = [4, 0, 0], sizes = [1, 8, 32], strides = [1, 1, 1]} : vector<8x8x32xf32> to vector<1x8x32xf32>
    %119 = vector.shape_cast %118 : vector<1x8x32xf32> to vector<8x32xf32>
    %120 = vector.shape_cast %119 : vector<8x32xf32> to vector<8x1x32xf32>
    %121 = vector.extract_strided_slice %3 {offsets = [4, 0, 0], sizes = [1, 8, 32], strides = [1, 1, 1]} : vector<8x8x32xf32> to vector<1x8x32xf32>
    %122 = vector.shape_cast %121 : vector<1x8x32xf32> to vector<8x32xf32>
    %123 = vector.shape_cast %122 : vector<8x32xf32> to vector<8x1x32xf32>
    %124 = vector.extract_strided_slice %0 {offsets = [4, 0, 0], sizes = [1, 2, 32], strides = [1, 1, 1]} : vector<8x2x32xf32> to vector<1x2x32xf32>
    %125 = vector.shape_cast %124 : vector<1x2x32xf32> to vector<2x32xf32>
    %126 = vector.shape_cast %125 : vector<2x32xf32> to vector<1x2x32xf32>
    %127 = vector.extract_strided_slice %1 {offsets = [4, 0, 0], sizes = [1, 2, 32], strides = [1, 1, 1]} : vector<8x2x32xf32> to vector<1x2x32xf32>
    %128 = vector.shape_cast %127 : vector<1x2x32xf32> to vector<2x32xf32>
    %129 = vector.shape_cast %128 : vector<2x32xf32> to vector<1x2x32xf32>
    %130 = vector.broadcast %120 : vector<8x1x32xf32> to vector<8x2x32xf32>
    %131 = vector.broadcast %126 : vector<1x2x32xf32> to vector<8x2x32xf32>
    %132 = arith.mulf %130, %131 : vector<8x2x32xf32>
    %133 = arith.addf %109, %132 : vector<8x2x32xf32>
    %134 = vector.broadcast %123 : vector<8x1x32xf32> to vector<8x2x32xf32>
    %135 = vector.broadcast %129 : vector<1x2x32xf32> to vector<8x2x32xf32>
    %136 = arith.mulf %134, %135 : vector<8x2x32xf32>
    %137 = arith.subf %133, %136 : vector<8x2x32xf32>
    %138 = vector.broadcast %123 : vector<8x1x32xf32> to vector<8x2x32xf32>
    %139 = vector.broadcast %126 : vector<1x2x32xf32> to vector<8x2x32xf32>
    %140 = arith.mulf %138, %139 : vector<8x2x32xf32>
    %141 = arith.addf %117, %140 : vector<8x2x32xf32>
    %142 = vector.broadcast %120 : vector<8x1x32xf32> to vector<8x2x32xf32>
    %143 = vector.broadcast %129 : vector<1x2x32xf32> to vector<8x2x32xf32>
    %144 = arith.mulf %142, %143 : vector<8x2x32xf32>
    %145 = arith.addf %141, %144 : vector<8x2x32xf32>
    %146 = vector.extract_strided_slice %2 {offsets = [5, 0, 0], sizes = [1, 8, 32], strides = [1, 1, 1]} : vector<8x8x32xf32> to vector<1x8x32xf32>
    %147 = vector.shape_cast %146 : vector<1x8x32xf32> to vector<8x32xf32>
    %148 = vector.shape_cast %147 : vector<8x32xf32> to vector<8x1x32xf32>
    %149 = vector.extract_strided_slice %3 {offsets = [5, 0, 0], sizes = [1, 8, 32], strides = [1, 1, 1]} : vector<8x8x32xf32> to vector<1x8x32xf32>
    %150 = vector.shape_cast %149 : vector<1x8x32xf32> to vector<8x32xf32>
    %151 = vector.shape_cast %150 : vector<8x32xf32> to vector<8x1x32xf32>
    %152 = vector.extract_strided_slice %0 {offsets = [5, 0, 0], sizes = [1, 2, 32], strides = [1, 1, 1]} : vector<8x2x32xf32> to vector<1x2x32xf32>
    %153 = vector.shape_cast %152 : vector<1x2x32xf32> to vector<2x32xf32>
    %154 = vector.shape_cast %153 : vector<2x32xf32> to vector<1x2x32xf32>
    %155 = vector.extract_strided_slice %1 {offsets = [5, 0, 0], sizes = [1, 2, 32], strides = [1, 1, 1]} : vector<8x2x32xf32> to vector<1x2x32xf32>
    %156 = vector.shape_cast %155 : vector<1x2x32xf32> to vector<2x32xf32>
    %157 = vector.shape_cast %156 : vector<2x32xf32> to vector<1x2x32xf32>
    %158 = vector.broadcast %148 : vector<8x1x32xf32> to vector<8x2x32xf32>
    %159 = vector.broadcast %154 : vector<1x2x32xf32> to vector<8x2x32xf32>
    %160 = arith.mulf %158, %159 : vector<8x2x32xf32>
    %161 = arith.addf %137, %160 : vector<8x2x32xf32>
    %162 = vector.broadcast %151 : vector<8x1x32xf32> to vector<8x2x32xf32>
    %163 = vector.broadcast %157 : vector<1x2x32xf32> to vector<8x2x32xf32>
    %164 = arith.mulf %162, %163 : vector<8x2x32xf32>
    %165 = arith.subf %161, %164 : vector<8x2x32xf32>
    %166 = vector.broadcast %151 : vector<8x1x32xf32> to vector<8x2x32xf32>
    %167 = vector.broadcast %154 : vector<1x2x32xf32> to vector<8x2x32xf32>
    %168 = arith.mulf %166, %167 : vector<8x2x32xf32>
    %169 = arith.addf %145, %168 : vector<8x2x32xf32>
    %170 = vector.broadcast %148 : vector<8x1x32xf32> to vector<8x2x32xf32>
    %171 = vector.broadcast %157 : vector<1x2x32xf32> to vector<8x2x32xf32>
    %172 = arith.mulf %170, %171 : vector<8x2x32xf32>
    %173 = arith.addf %169, %172 : vector<8x2x32xf32>
    %174 = vector.extract_strided_slice %2 {offsets = [6, 0, 0], sizes = [1, 8, 32], strides = [1, 1, 1]} : vector<8x8x32xf32> to vector<1x8x32xf32>
    %175 = vector.shape_cast %174 : vector<1x8x32xf32> to vector<8x32xf32>
    %176 = vector.shape_cast %175 : vector<8x32xf32> to vector<8x1x32xf32>
    %177 = vector.extract_strided_slice %3 {offsets = [6, 0, 0], sizes = [1, 8, 32], strides = [1, 1, 1]} : vector<8x8x32xf32> to vector<1x8x32xf32>
    %178 = vector.shape_cast %177 : vector<1x8x32xf32> to vector<8x32xf32>
    %179 = vector.shape_cast %178 : vector<8x32xf32> to vector<8x1x32xf32>
    %180 = vector.extract_strided_slice %0 {offsets = [6, 0, 0], sizes = [1, 2, 32], strides = [1, 1, 1]} : vector<8x2x32xf32> to vector<1x2x32xf32>
    %181 = vector.shape_cast %180 : vector<1x2x32xf32> to vector<2x32xf32>
    %182 = vector.shape_cast %181 : vector<2x32xf32> to vector<1x2x32xf32>
    %183 = vector.extract_strided_slice %1 {offsets = [6, 0, 0], sizes = [1, 2, 32], strides = [1, 1, 1]} : vector<8x2x32xf32> to vector<1x2x32xf32>
    %184 = vector.shape_cast %183 : vector<1x2x32xf32> to vector<2x32xf32>
    %185 = vector.shape_cast %184 : vector<2x32xf32> to vector<1x2x32xf32>
    %186 = vector.broadcast %176 : vector<8x1x32xf32> to vector<8x2x32xf32>
    %187 = vector.broadcast %182 : vector<1x2x32xf32> to vector<8x2x32xf32>
    %188 = arith.mulf %186, %187 : vector<8x2x32xf32>
    %189 = arith.addf %165, %188 : vector<8x2x32xf32>
    %190 = vector.broadcast %179 : vector<8x1x32xf32> to vector<8x2x32xf32>
    %191 = vector.broadcast %185 : vector<1x2x32xf32> to vector<8x2x32xf32>
    %192 = arith.mulf %190, %191 : vector<8x2x32xf32>
    %193 = arith.subf %189, %192 : vector<8x2x32xf32>
    %194 = vector.broadcast %179 : vector<8x1x32xf32> to vector<8x2x32xf32>
    %195 = vector.broadcast %182 : vector<1x2x32xf32> to vector<8x2x32xf32>
    %196 = arith.mulf %194, %195 : vector<8x2x32xf32>
    %197 = arith.addf %173, %196 : vector<8x2x32xf32>
    %198 = vector.broadcast %176 : vector<8x1x32xf32> to vector<8x2x32xf32>
    %199 = vector.broadcast %185 : vector<1x2x32xf32> to vector<8x2x32xf32>
    %200 = arith.mulf %198, %199 : vector<8x2x32xf32>
    %201 = arith.addf %197, %200 : vector<8x2x32xf32>
    %202 = vector.extract_strided_slice %2 {offsets = [7, 0, 0], sizes = [1, 8, 32], strides = [1, 1, 1]} : vector<8x8x32xf32> to vector<1x8x32xf32>
    %203 = vector.shape_cast %202 : vector<1x8x32xf32> to vector<8x32xf32>
    %204 = vector.shape_cast %203 : vector<8x32xf32> to vector<8x1x32xf32>
    %205 = vector.extract_strided_slice %3 {offsets = [7, 0, 0], sizes = [1, 8, 32], strides = [1, 1, 1]} : vector<8x8x32xf32> to vector<1x8x32xf32>
    %206 = vector.shape_cast %205 : vector<1x8x32xf32> to vector<8x32xf32>
    %207 = vector.shape_cast %206 : vector<8x32xf32> to vector<8x1x32xf32>
    %208 = vector.extract_strided_slice %0 {offsets = [7, 0, 0], sizes = [1, 2, 32], strides = [1, 1, 1]} : vector<8x2x32xf32> to vector<1x2x32xf32>
    %209 = vector.shape_cast %208 : vector<1x2x32xf32> to vector<2x32xf32>
    %210 = vector.shape_cast %209 : vector<2x32xf32> to vector<1x2x32xf32>
    %211 = vector.extract_strided_slice %1 {offsets = [7, 0, 0], sizes = [1, 2, 32], strides = [1, 1, 1]} : vector<8x2x32xf32> to vector<1x2x32xf32>
    %212 = vector.shape_cast %211 : vector<1x2x32xf32> to vector<2x32xf32>
    %213 = vector.shape_cast %212 : vector<2x32xf32> to vector<1x2x32xf32>
    %214 = vector.broadcast %204 : vector<8x1x32xf32> to vector<8x2x32xf32>
    %215 = vector.broadcast %210 : vector<1x2x32xf32> to vector<8x2x32xf32>
    %216 = arith.mulf %214, %215 : vector<8x2x32xf32>
    %217 = arith.addf %193, %216 : vector<8x2x32xf32>
    %218 = vector.broadcast %207 : vector<8x1x32xf32> to vector<8x2x32xf32>
    %219 = vector.broadcast %213 : vector<1x2x32xf32> to vector<8x2x32xf32>
    %220 = arith.mulf %218, %219 : vector<8x2x32xf32>
    %221 = arith.subf %217, %220 : vector<8x2x32xf32>
    %222 = vector.broadcast %207 : vector<8x1x32xf32> to vector<8x2x32xf32>
    %223 = vector.broadcast %210 : vector<1x2x32xf32> to vector<8x2x32xf32>
    %224 = arith.mulf %222, %223 : vector<8x2x32xf32>
    %225 = arith.addf %201, %224 : vector<8x2x32xf32>
    %226 = vector.broadcast %204 : vector<8x1x32xf32> to vector<8x2x32xf32>
    %227 = vector.broadcast %213 : vector<1x2x32xf32> to vector<8x2x32xf32>
    %228 = arith.mulf %226, %227 : vector<8x2x32xf32>
    %229 = arith.addf %225, %228 : vector<8x2x32xf32>
    %c0_12 = arith.constant 0 : index
    %c0_13 = arith.constant 0 : index
    %c0_14 = arith.constant 0 : index
    %230 = vector.load %arg5[%c0_12, %c0_13, %c0_14] : memref<8x2x32xf32, #tpu.memory_space<vmem>>, vector<8x2x32xf32>
    tpu.vector_store %arg5[%c0_12, %c0_13, %c0_14], %221 {strides = array<i32>} : memref<8x2x32xf32, #tpu.memory_space<vmem>>, vector<8x2x32xf32>,
    %c0_15 = arith.constant 0 : index
    %c0_16 = arith.constant 0 : index
    %c0_17 = arith.constant 0 : index
    %231 = vector.load %arg6[%c0_15, %c0_16, %c0_17] : memref<8x2x32xf32, #tpu.memory_space<vmem>>, vector<8x2x32xf32>
    tpu.vector_store %arg6[%c0_15, %c0_16, %c0_17], %229 {strides = array<i32>} : memref<8x2x32xf32, #tpu.memory_space<vmem>>, vector<8x2x32xf32>,
    return
  }
  func.func @transform_0(%arg0: i32) -> (i32, i32, i32) {
    %c0_i32 = arith.constant 0 : i32
    %c0_i32_0 = arith.constant 0 : i32
    %c0_i32_1 = arith.constant 0 : i32
    return %c0_i32, %c0_i32_0, %arg0 : i32, i32, i32
  }
  func.func @transform_1(%arg0: i32) -> (i32, i32, i32) {
    %c0_i32 = arith.constant 0 : i32
    %c0_i32_0 = arith.constant 0 : i32
    %c0_i32_1 = arith.constant 0 : i32
    return %c0_i32, %c0_i32_0, %arg0 : i32, i32, i32
  }
  func.func @transform_2(%arg0: i32) -> (i32, i32, i32) {
    %c0_i32 = arith.constant 0 : i32
    %c0_i32_0 = arith.constant 0 : i32
    %c0_i32_1 = arith.constant 0 : i32
    return %c0_i32, %c0_i32_0, %arg0 : i32, i32, i32
  }
  func.func @transform_3(%arg0: i32) -> (i32, i32, i32) {
    %c0_i32 = arith.constant 0 : i32
    %c0_i32_0 = arith.constant 0 : i32
    %c0_i32_1 = arith.constant 0 : i32
    return %c0_i32, %c0_i32_0, %arg0 : i32, i32, i32
  }
  func.func @transform_4(%arg0: i32) -> (i32, i32, i32) {
    %c0_i32 = arith.constant 0 : i32
    %c0_i32_0 = arith.constant 0 : i32
    %c0_i32_1 = arith.constant 0 : i32
    return %c0_i32, %c0_i32_0, %arg0 : i32, i32, i32
  }
  func.func @transform_5(%arg0: i32) -> (i32, i32, i32) {
    %c0_i32 = arith.constant 0 : i32
    %c0_i32_0 = arith.constant 0 : i32
    %c0_i32_1 = arith.constant 0 : i32
    return %c0_i32, %c0_i32_0, %arg0 : i32, i32, i32
  }
}

module attributes {stable_mosaic.version = 11 : i64} {
  func.func @kernel(%arg0: i32, %arg1: memref<3x512xf32, #tpu.memory_space<vmem>>, %arg2: memref<8x3xf32, #tpu.memory_space<vmem>>, %arg3: memref<8x1xf32, #tpu.memory_space<vmem>>, %arg4: memref<8x512xf32, #tpu.memory_space<vmem>>) attributes {dimension_semantics = [#tpu.dimension_semantics<parallel>], iteration_bounds = array<i64: 1>, scalar_prefetch = 0 : i64, scratch_operands = 0 : i64, tpu.core_type = #tpu.core_type<tc>, window_params = [{transform_indices = @transform_0, window_bounds = array<i64: 3, 512>}, {pipeline_mode = #tpu.pipeline_mode<synchronous>, transform_indices = @transform_1, window_bounds = array<i64: 8, 3>}, {pipeline_mode = #tpu.pipeline_mode<synchronous>, transform_indices = @transform_2, window_bounds = array<i64: 8, 1>}, {transform_indices = @transform_3, window_bounds = array<i64: 8, 512>}]} {
    %c0 = arith.constant 0 : index
    %c0_0 = arith.constant 0 : index
    %0 = vector.load %arg2[%c0, %c0_0] : memref<8x3xf32, #tpu.memory_space<vmem>>, vector<8x3xf32>
    %c0_1 = arith.constant 0 : index
    %c0_2 = arith.constant 0 : index
    %1 = vector.load %arg1[%c0_1, %c0_2] : memref<3x512xf32, #tpu.memory_space<vmem>>, vector<3x512xf32>
    %cst = arith.constant dense<0.000000e+00> : vector<8x512xf32>
    %2 = tpu.matmul %0, %1, %cst {dimension_numbers = #tpu.dot_dimension_numbers<[1], [0], [0], [1], [0, 0, 1, 1], [], []>} : vector<8x3xf32>, vector<3x512xf32>, vector<8x512xf32> -> vector<8x512xf32>
    %c0_3 = arith.constant 0 : index
    %c0_4 = arith.constant 0 : index
    %3 = vector.load %arg3[%c0_3, %c0_4] : memref<8x1xf32, #tpu.memory_space<vmem>>, vector<8x1xf32>
    %4 = vector.broadcast %3 : vector<8x1xf32> to vector<8x512xf32>
    %5 = arith.addf %2, %4 : vector<8x512xf32>
    %c0_5 = arith.constant 0 : index
    %c0_6 = arith.constant 0 : index
    %6 = vector.load %arg4[%c0_5, %c0_6] : memref<8x512xf32, #tpu.memory_space<vmem>>, vector<8x512xf32>
    tpu.vector_store %arg4[%c0_5, %c0_6], %5 {strides = array<i32>} : memref<8x512xf32, #tpu.memory_space<vmem>>, vector<8x512xf32>,
    return
  }
  func.func @transform_0(%arg0: i32) -> (i32, i32) {
    %c0_i32 = arith.constant 0 : i32
    %c0_i32_0 = arith.constant 0 : i32
    return %c0_i32, %arg0 : i32, i32
  }
  func.func @transform_1(%arg0: i32) -> (i32, i32) {
    %c0_i32 = arith.constant 0 : i32
    %c0_i32_0 = arith.constant 0 : i32
    %c0_i32_1 = arith.constant 0 : i32
    return %c0_i32, %c0_i32_0 : i32, i32
  }
  func.func @transform_2(%arg0: i32) -> (i32, i32) {
    %c0_i32 = arith.constant 0 : i32
    %c0_i32_0 = arith.constant 0 : i32
    %c0_i32_1 = arith.constant 0 : i32
    return %c0_i32, %c0_i32_0 : i32, i32
  }
  func.func @transform_3(%arg0: i32) -> (i32, i32) {
    %c0_i32 = arith.constant 0 : i32
    %c0_i32_0 = arith.constant 0 : i32
    return %c0_i32, %arg0 : i32, i32
  }
}

module attributes {stable_mosaic.version = 11 : i64} {
  func.func @kernel(%arg0: i32, %arg1: memref<8x1250xf32, #tpu.memory_space<vmem>>, %arg2: memref<8x8xf32, #tpu.memory_space<vmem>>, %arg3: memref<8x1xf32, #tpu.memory_space<vmem>>, %arg4: memref<8x1250xf32, #tpu.memory_space<vmem>>, %arg5: memref<8x1250xf32, #tpu.memory_space<vmem>>, %arg6: memref<8x1250xf32, #tpu.memory_space<vmem>>) attributes {dimension_semantics = [#tpu.dimension_semantics<parallel>], iteration_bounds = array<i64: 1>, scalar_prefetch = 0 : i64, scratch_operands = 0 : i64, tpu.core_type = #tpu.core_type<tc>, window_params = [{transform_indices = @transform_0, window_bounds = array<i64: 8, 1250>}, {pipeline_mode = #tpu.pipeline_mode<synchronous>, transform_indices = @transform_1, window_bounds = array<i64: 8, 8>}, {pipeline_mode = #tpu.pipeline_mode<synchronous>, transform_indices = @transform_2, window_bounds = array<i64: 8, 1>}, {transform_indices = @transform_3, window_bounds = array<i64: 8, 1250>}, {transform_indices = @transform_4, window_bounds = array<i64: 8, 1250>}, {transform_indices = @transform_5, window_bounds = array<i64: 8, 1250>}]} {
    %c0 = arith.constant 0 : index
    %c0_0 = arith.constant 0 : index
    %0 = vector.load %arg2[%c0, %c0_0] : memref<8x8xf32, #tpu.memory_space<vmem>>, vector<8x8xf32>
    %c0_1 = arith.constant 0 : index
    %c0_2 = arith.constant 0 : index
    %1 = vector.load %arg1[%c0_1, %c0_2] : memref<8x1250xf32, #tpu.memory_space<vmem>>, vector<8x1250xf32>
    %cst = arith.constant dense<0.000000e+00> : vector<8x1250xf32>
    %2 = tpu.matmul %0, %1, %cst {dimension_numbers = #tpu.dot_dimension_numbers<[1], [0], [0], [1], [0, 0, 1, 1], [], []>} : vector<8x8xf32>, vector<8x1250xf32>, vector<8x1250xf32> -> vector<8x1250xf32>
    %c0_3 = arith.constant 0 : index
    %c0_4 = arith.constant 0 : index
    %3 = vector.load %arg3[%c0_3, %c0_4] : memref<8x1xf32, #tpu.memory_space<vmem>>, vector<8x1xf32>
    %4 = vector.broadcast %3 : vector<8x1xf32> to vector<8x1250xf32>
    %5 = arith.addf %2, %4 : vector<8x1250xf32>
    %c0_5 = arith.constant 0 : index
    %c0_6 = arith.constant 0 : index
    %6 = vector.load %arg4[%c0_5, %c0_6] : memref<8x1250xf32, #tpu.memory_space<vmem>>, vector<8x1250xf32>
    %7 = arith.addf %5, %6 : vector<8x1250xf32>
    %c0_7 = arith.constant 0 : index
    %c0_8 = arith.constant 0 : index
    %8 = vector.load %arg5[%c0_7, %c0_8] : memref<8x1250xf32, #tpu.memory_space<vmem>>, vector<8x1250xf32>
    %9 = arith.addf %7, %8 : vector<8x1250xf32>
    %cst_9 = arith.constant 5.000000e-01 : f32
    %10 = vector.broadcast %cst_9 : f32 to vector<8x1250xf32>
    %11 = arith.mulf %10, %9 : vector<8x1250xf32>
    %cst_10 = arith.constant 4.471500e-02 : f32
    %12 = vector.broadcast %cst_10 : f32 to vector<8x1250xf32>
    %13 = arith.mulf %12, %9 : vector<8x1250xf32>
    %14 = arith.mulf %13, %9 : vector<8x1250xf32>
    %15 = arith.mulf %14, %9 : vector<8x1250xf32>
    %16 = arith.addf %9, %15 : vector<8x1250xf32>
    %cst_11 = arith.constant 0.797884583 : f32
    %17 = vector.broadcast %cst_11 : f32 to vector<8x1250xf32>
    %18 = arith.mulf %17, %16 : vector<8x1250xf32>
    %19 = math.tanh %18 : vector<8x1250xf32>
    %cst_12 = arith.constant 1.000000e+00 : f32
    %20 = vector.broadcast %cst_12 : f32 to vector<8x1250xf32>
    %21 = arith.addf %20, %19 : vector<8x1250xf32>
    %22 = arith.mulf %11, %21 : vector<8x1250xf32>
    %c0_13 = arith.constant 0 : index
    %c0_14 = arith.constant 0 : index
    %23 = vector.load %arg6[%c0_13, %c0_14] : memref<8x1250xf32, #tpu.memory_space<vmem>>, vector<8x1250xf32>
    tpu.vector_store %arg6[%c0_13, %c0_14], %22 {strides = array<i32>} : memref<8x1250xf32, #tpu.memory_space<vmem>>, vector<8x1250xf32>,
    return
  }
  func.func @transform_0(%arg0: i32) -> (i32, i32) {
    %c0_i32 = arith.constant 0 : i32
    %c0_i32_0 = arith.constant 0 : i32
    return %c0_i32, %arg0 : i32, i32
  }
  func.func @transform_1(%arg0: i32) -> (i32, i32) {
    %c0_i32 = arith.constant 0 : i32
    %c0_i32_0 = arith.constant 0 : i32
    %c0_i32_1 = arith.constant 0 : i32
    return %c0_i32, %c0_i32_0 : i32, i32
  }
  func.func @transform_2(%arg0: i32) -> (i32, i32) {
    %c0_i32 = arith.constant 0 : i32
    %c0_i32_0 = arith.constant 0 : i32
    %c0_i32_1 = arith.constant 0 : i32
    return %c0_i32, %c0_i32_0 : i32, i32
  }
  func.func @transform_3(%arg0: i32) -> (i32, i32) {
    %c0_i32 = arith.constant 0 : i32
    %c0_i32_0 = arith.constant 0 : i32
    return %c0_i32, %arg0 : i32, i32
  }
  func.func @transform_4(%arg0: i32) -> (i32, i32) {
    %c0_i32 = arith.constant 0 : i32
    %c0_i32_0 = arith.constant 0 : i32
    return %c0_i32, %arg0 : i32, i32
  }
  func.func @transform_5(%arg0: i32) -> (i32, i32) {
    %c0_i32 = arith.constant 0 : i32
    %c0_i32_0 = arith.constant 0 : i32
    return %c0_i32, %arg0 : i32, i32
  }
}

module attributes {stable_mosaic.version = 11 : i64} {
  func.func @_tail_kernel(%arg0: i32, %arg1: memref<8x1250xf32, #tpu.memory_space<vmem>>, %arg2: memref<8x1250xf32, #tpu.memory_space<vmem>>, %arg3: memref<8x8xf32, #tpu.memory_space<vmem>>, %arg4: memref<8x1xf32, #tpu.memory_space<vmem>>, %arg5: memref<32x8xf32, #tpu.memory_space<vmem>>, %arg6: memref<32x1xf32, #tpu.memory_space<vmem>>, %arg7: memref<1x32xf32, #tpu.memory_space<vmem>>, %arg8: memref<1x1xf32, #tpu.memory_space<vmem>>, %arg9: memref<1x1250xf32, #tpu.memory_space<vmem>>) attributes {dimension_semantics = [#tpu.dimension_semantics<parallel>], iteration_bounds = array<i64: 1>, scalar_prefetch = 0 : i64, scratch_operands = 0 : i64, tpu.core_type = #tpu.core_type<tc>, window_params = [{transform_indices = @transform_0, window_bounds = array<i64: 8, 1250>}, {transform_indices = @transform_1, window_bounds = array<i64: 8, 1250>}, {pipeline_mode = #tpu.pipeline_mode<synchronous>, transform_indices = @transform_2, window_bounds = array<i64: 8, 8>}, {pipeline_mode = #tpu.pipeline_mode<synchronous>, transform_indices = @transform_3, window_bounds = array<i64: 8, 1>}, {pipeline_mode = #tpu.pipeline_mode<synchronous>, transform_indices = @transform_4, window_bounds = array<i64: 32, 8>}, {pipeline_mode = #tpu.pipeline_mode<synchronous>, transform_indices = @transform_5, window_bounds = array<i64: 32, 1>}, {pipeline_mode = #tpu.pipeline_mode<synchronous>, transform_indices = @transform_6, window_bounds = array<i64: 1, 32>}, {pipeline_mode = #tpu.pipeline_mode<synchronous>, transform_indices = @transform_7, window_bounds = array<i64: 1, 1>}, {transform_indices = @transform_8, window_bounds = array<i64: 1, 1250>}]} {
    %c0 = arith.constant 0 : index
    %c0_0 = arith.constant 0 : index
    %0 = vector.load %arg3[%c0, %c0_0] : memref<8x8xf32, #tpu.memory_space<vmem>>, vector<8x8xf32>
    %c0_1 = arith.constant 0 : index
    %c0_2 = arith.constant 0 : index
    %1 = vector.load %arg1[%c0_1, %c0_2] : memref<8x1250xf32, #tpu.memory_space<vmem>>, vector<8x1250xf32>
    %cst = arith.constant dense<0.000000e+00> : vector<8x1250xf32>
    %2 = tpu.matmul %0, %1, %cst {dimension_numbers = #tpu.dot_dimension_numbers<[1], [0], [0], [1], [0, 0, 1, 1], [], []>} : vector<8x8xf32>, vector<8x1250xf32>, vector<8x1250xf32> -> vector<8x1250xf32>
    %c0_3 = arith.constant 0 : index
    %c0_4 = arith.constant 0 : index
    %3 = vector.load %arg4[%c0_3, %c0_4] : memref<8x1xf32, #tpu.memory_space<vmem>>, vector<8x1xf32>
    %4 = vector.broadcast %3 : vector<8x1xf32> to vector<8x1250xf32>
    %5 = arith.addf %2, %4 : vector<8x1250xf32>
    %c0_5 = arith.constant 0 : index
    %c0_6 = arith.constant 0 : index
    %6 = vector.load %arg2[%c0_5, %c0_6] : memref<8x1250xf32, #tpu.memory_space<vmem>>, vector<8x1250xf32>
    %7 = arith.addf %5, %6 : vector<8x1250xf32>
    %c0_7 = arith.constant 0 : index
    %c0_8 = arith.constant 0 : index
    %8 = vector.load %arg5[%c0_7, %c0_8] : memref<32x8xf32, #tpu.memory_space<vmem>>, vector<32x8xf32>
    %cst_9 = arith.constant dense<0.000000e+00> : vector<32x1250xf32>
    %9 = tpu.matmul %8, %7, %cst_9 {dimension_numbers = #tpu.dot_dimension_numbers<[1], [0], [0], [1], [0, 0, 1, 1], [], []>} : vector<32x8xf32>, vector<8x1250xf32>, vector<32x1250xf32> -> vector<32x1250xf32>
    %c0_10 = arith.constant 0 : index
    %c0_11 = arith.constant 0 : index
    %10 = vector.load %arg6[%c0_10, %c0_11] : memref<32x1xf32, #tpu.memory_space<vmem>>, vector<32x1xf32>
    %11 = vector.broadcast %10 : vector<32x1xf32> to vector<32x1250xf32>
    %12 = arith.addf %9, %11 : vector<32x1250xf32>
    %cst_12 = arith.constant 5.000000e-01 : f32
    %13 = vector.broadcast %cst_12 : f32 to vector<32x1250xf32>
    %14 = arith.mulf %13, %12 : vector<32x1250xf32>
    %cst_13 = arith.constant 4.471500e-02 : f32
    %15 = vector.broadcast %cst_13 : f32 to vector<32x1250xf32>
    %16 = arith.mulf %15, %12 : vector<32x1250xf32>
    %17 = arith.mulf %16, %12 : vector<32x1250xf32>
    %18 = arith.mulf %17, %12 : vector<32x1250xf32>
    %19 = arith.addf %12, %18 : vector<32x1250xf32>
    %cst_14 = arith.constant 0.797884583 : f32
    %20 = vector.broadcast %cst_14 : f32 to vector<32x1250xf32>
    %21 = arith.mulf %20, %19 : vector<32x1250xf32>
    %22 = math.tanh %21 : vector<32x1250xf32>
    %cst_15 = arith.constant 1.000000e+00 : f32
    %23 = vector.broadcast %cst_15 : f32 to vector<32x1250xf32>
    %24 = arith.addf %23, %22 : vector<32x1250xf32>
    %25 = arith.mulf %14, %24 : vector<32x1250xf32>
    %c0_16 = arith.constant 0 : index
    %c0_17 = arith.constant 0 : index
    %26 = vector.load %arg7[%c0_16, %c0_17] : memref<1x32xf32, #tpu.memory_space<vmem>>, vector<1x32xf32>
    %cst_18 = arith.constant dense<0.000000e+00> : vector<1x1250xf32>
    %27 = tpu.matmul %26, %25, %cst_18 {dimension_numbers = #tpu.dot_dimension_numbers<[1], [0], [0], [1], [0, 0, 1, 1], [], []>} : vector<1x32xf32>, vector<32x1250xf32>, vector<1x1250xf32> -> vector<1x1250xf32>
    %c0_19 = arith.constant 0 : index
    %c0_20 = arith.constant 0 : index
    %28 = vector.load %arg8[%c0_19, %c0_20] : memref<1x1xf32, #tpu.memory_space<vmem>>, vector<1x1xf32>
    %29 = vector.broadcast %28 : vector<1x1xf32> to vector<1x1250xf32>
    %30 = arith.addf %27, %29 : vector<1x1250xf32>
    %c0_21 = arith.constant 0 : index
    %c0_22 = arith.constant 0 : index
    %31 = vector.load %arg9[%c0_21, %c0_22] : memref<1x1250xf32, #tpu.memory_space<vmem>>, vector<1x1250xf32>
    tpu.vector_store %arg9[%c0_21, %c0_22], %30 {strides = array<i32>} : memref<1x1250xf32, #tpu.memory_space<vmem>>, vector<1x1250xf32>,
    return
  }
  func.func @transform_0(%arg0: i32) -> (i32, i32) {
    %c0_i32 = arith.constant 0 : i32
    %c0_i32_0 = arith.constant 0 : i32
    return %c0_i32, %arg0 : i32, i32
  }
  func.func @transform_1(%arg0: i32) -> (i32, i32) {
    %c0_i32 = arith.constant 0 : i32
    %c0_i32_0 = arith.constant 0 : i32
    return %c0_i32, %arg0 : i32, i32
  }
  func.func @transform_2(%arg0: i32) -> (i32, i32) {
    %c0_i32 = arith.constant 0 : i32
    %c0_i32_0 = arith.constant 0 : i32
    %c0_i32_1 = arith.constant 0 : i32
    return %c0_i32, %c0_i32_0 : i32, i32
  }
  func.func @transform_3(%arg0: i32) -> (i32, i32) {
    %c0_i32 = arith.constant 0 : i32
    %c0_i32_0 = arith.constant 0 : i32
    %c0_i32_1 = arith.constant 0 : i32
    return %c0_i32, %c0_i32_0 : i32, i32
  }
  func.func @transform_4(%arg0: i32) -> (i32, i32) {
    %c0_i32 = arith.constant 0 : i32
    %c0_i32_0 = arith.constant 0 : i32
    %c0_i32_1 = arith.constant 0 : i32
    return %c0_i32, %c0_i32_0 : i32, i32
  }
  func.func @transform_5(%arg0: i32) -> (i32, i32) {
    %c0_i32 = arith.constant 0 : i32
    %c0_i32_0 = arith.constant 0 : i32
    %c0_i32_1 = arith.constant 0 : i32
    return %c0_i32, %c0_i32_0 : i32, i32
  }
  func.func @transform_6(%arg0: i32) -> (i32, i32) {
    %c0_i32 = arith.constant 0 : i32
    %c0_i32_0 = arith.constant 0 : i32
    %c0_i32_1 = arith.constant 0 : i32
    return %c0_i32, %c0_i32_0 : i32, i32
  }
  func.func @transform_7(%arg0: i32) -> (i32, i32) {
    %c0_i32 = arith.constant 0 : i32
    %c0_i32_0 = arith.constant 0 : i32
    %c0_i32_1 = arith.constant 0 : i32
    return %c0_i32, %c0_i32_0 : i32, i32
  }
  func.func @transform_8(%arg0: i32) -> (i32, i32) {
    %c0_i32 = arith.constant 0 : i32
    %c0_i32_0 = arith.constant 0 : i32
    return %c0_i32, %arg0 : i32, i32
  }
}

</mosaic_0001>

<bundles_post_ra>
// kernel: reverse.7
= control target key start
LH: loop header
LB: loop body
LE: loop exit
PB: predicated region body
PF: predicated region fallthrough
CT: control target
= control target key end

     0   :  { %v169_v12 = vlaneseq  ;;  %v175_v37 = vld [vmem:[#allocation0 + $0x7] ss:$-1 sm:$0xff]  ;;  %v203_v45 = vld [vmem:[#allocation0 + $0x1f] ss:$-1 sm:$0xff]  ;;  %v231_v53 = vld [vmem:[#allocation0 + $0x37] ss:$-1 sm:$0xff]  ;;  %s1163_s0 = inlined_call_operand.vmem [shape: f32[8,2,25,12], index: 0, kind: input, shape index: {}]   ;;  %s1164_s1 = inlined_call_operand.vmem [shape: f32[8,2,25,12], index: 1, kind: output, shape index: {}]  }
   0x1   :  { %v93_v0 = vld [vmem:[%s1163_s0] sm:$0xff]  ;;  %v95_v1 = vld [vmem:[%s1163_s0 + $0x8] sm:$0xff]  ;;  %v97_v2 = vld [vmem:[%s1163_s0 + $0x10] sm:$0xff]  ;;  %v176_v39 = vrot.slane %v175_v37, 4  ;;  %v204_v47 = vrot.slane %v203_v45, 4  ;;  %v232_v55 = vrot.slane %v231_v53, 4 }
   0x2   :  { %94 = vst [vmem:[#allocation0 + $0x8] sm:$0xff] %v93_v0  ;;  %96 = vst [vmem:[#allocation0 + $0x10] sm:$0xff] %v95_v1  ;;  %v99_v3 = vld [vmem:[%s1163_s0 + $0x18] sm:$0xff]  ;;  %v101_v4 = vld [vmem:[%s1163_s0 + $0x20] sm:$0xff]  ;;  %v976_v25 = vshrl.u32 %v169_v12, 7 }
   0x3   :  { %98 = vst [vmem:[#allocation0 + $0x20] sm:$0xff] %v97_v2  ;;  %v103_v5 = vld [vmem:[%s1163_s0 + $0x28] sm:$0xff]  ;;  %100 = vst [vmem:[#allocation0 + $0x28] sm:$0xff] %v99_v3  ;;  %v105_v6 = vld [vmem:[%s1163_s0 + $0x30] sm:$0xff] }
   0x4   :  { %102 = vst [vmem:[#allocation0 + $0x38] sm:$0xff] %v101_v4  ;;  %104 = vst [vmem:[#allocation0 + $0x40] sm:$0xff] %v103_v5  ;;  %v107_v7 = vld [vmem:[%s1163_s0 + $0x38] sm:$0xff]  ;;  %v109_v8 = vld [vmem:[%s1163_s0 + $0x40] sm:$0xff]  ;;  %vm171_vm0 = vcmp.lt.s32.totalorder %v976_v25, 4 }
   0x5   :  { %106 = vst [vmem:[#allocation0 + $0x50] sm:$0xff] %v105_v6  ;;  %108 = vst [vmem:[#allocation0 + $0x58] sm:$0xff] %v107_v7  ;;  %v111_v9 = vld [vmem:[%s1163_s0 + $0x48] sm:$0xff]  ;;  %v113_v10 = vld [vmem:[%s1163_s0 + $0x50] sm:$0xff] }
   0x6   :  { %110 = vst [vmem:[#allocation0 + $0x68] sm:$0xff] %v109_v8  ;;  %v115_v11 = vld [vmem:[%s1163_s0 + $0x58] sm:$0xff]  ;;  %112 = vst [vmem:[#allocation0 + $0x70] sm:$0xff] %v111_v9  ;;  %v117_v13 = vld [vmem:[%s1163_s0 + $0x60] sm:$0xff] }
   0x7   :  { %114 = vst [vmem:[#allocation0 + $0x80] sm:$0xff] %v113_v10  ;;  %116 = vst [vmem:[#allocation0 + $0x88] sm:$0xff] %v115_v11  ;;  %v119_v14 = vld [vmem:[%s1163_s0 + $0x68] sm:$0xff]  ;;  %v121_v15 = vld [vmem:[%s1163_s0 + $0x70] sm:$0xff] }
   0x8   :  { %118 = vst [vmem:[#allocation0 + $0x98] sm:$0xff] %v117_v13  ;;  %120 = vst [vmem:[#allocation0 + $0xa0] sm:$0xff] %v119_v14  ;;  %v123_v16 = vld [vmem:[%s1163_s0 + $0x78] sm:$0xff]  ;;  %v125_v17 = vld [vmem:[%s1163_s0 + $0x80] sm:$0xff] }
   0x9   :  { %122 = vst [vmem:[#allocation0 + $0xb0] sm:$0xff] %v121_v15  ;;  %v127_v18 = vld [vmem:[%s1163_s0 + $0x88] sm:$0xff]  ;;  %124 = vst [vmem:[#allocation0 + $0xb8] sm:$0xff] %v123_v16  ;;  %v129_v19 = vld [vmem:[%s1163_s0 + $0x90] sm:$0xff] }
   0xa   :  { %126 = vst [vmem:[#allocation0 + $0xc8] sm:$0xff] %v125_v17  ;;  %128 = vst [vmem:[#allocation0 + $0xd0] sm:$0xff] %v127_v18  ;;  %v131_v20 = vld [vmem:[%s1163_s0 + $0x98] sm:$0xff]  ;;  %v133_v21 = vld [vmem:[%s1163_s0 + $0xa0] sm:$0xff] }
   0xb   :  { %130 = vst [vmem:[#allocation0 + $0xe0] sm:$0xff] %v129_v19  ;;  %132 = vst [vmem:[#allocation0 + $0xe8] sm:$0xff] %v131_v20  ;;  %v135_v22 = vld [vmem:[%s1163_s0 + $0xa8] sm:$0xff]  ;;  %v137_v23 = vld [vmem:[%s1163_s0 + $0xb0] sm:$0xff] }
   0xc   :  { %134 = vst [vmem:[#allocation0 + $0xf8] sm:$0xff] %v133_v21  ;;  %v139_v24 = vld [vmem:[%s1163_s0 + $0xb8] sm:$0xff]  ;;  %136 = vst [vmem:[#allocation0 + $0x100] sm:$0xff] %v135_v22  ;;  %v141_v26 = vld [vmem:[%s1163_s0 + $0xc0] sm:$0xff] }
   0xd   :  { %138 = vst [vmem:[#allocation0 + $0x110] sm:$0xff] %v137_v23  ;;  %140 = vst [vmem:[#allocation0 + $0x118] sm:$0xff] %v139_v24  ;;  %v143_v27 = vld [vmem:[%s1163_s0 + $0xc8] sm:$0xff]  ;;  %v145_v28 = vld [vmem:[%s1163_s0 + $0xd0] sm:$0xff] }
   0xe   :  { %142 = vst [vmem:[#allocation0 + $0x128] sm:$0xff] %v141_v26  ;;  %144 = vst [vmem:[#allocation0 + $0x130] sm:$0xff] %v143_v27  ;;  %v147_v29 = vld [vmem:[%s1163_s0 + $0xd8] sm:$0xff]  ;;  %v149_v30 = vld [vmem:[%s1163_s0 + $0xe0] sm:$0xff] }
   0xf   :  { %146 = vst [vmem:[#allocation0 + $0x140] sm:$0xff] %v145_v28  ;;  %v151_v31 = vld [vmem:[%s1163_s0 + $0xe8] sm:$0xff]  ;;  %148 = vst [vmem:[#allocation0 + $0x148] sm:$0xff] %v147_v29  ;;  %v153_v32 = vld [vmem:[%s1163_s0 + $0xf0] sm:$0xff] }
  0x10   :  { %150 = vst [vmem:[#allocation0 + $0x158] sm:$0xff] %v149_v30  ;;  %152 = vst [vmem:[#allocation0 + $0x160] sm:$0xff] %v151_v31  ;;  %v155_v33 = vld [vmem:[%s1163_s0 + $0xf8] sm:$0xff]  ;;  %v162_v34 = vld [vmem:[#allocation0 + $0xf] ss:$-1 sm:$0xff] }
  0x11   :  { %154 = vst [vmem:[#allocation0 + $0x170] sm:$0xff] %v153_v32  ;;  %156 = vst [vmem:[#allocation0 + $0x178] sm:$0xff] %v155_v33  ;;  %v163_v35 = vrot.slane %v162_v34, 4  ;;  %v167_v36 = vld [vmem:[#allocation0 + $0x17] ss:$-1 sm:$0xff] }
  0x12   :  { %v168_v38 = vrot.slane %v167_v36, 4  ;;  %v180_v40 = vld [vmem:[#allocation0 + $0xf] ss:$-1 sm:$0xff]  ;;  %v190_v41 = vld [vmem:[#allocation0 + $0x27] ss:$-1 sm:$0xff]  ;;  %177 = vst [vmem:[#allocation1 + $0x8] sm:$0xff] %v176_v39 }
  0x13   :  { %164 = vst [vmem:[#allocation1] sm:$0xff] %v163_v35  ;;  %v181_v42 = vrot.slane %v180_v40, 4  ;;  %v191_v43 = vrot.slane %v190_v41, 4  ;;  %v195_v44 = vld [vmem:[#allocation0 + $0x2f] ss:$-1 sm:$0xff]  ;;  %205 = vst [vmem:[#allocation1 + $0x18] sm:$0xff] %v204_v47 }
  0x14   :  { %172 = vst.msk [vmem:[#allocation1] sm:$0xff] %vm171_vm0, %v168_v38  ;;  %v196_v46 = vrot.slane %v195_v44, 4  ;;  %v208_v48 = vld [vmem:[#allocation0 + $0x27] ss:$-1 sm:$0xff]  ;;  %v218_v49 = vld [vmem:[#allocation0 + $0x3f] ss:$-1 sm:$0xff] }
  0x15   :  { %185 = vst.msk [vmem:[#allocation1 + $0x8] sm:$0xff] %vm171_vm0, %v181_v42  ;;  %192 = vst [vmem:[#allocation1 + $0x10] sm:$0xff] %v191_v43  ;;  %v209_v50 = vrot.slane %v208_v48, 4  ;;  %v219_v51 = vrot.slane %v218_v49, 4  ;;  %v223_v52 = vld [vmem:[#allocation0 + $0x47] ss:$-1 sm:$0xff] }
  0x16   :  { %200 = vst.msk [vmem:[#allocation1 + $0x10] sm:$0xff] %vm171_vm0, %v196_v46  ;;  %v224_v54 = vrot.slane %v223_v52, 4  ;;  %v236_v56 = vld [vmem:[#allocation0 + $0x3f] ss:$-1 sm:$0xff]  ;;  %v246_v57 = vld [vmem:[#allocation0 + $0x57] ss:$-1 sm:$0xff] }
  0x17   :  { %213 = vst.msk [vmem:[#allocation1 + $0x18] sm:$0xff] %vm171_vm0, %v209_v50  ;;  %220 = vst [vmem:[#allocation1 + $0x20] sm:$0xff] %v219_v51  ;;  %v237_v58 = vrot.slane %v236_v56, 4  ;;  %v247_v59 = vrot.slane %v246_v57, 4  ;;  %v251_v60 = vld [vmem:[#allocation0 + $0x5f] ss:$-1 sm:$0xff] }
  0x18   :  { %v259_v61 = vld [vmem:[#allocation0 + $0x4f] ss:$-1 sm:$0xff]  ;;  %228 = vst.msk [vmem:[#allocation1 + $0x20] sm:$0xff] %vm171_vm0, %v224_v54  ;;  %233 = vst [vmem:[#allocation1 + $0x28] sm:$0xff] %v232_v55  ;;  %v252_v62 = vrot.slane %v251_v60, 4 }
  0x19   :  { %v260_v63 = vrot.slane %v259_v61, 4  ;;  %v264_v0 = vld [vmem:[#allocation0 + $0x57] ss:$-1 sm:$0xff]  ;;  %v274_v1 = vld [vmem:[#allocation0 + $0x6f] ss:$-1 sm:$0xff]  ;;  %241 = vst.msk [vmem:[#allocation1 + $0x28] sm:$0xff] %vm171_vm0, %v237_v58 }
  0x1a   :  { %248 = vst [vmem:[#allocation1 + $0x30] sm:$0xff] %v247_v59  ;;  %v265_v2 = vrot.slane %v264_v0, 4  ;;  %v275_v3 = vrot.slane %v274_v1, 4  ;;  %v279_v4 = vld [vmem:[#allocation0 + $0x77] ss:$-1 sm:$0xff] }
  0x1b   :  { %v287_v5 = vld [vmem:[#allocation0 + $0x67] ss:$-1 sm:$0xff]  ;;  %256 = vst.msk [vmem:[#allocation1 + $0x30] sm:$0xff] %vm171_vm0, %v252_v62  ;;  %261 = vst [vmem:[#allocation1 + $0x38] sm:$0xff] %v260_v63  ;;  %v280_v6 = vrot.slane %v279_v4, 4 }
  0x1c   :  { %v288_v7 = vrot.slane %v287_v5, 4  ;;  %v292_v8 = vld [vmem:[#allocation0 + $0x6f] ss:$-1 sm:$0xff]  ;;  %v302_v9 = vld [vmem:[#allocation0 + $0x87] ss:$-1 sm:$0xff]  ;;  %269 = vst.msk [vmem:[#allocation1 + $0x38] sm:$0xff] %vm171_vm0, %v265_v2 }
  0x1d   :  { %276 = vst [vmem:[#allocation1 + $0x40] sm:$0xff] %v275_v3  ;;  %v293_v10 = vrot.slane %v292_v8, 4  ;;  %v303_v11 = vrot.slane %v302_v9, 4  ;;  %v307_v12 = vld [vmem:[#allocation0 + $0x8f] ss:$-1 sm:$0xff] }
  0x1e   :  { %v315_v13 = vld [vmem:[#allocation0 + $0x7f] ss:$-1 sm:$0xff]  ;;  %284 = vst.msk [vmem:[#allocation1 + $0x40] sm:$0xff] %vm171_vm0, %v280_v6  ;;  %289 = vst [vmem:[#allocation1 + $0x48] sm:$0xff] %v288_v7  ;;  %v308_v14 = vrot.slane %v307_v12, 4 }
  0x1f   :  { %v316_v15 = vrot.slane %v315_v13, 4  ;;  %v320_v16 = vld [vmem:[#allocation0 + $0x87] ss:$-1 sm:$0xff]  ;;  %v330_v17 = vld [vmem:[#allocation0 + $0x9f] ss:$-1 sm:$0xff]  ;;  %297 = vst.msk [vmem:[#allocation1 + $0x48] sm:$0xff] %vm171_vm0, %v293_v10 }
  0x20   :  { %304 = vst [vmem:[#allocation1 + $0x50] sm:$0xff] %v303_v11  ;;  %v321_v18 = vrot.slane %v320_v16, 4  ;;  %v331_v19 = vrot.slane %v330_v17, 4  ;;  %v335_v20 = vld [vmem:[#allocation0 + $0xa7] ss:$-1 sm:$0xff] }
  0x21   :  { %v343_v21 = vld [vmem:[#allocation0 + $0x97] ss:$-1 sm:$0xff]  ;;  %312 = vst.msk [vmem:[#allocation1 + $0x50] sm:$0xff] %vm171_vm0, %v308_v14  ;;  %317 = vst [vmem:[#allocation1 + $0x58] sm:$0xff] %v316_v15  ;;  %v336_v22 = vrot.slane %v335_v20, 4 }
  0x22   :  { %v344_v23 = vrot.slane %v343_v21, 4  ;;  %v348_v24 = vld [vmem:[#allocation0 + $0x9f] ss:$-1 sm:$0xff]  ;;  %v358_v26 = vld [vmem:[#allocation0 + $0xb7] ss:$-1 sm:$0xff]  ;;  %325 = vst.msk [vmem:[#allocation1 + $0x58] sm:$0xff] %vm171_vm0, %v321_v18 }
  0x23   :  { %332 = vst [vmem:[#allocation1 + $0x60] sm:$0xff] %v331_v19  ;;  %v349_v27 = vrot.slane %v348_v24, 4  ;;  %v359_v28 = vrot.slane %v358_v26, 4  ;;  %v363_v29 = vld [vmem:[#allocation0 + $0xbf] ss:$-1 sm:$0xff] }
  0x24   :  { %v371_v30 = vld [vmem:[#allocation0 + $0xaf] ss:$-1 sm:$0xff]  ;;  %340 = vst.msk [vmem:[#allocation1 + $0x60] sm:$0xff] %vm171_vm0, %v336_v22  ;;  %345 = vst [vmem:[#allocation1 + $0x68] sm:$0xff] %v344_v23  ;;  %v364_v31 = vrot.slane %v363_v29, 4 }
  0x25   :  { %v372_v32 = vrot.slane %v371_v30, 4  ;;  %v376_v33 = vld [vmem:[#allocation0 + $0xb7] ss:$-1 sm:$0xff]  ;;  %v386_v34 = vld [vmem:[#allocation0 + $0xcf] ss:$-1 sm:$0xff]  ;;  %353 = vst.msk [vmem:[#allocation1 + $0x68] sm:$0xff] %vm171_vm0, %v349_v27 }
  0x26   :  { %360 = vst [vmem:[#allocation1 + $0x70] sm:$0xff] %v359_v28  ;;  %v377_v35 = vrot.slane %v376_v33, 4  ;;  %v387_v36 = vrot.slane %v386_v34, 4  ;;  %v391_v37 = vld [vmem:[#allocation0 + $0xd7] ss:$-1 sm:$0xff]  ;;  %v712_v25 = vld [vmem:[#allocation1 + $0x40] sm:$0xff] }
  0x27   :  { %v399_v38 = vld [vmem:[#allocation0 + $0xc7] ss:$-1 sm:$0xff]  ;;  %368 = vst.msk [vmem:[#allocation1 + $0x70] sm:$0xff] %vm171_vm0, %v364_v31  ;;  %373 = vst [vmem:[#allocation1 + $0x78] sm:$0xff] %v372_v32  ;;  %v392_v39 = vrot.slane %v391_v37, 4 }
  0x28   :  { %v400_v40 = vrot.slane %v399_v38, 4  ;;  %v404_v41 = vld [vmem:[#allocation0 + $0xcf] ss:$-1 sm:$0xff]  ;;  %v414_v42 = vld [vmem:[#allocation0 + $0xe7] ss:$-1 sm:$0xff]  ;;  %381 = vst.msk [vmem:[#allocation1 + $0x78] sm:$0xff] %vm171_vm0, %v377_v35 }
  0x29   :  { %388 = vst [vmem:[#allocation1 + $0x80] sm:$0xff] %v387_v36  ;;  %v405_v43 = vrot.slane %v404_v41, 4  ;;  %v415_v44 = vrot.slane %v414_v42, 4  ;;  %v419_v45 = vld [vmem:[#allocation0 + $0xef] ss:$-1 sm:$0xff]  ;;  %v696_v35 = vld [vmem:[#allocation1] sm:$0xff] }
  0x2a   :  { %v427_v46 = vld [vmem:[#allocation0 + $0xdf] ss:$-1 sm:$0xff]  ;;  %396 = vst.msk [vmem:[#allocation1 + $0x80] sm:$0xff] %vm171_vm0, %v392_v39  ;;  %401 = vst [vmem:[#allocation1 + $0x88] sm:$0xff] %v400_v40  ;;  %v420_v47 = vrot.slane %v419_v45, 4  ;;  %v698_v36 = vld [vmem:[#allocation1 + $0x8] sm:$0xff] }
  0x2b   :  { %v428_v48 = vrot.slane %v427_v46, 4  ;;  %v432_v49 = vld [vmem:[#allocation0 + $0xe7] ss:$-1 sm:$0xff]  ;;  %v442_v50 = vld [vmem:[#allocation0 + $0xff] ss:$-1 sm:$0xff]  ;;  %409 = vst.msk [vmem:[#allocation1 + $0x88] sm:$0xff] %vm171_vm0, %v405_v43  ;;  %697 = vst [vmem:[%s1164_s1] sm:$0xff] %v696_v35 }
  0x2c   :  { %416 = vst [vmem:[#allocation1 + $0x90] sm:$0xff] %v415_v44  ;;  %v433_v51 = vrot.slane %v432_v49, 4  ;;  %v443_v52 = vrot.slane %v442_v50, 4  ;;  %v447_v53 = vld [vmem:[#allocation0 + $0x107] ss:$-1 sm:$0xff]  ;;  %699 = vst [vmem:[%s1164_s1 + $0x8] sm:$0xff] %v698_v36 }
  0x2d   :  { %v455_v54 = vld [vmem:[#allocation0 + $0xf7] ss:$-1 sm:$0xff]  ;;  %424 = vst.msk [vmem:[#allocation1 + $0x90] sm:$0xff] %vm171_vm0, %v420_v47  ;;  %429 = vst [vmem:[#allocation1 + $0x98] sm:$0xff] %v428_v48  ;;  %v448_v55 = vrot.slane %v447_v53, 4  ;;  %v702_v39 = vld [vmem:[#allocation1 + $0x18] sm:$0xff] }
  0x2e   :  { %v456_v56 = vrot.slane %v455_v54, 4  ;;  %v460_v57 = vld [vmem:[#allocation0 + $0xff] ss:$-1 sm:$0xff]  ;;  %v470_v58 = vld [vmem:[#allocation0 + $0x117] ss:$-1 sm:$0xff]  ;;  %437 = vst.msk [vmem:[#allocation1 + $0x98] sm:$0xff] %vm171_vm0, %v433_v51 }
  0x2f   :  { %444 = vst [vmem:[#allocation1 + $0xa0] sm:$0xff] %v443_v52  ;;  %v461_v59 = vrot.slane %v460_v57, 4  ;;  %v471_v60 = vrot.slane %v470_v58, 4  ;;  %v475_v61 = vld [vmem:[#allocation0 + $0x11f] ss:$-1 sm:$0xff]  ;;  %v700_v38 = vld [vmem:[#allocation1 + $0x10] sm:$0xff] }
  0x30   :  { %v483_v62 = vld [vmem:[#allocation0 + $0x10f] ss:$-1 sm:$0xff]  ;;  %452 = vst.msk [vmem:[#allocation1 + $0xa0] sm:$0xff] %vm171_vm0, %v448_v55  ;;  %457 = vst [vmem:[#allocation1 + $0xa8] sm:$0xff] %v456_v56  ;;  %v476_v63 = vrot.slane %v475_v61, 4  ;;  %v704_v40 = vld [vmem:[#allocation1 + $0x20] sm:$0xff] }
  0x31   :  { %v484_v0 = vrot.slane %v483_v62, 4  ;;  %v488_v1 = vld [vmem:[#allocation0 + $0x117] ss:$-1 sm:$0xff]  ;;  %v498_v2 = vld [vmem:[#allocation0 + $0x12f] ss:$-1 sm:$0xff]  ;;  %465 = vst.msk [vmem:[#allocation1 + $0xa8] sm:$0xff] %vm171_vm0, %v461_v59 }
  0x32   :  { %472 = vst [vmem:[#allocation1 + $0xb0] sm:$0xff] %v471_v60  ;;  %v489_v3 = vrot.slane %v488_v1, 4  ;;  %v499_v4 = vrot.slane %v498_v2, 4  ;;  %v503_v5 = vld [vmem:[#allocation0 + $0x137] ss:$-1 sm:$0xff]  ;;  %701 = vst [vmem:[%s1164_s1 + $0x10] sm:$0xff] %v700_v38 }
  0x33   :  { %v511_v6 = vld [vmem:[#allocation0 + $0x127] ss:$-1 sm:$0xff]  ;;  %480 = vst.msk [vmem:[#allocation1 + $0xb0] sm:$0xff] %vm171_vm0, %v476_v63  ;;  %485 = vst [vmem:[#allocation1 + $0xb8] sm:$0xff] %v484_v0  ;;  %v504_v7 = vrot.slane %v503_v5, 4  ;;  %v706_v41 = vld [vmem:[#allocation1 + $0x28] sm:$0xff] }
  0x34   :  { %v512_v8 = vrot.slane %v511_v6, 4  ;;  %v516_v9 = vld [vmem:[#allocation0 + $0x12f] ss:$-1 sm:$0xff]  ;;  %v526_v10 = vld [vmem:[#allocation0 + $0x147] ss:$-1 sm:$0xff]  ;;  %493 = vst.msk [vmem:[#allocation1 + $0xb8] sm:$0xff] %vm171_vm0, %v489_v3 }
  0x35   :  { %500 = vst [vmem:[#allocation1 + $0xc0] sm:$0xff] %v499_v4  ;;  %v517_v11 = vrot.slane %v516_v9, 4  ;;  %v527_v12 = vrot.slane %v526_v10, 4  ;;  %v531_v13 = vld [vmem:[#allocation0 + $0x14f] ss:$-1 sm:$0xff]  ;;  %703 = vst [vmem:[%s1164_s1 + $0x18] sm:$0xff] %v702_v39 }
  0x36   :  { %v539_v14 = vld [vmem:[#allocation0 + $0x13f] ss:$-1 sm:$0xff]  ;;  %508 = vst.msk [vmem:[#allocation1 + $0xc0] sm:$0xff] %vm171_vm0, %v504_v7  ;;  %513 = vst [vmem:[#allocation1 + $0xc8] sm:$0xff] %v512_v8  ;;  %v532_v15 = vrot.slane %v531_v13, 4  ;;  %v708_v42 = vld [vmem:[#allocation1 + $0x30] sm:$0xff] }
  0x37   :  { %v540_v16 = vrot.slane %v539_v14, 4  ;;  %v544_v17 = vld [vmem:[#allocation0 + $0x147] ss:$-1 sm:$0xff]  ;;  %v554_v18 = vld [vmem:[#allocation0 + $0x15f] ss:$-1 sm:$0xff]  ;;  %521 = vst.msk [vmem:[#allocation1 + $0xc8] sm:$0xff] %vm171_vm0, %v517_v11 }
  0x38   :  { %528 = vst [vmem:[#allocation1 + $0xd0] sm:$0xff] %v527_v12  ;;  %v545_v19 = vrot.slane %v544_v17, 4  ;;  %v555_v20 = vrot.slane %v554_v18, 4  ;;  %v559_v21 = vld [vmem:[#allocation0 + $0x167] ss:$-1 sm:$0xff]  ;;  %705 = vst [vmem:[%s1164_s1 + $0x20] sm:$0xff] %v704_v40 }
  0x39   :  { %v567_v22 = vld [vmem:[#allocation0 + $0x157] ss:$-1 sm:$0xff]  ;;  %536 = vst.msk [vmem:[#allocation1 + $0xd0] sm:$0xff] %vm171_vm0, %v532_v15  ;;  %541 = vst [vmem:[#allocation1 + $0xd8] sm:$0xff] %v540_v16  ;;  %v560_v23 = vrot.slane %v559_v21, 4  ;;  %v710_v43 = vld [vmem:[#allocation1 + $0x38] sm:$0xff] }
  0x3a   :  { %v568_v24 = vrot.slane %v567_v22, 4  ;;  %v572_v26 = vld [vmem:[#allocation0 + $0x15f] ss:$-1 sm:$0xff]  ;;  %v582_v27 = vld [vmem:[#allocation0 + $0x177] ss:$-1 sm:$0xff]  ;;  %549 = vst.msk [vmem:[#allocation1 + $0xd8] sm:$0xff] %vm171_vm0, %v545_v19 }
  0x3b   :  { %556 = vst [vmem:[#allocation1 + $0xe0] sm:$0xff] %v555_v20  ;;  %v573_v28 = vrot.slane %v572_v26, 4  ;;  %v583_v29 = vrot.slane %v582_v27, 4  ;;  %v587_v30 = vld [vmem:[#allocation0 + $0x17f] ss:$-1 sm:$0xff]  ;;  %707 = vst [vmem:[%s1164_s1 + $0x28] sm:$0xff] %v706_v41 }
  0x3c   :  { %v595_v31 = vld [vmem:[#allocation0 + $0x16f] ss:$-1 sm:$0xff]  ;;  %564 = vst.msk [vmem:[#allocation1 + $0xe0] sm:$0xff] %vm171_vm0, %v560_v23  ;;  %569 = vst [vmem:[#allocation1 + $0xe8] sm:$0xff] %v568_v24  ;;  %v588_v32 = vrot.slane %v587_v30, 4  ;;  %v716_v45 = vld [vmem:[#allocation1 + $0x50] sm:$0xff] }
  0x3d   :  { %v596_v33 = vrot.slane %v595_v31, 4  ;;  %v600_v34 = vld [vmem:[#allocation0 + $0x177] ss:$-1 sm:$0xff]  ;;  %577 = vst.msk [vmem:[#allocation1 + $0xe8] sm:$0xff] %vm171_vm0, %v573_v28  ;;  %584 = vst [vmem:[#allocation1 + $0xf0] sm:$0xff] %v583_v29  ;;  %v714_v44 = vld [vmem:[#allocation1 + $0x48] sm:$0xff] }
  0x3e   :  { %v601_v37 = vrot.slane %v600_v34, 4  ;;  %592 = vst.msk [vmem:[#allocation1 + $0xf0] sm:$0xff] %vm171_vm0, %v588_v32  ;;  %709 = vst [vmem:[%s1164_s1 + $0x30] sm:$0xff] %v708_v42  ;;  %v718_v46 = vld [vmem:[#allocation1 + $0x58] sm:$0xff]  ;;  %v720_v47 = vld [vmem:[#allocation1 + $0x60] sm:$0xff] }
  0x3f   :  { %597 = vst [vmem:[#allocation1 + $0xf8] sm:$0xff] %v596_v33  ;;  %711 = vst [vmem:[%s1164_s1 + $0x38] sm:$0xff] %v710_v43  ;;  %v722_v48 = vld [vmem:[#allocation1 + $0x68] sm:$0xff]  ;;  %v724_v49 = vld [vmem:[#allocation1 + $0x70] sm:$0xff] }
  0x40   :  { %605 = vst.msk [vmem:[#allocation1 + $0xf8] sm:$0xff] %vm171_vm0, %v601_v37  ;;  %713 = vst [vmem:[%s1164_s1 + $0x40] sm:$0xff] %v712_v25  ;;  %v726_v50 = vld [vmem:[#allocation1 + $0x78] sm:$0xff]  ;;  %v728_v51 = vld [vmem:[#allocation1 + $0x80] sm:$0xff] }
  0x41   :  { %715 = vst [vmem:[%s1164_s1 + $0x48] sm:$0xff] %v714_v44  ;;  %717 = vst [vmem:[%s1164_s1 + $0x50] sm:$0xff] %v716_v45  ;;  %v730_v52 = vld [vmem:[#allocation1 + $0x88] sm:$0xff]  ;;  %v732_v53 = vld [vmem:[#allocation1 + $0x90] sm:$0xff] }
  0x42   :  { %719 = vst [vmem:[%s1164_s1 + $0x58] sm:$0xff] %v718_v46  ;;  %721 = vst [vmem:[%s1164_s1 + $0x60] sm:$0xff] %v720_v47  ;;  %v734_v54 = vld [vmem:[#allocation1 + $0x98] sm:$0xff]  ;;  %v736_v55 = vld [vmem:[#allocation1 + $0xa0] sm:$0xff] }
  0x43   :  { %723 = vst [vmem:[%s1164_s1 + $0x68] sm:$0xff] %v722_v48  ;;  %725 = vst [vmem:[%s1164_s1 + $0x70] sm:$0xff] %v724_v49  ;;  %v738_v56 = vld [vmem:[#allocation1 + $0xa8] sm:$0xff]  ;;  %v740_v57 = vld [vmem:[#allocation1 + $0xb0] sm:$0xff] }
  0x44   :  { %727 = vst [vmem:[%s1164_s1 + $0x78] sm:$0xff] %v726_v50  ;;  %729 = vst [vmem:[%s1164_s1 + $0x80] sm:$0xff] %v728_v51  ;;  %v742_v58 = vld [vmem:[#allocation1 + $0xb8] sm:$0xff]  ;;  %v744_v59 = vld [vmem:[#allocation1 + $0xc0] sm:$0xff] }
  0x45   :  { %731 = vst [vmem:[%s1164_s1 + $0x88] sm:$0xff] %v730_v52  ;;  %733 = vst [vmem:[%s1164_s1 + $0x90] sm:$0xff] %v732_v53  ;;  %v746_v60 = vld [vmem:[#allocation1 + $0xc8] sm:$0xff]  ;;  %v748_v61 = vld [vmem:[#allocation1 + $0xd0] sm:$0xff] }
  0x46   :  { %735 = vst [vmem:[%s1164_s1 + $0x98] sm:$0xff] %v734_v54  ;;  %737 = vst [vmem:[%s1164_s1 + $0xa0] sm:$0xff] %v736_v55  ;;  %v750_v62 = vld [vmem:[#allocation1 + $0xd8] sm:$0xff]  ;;  %v752_v63 = vld [vmem:[#allocation1 + $0xe0] sm:$0xff] }
  0x47   :  { %739 = vst [vmem:[%s1164_s1 + $0xa8] sm:$0xff] %v738_v56  ;;  %741 = vst [vmem:[%s1164_s1 + $0xb0] sm:$0xff] %v740_v57  ;;  %v754_v0 = vld [vmem:[#allocation1 + $0xe8] sm:$0xff]  ;;  %v756_v1 = vld [vmem:[#allocation1 + $0xf0] sm:$0xff] }
  0x48   :  { %743 = vst [vmem:[%s1164_s1 + $0xb8] sm:$0xff] %v742_v58  ;;  %745 = vst [vmem:[%s1164_s1 + $0xc0] sm:$0xff] %v744_v59  ;;  %v758_v2 = vld [vmem:[#allocation1 + $0xf8] sm:$0xff] }
  0x49   :  { %747 = vst [vmem:[%s1164_s1 + $0xc8] sm:$0xff] %v746_v60  ;;  %749 = vst [vmem:[%s1164_s1 + $0xd0] sm:$0xff] %v748_v61 }
  0x4a   :  { %751 = vst [vmem:[%s1164_s1 + $0xd8] sm:$0xff] %v750_v62  ;;  %753 = vst [vmem:[%s1164_s1 + $0xe0] sm:$0xff] %v752_v63 }
  0x4b   :  { %755 = vst [vmem:[%s1164_s1 + $0xe8] sm:$0xff] %v754_v0  ;;  %757 = vst [vmem:[%s1164_s1 + $0xf0] sm:$0xff] %v756_v1 }
  0x4c   :  { %759 = vst [vmem:[%s1164_s1 + $0xf8] sm:$0xff] %v758_v2 }

// kernel: fno2d_deep_small_forward.7
= control target key start
LH: loop header
LB: loop body
LE: loop exit
PB: predicated region body
PF: predicated region fallthrough
CT: control target
= control target key end

     0   :  { %v2045_v0 = vmov 1966171168   ;;  %v56_v2 = vlaneseq  ;;  %vm2003_vm0 = vcmask 254976   ;;  %s3934_s2 = inlined_call_operand.vmem [shape: f32[8,8,32], index: 2, kind: input, shape index: {}]   ;;  %s3935_s3 = inlined_call_operand.vmem [shape: f32[8,8,32], index: 3, kind: input, shape index: {}]   ;;  %s3936_s0 = inlined_call_operand.vmem [shape: f32[8,2,32], index: 0, kind: input, shape index: {}]   ;;  %s3937_s1 = inlined_call_operand.vmem [shape: f32[8,2,32], index: 1, kind: input, shape index: {}]   ;;  %s3938_s4 = inlined_call_operand.vmem [shape: f32[8,2,32], index: 4, kind: output, shape index: {0}]   ;;  %s3939_s5 = inlined_call_operand.vmem [shape: f32[8,2,32], index: 5, kind: output, shape index: {1}]  }
   0x1   :  { %v54_v1 = vunpack.c.l.s4 %v2045_v0  ;;  %v2079_v4 = vld [vmem:[%s3934_s2] sm:$0xff]  ;;  %v2084_v5 = vld [vmem:[%s3934_s2 + $0x8] sm:$0xff]  ;;  %v2089_v7 = vld [vmem:[%s3934_s2 + $0x10] sm:$0xff] }
   0x2   :  { %4090 = vst [vmem:[#allocation2_spill] sm:$0xff] %v2079_v4  ;;  %4091 = vst [vmem:[#allocation3_spill] sm:$0xff] %v2084_v5  ;;  %v57_v6 = vshrl.u32 %v56_v2, 7  ;;  %v2094_v8 = vld [vmem:[%s3934_s2 + $0x18] sm:$0xff]  ;;  %v2099_v9 = vld [vmem:[%s3934_s2 + $0x20] sm:$0xff] }
   0x3   :  { %v55_v3 = vunpack.c.0.s8 %v54_v1  ;;  %4092 = vst [vmem:[#allocation4_spill] sm:$0xff] %v2089_v7  ;;  %4093 = vst [vmem:[#allocation5_spill] sm:$0xff] %v2094_v8  ;;  %v2104_v10 = vld [vmem:[%s3934_s2 + $0x28] sm:$0xff]  ;;  %v2109_v11 = vld [vmem:[%s3934_s2 + $0x30] sm:$0xff] }
   0x4   :  { %4094 = vst [vmem:[#allocation6_spill] sm:$0xff] %v2099_v9  ;;  %4095 = vst [vmem:[#allocation7_spill] sm:$0xff] %v2104_v10  ;;  %v2113_v13 = vsub.s32 0, %v57_v6  ;;  %v2122_v16 = vld [vmem:[%s3935_s3] sm:$0xff]  ;;  %v2135_v21 = vld [vmem:[%s3935_s3 + $0x8] sm:$0xff] }
   0x5   :  { %4096 = vst [vmem:[#allocation8_spill] sm:$0xff] %v2109_v11  ;;  %v2111_v12 = vsub.s32 %v55_v3, %v57_v6  ;;  %4097 = vst [vmem:[#allocation9_spill] sm:$0xff] %v2122_v16  ;;  %v2140_v22 = vld [vmem:[%s3935_s3 + $0x10] sm:$0xff]  ;;  %v2159_v27 = vld [vmem:[%s3935_s3 + $0x18] sm:$0xff] }
   0x6   :  { %4098 = vst [vmem:[#allocation10_spill] sm:$0xff] %v2135_v21  ;;  %4099 = vst [vmem:[#allocation11_spill] sm:$0xff] %v2140_v22  ;;  %v2180_v32 = vld [vmem:[%s3936_s0] sm:$0x3]  ;;  %v2201_v37 = vld [vmem:[%s3936_s0 + $0x2] sm:$0x3] }
   0x7   :  { %v2144_v23 = vrot.slane %v2079_v4, %v2111_v12  ;;  %v2148_v24 = vrot.slane %v2122_v16, %v2111_v12  ;;  %v2152_v25 = vrot.slane %v2084_v5, %v2111_v12  ;;  %4100 = vst [vmem:[#allocation12_spill] sm:$0xff] %v2159_v27  ;;  %v2163_v28 = vrot.slane %v2135_v21, %v2111_v12  ;;  %v2206_v38 = vld [vmem:[%s3937_s1] sm:$0x3]  ;;  %v2211_v39 = vld [vmem:[%s3934_s2 + $0x38] sm:$0xff]  ;;  %v2232_v44 = vld [vmem:[%s3936_s0 + $0x4] sm:$0x3] }
   0x8   :  { %v2167_v29 = vrot.slane %v2089_v7, %v2111_v12  ;;  %v2171_v30 = vrot.slane %v2140_v22, %v2111_v12  ;;  %v2175_v31 = vrot.slane %v2094_v8, %v2111_v12  ;;  %v2196_v36 = vrot.slane %v2159_v27, %v2111_v12  ;;  %4101 = vst [vmem:[#allocation13_spill] sm:$0xff] %v2211_v39  ;;  %v2237_v45 = vld [vmem:[%s3937_s1 + $0x2] sm:$0x3]  ;;  %v2242_v46 = vld [vmem:[%s3937_s1 + $0x4] sm:$0x3]  ;;  %v2312_v2 = vld [vmem:[%s3935_s3 + $0x28] sm:$0xff] }
   0x9   :  { %v2184_v33 = vrot.slane %v2144_v23, %v2111_v12  ;;  %v2188_v34 = vrot.slane %v2148_v24, %v2111_v12  ;;  %v2192_v35 = vrot.slane %v2152_v25, %v2111_v12  ;;  %v2215_v40 = vrot.slane %v2163_v28, %v2111_v12  ;;  %v2263_v51 = vld [vmem:[%s3936_s0 + $0x6] sm:$0x3]  ;;  %4111 = vst [vmem:[#allocation23_spill] sm:$0xff] %v2312_v2  ;;  %v2327_v20 = vld [vmem:[%s3935_s3 + $0x30] sm:$0xff] }
   0xa   :  { %v2219_v41 = vrot.slane %v2167_v29, %v2111_v12  ;;  %v2223_v42 = vrot.slane %v2171_v30, %v2111_v12  ;;  %v2227_v43 = vrot.slane %v2175_v31, %v2111_v12  ;;  %v2258_v50 = vrot.slane %v2196_v36, %v2111_v12  ;;  %v2284_v56 = vld [vmem:[%s3937_s1 + $0x6] sm:$0x3]  ;;  %4112 = vst [vmem:[#allocation24_spill] sm:$0xff] %v2327_v20 }
   0xb   :  { %v2246_v47 = vrot.slane %v2184_v33, %v2113_v13  ;;  %v2250_v48 = vrot.slane %v2188_v34, %v2113_v13  ;;  %v2254_v49 = vrot.slane %v2192_v35, %v2113_v13  ;;  %v2267_v52 = vrot.slane %v2215_v40, %v2113_v13  ;;  %v2307_v1 = vld [vmem:[%s3935_s3 + $0x20] sm:$0xff] }
   0xc   :  { %v2271_v53 = vrot.slane %v2219_v41, %v2113_v13  ;;  %v2275_v54 = vrot.slane %v2223_v42, %v2113_v13  ;;  %v2279_v55 = vrot.slane %v2227_v43, %v2113_v13  ;;  %v2302_v0 = vrot.slane %v2258_v50, %v2113_v13  ;;  %4110 = vst [vmem:[#allocation22_spill] sm:$0xff] %v2307_v1 }
   0xd   :  { %4102 = vst [vmem:[#allocation14_spill] sm:$0xff] %v2246_v47  ;;  %4103 = vst [vmem:[#allocation15_spill] sm:$0xff] %v2250_v48  ;;  %v191_v57 = vmul.f32 %v2246_v47, %v2180_v32  ;;  %v247_v58 = vmul.f32 %v2250_v48, %v2206_v38  ;;  %v435_v59 = vmul.f32 %v2254_v49, %v2201_v37  ;;  %v2389_v47 = vld [vmem:[%s3937_s1 + $0x8] sm:$0x3]  ;;  %v2394_v48 = vld [vmem:[%s3937_s1 + $0xa] sm:$0x3] }
   0xe   :  { %4104 = vst [vmem:[#allocation16_spill] sm:$0xff] %v2254_v49  ;;  %4105 = vst [vmem:[#allocation17_spill] sm:$0xff] %v2267_v52  ;;  %v491_v61 = vmul.f32 %v2267_v52, %v2237_v45  ;;  %v679_v62 = vmul.f32 %v2271_v53, %v2232_v44  ;;  %v735_v63 = vmul.f32 %v2275_v54, %v2242_v46  ;;  %v2384_v52 = vld [vmem:[%s3936_s0 + $0xc] sm:$0x3] }
   0xf   :  { %4106 = vst [vmem:[#allocation18_spill] sm:$0xff] %v2271_v53  ;;  %4107 = vst [vmem:[#allocation19_spill] sm:$0xff] %v2275_v54  ;;  %v255_v3 = vsub.f32 %v191_v57, %v247_v58  ;;  %v923_v6 = vmul.f32 %v2279_v55, %v2263_v51  ;;  %v2318_v60 = vrot.slane %v2099_v9, %v2111_v12 }
  0x10   :  { %4108 = vst [vmem:[#allocation20_spill] sm:$0xff] %v2279_v55  ;;  %4109 = vst [vmem:[#allocation21_spill] sm:$0xff] %v2302_v0  ;;  %v2322_v26 = vrot.slane %v2104_v10, %v2111_v12  ;;  %v979_v19 = vmul.f32 %v2302_v0, %v2284_v56  ;;  %v2333_v57 = vrot.slane %v2307_v1, %v2111_v12  ;;  %v2358_v0 = vld [vmem:[%s3936_s0 + $0x8] sm:$0x3]  ;;  %v2411_v10 = vld [vmem:[%s3937_s1 + $0xc] sm:$0x3] }
  0x11   :  { %v2337_v58 = vrot.slane %v2312_v2, %v2111_v12  ;;  %v2341_v18 = vrot.slane %v2109_v11, %v2111_v12  ;;  %v443_v17 = vadd.f32 %v435_v59, %v255_v3  ;;  %v2345_v15 = vrot.slane %v2318_v60, %v2111_v12  ;;  %v2363_v59 = vld [vmem:[%s3936_s0 + $0xa] sm:$0x3] }
  0x12   :  { %v2349_v14 = vrot.slane %v2322_v26, %v2111_v12  ;;  %v2353_v55 = vrot.slane %v2327_v20, %v2111_v12  ;;  %v2367_v3 = vrot.slane %v2333_v57, %v2111_v12  ;;  %v2379_v49 = vrot.slane %v2211_v39, %v2111_v12 }
  0x13   :  { %v2371_v53 = vrot.slane %v2337_v58, %v2111_v12  ;;  %v2375_v54 = vrot.slane %v2341_v18, %v2111_v12  ;;  %v499_v20 = vsub.f32 %v443_v17, %v491_v61  ;;  %v2398_v39 = vrot.slane %v2345_v15, %v2113_v13  ;;  %v2416_v17 = vld [vmem:[%s3935_s3 + $0x38] sm:$0xff] }
  0x14   :  { %v2402_v11 = vrot.slane %v2349_v14, %v2113_v13  ;;  %v2406_v2 = vrot.slane %v2353_v55, %v2111_v12  ;;  %4115 = vst [vmem:[#allocation27_spill] sm:$0xff] %v2416_v17  ;;  %v2420_v61 = vrot.slane %v2367_v3, %v2113_v13  ;;  %v2432_v27 = vrot.slane %v2379_v49, %v2111_v12 }
  0x15   :  { %4113 = vst [vmem:[#allocation25_spill] sm:$0xff] %v2398_v39  ;;  %v2424_v1 = vrot.slane %v2371_v53, %v2113_v13  ;;  %v2428_v9 = vrot.slane %v2375_v54, %v2113_v13  ;;  %v687_v8 = vadd.f32 %v679_v62, %v499_v20  ;;  %v1167_v22 = vmul.f32 %v2398_v39, %v2358_v0 }
  0x16   :  { %4114 = vst [vmem:[#allocation26_spill] sm:$0xff] %v2402_v11  ;;  %4116 = vst [vmem:[#allocation28_spill] sm:$0xff] %v2420_v61  ;;  %v2438_v7 = vrot.slane %v2406_v2, %v2113_v13  ;;  %v2442_v21 = vrot.slane %v2416_v17, %v2111_v12  ;;  %v1223_v5 = vmul.f32 %v2420_v61, %v2389_v47 }
  0x17   :  { %4117 = vst [vmem:[#allocation29_spill] sm:$0xff] %v2424_v1  ;;  %4118 = vst [vmem:[#allocation30_spill] sm:$0xff] %v2428_v9  ;;  %v1411_v16 = vmul.f32 %v2402_v11, %v2363_v59  ;;  %v1467_v20 = vmul.f32 %v2424_v1, %v2394_v48  ;;  %v1655_v62 = vmul.f32 %v2428_v9, %v2384_v52 }
  0x18   :  { %4119 = vst [vmem:[#allocation31_spill] sm:$0xff] %v2432_v27  ;;  %4120 = vst [vmem:[#allocation32_spill] sm:$0xff] %v2438_v7  ;;  %v743_v39 = vsub.f32 %v687_v8, %v735_v63  ;;  %v2454_v4 = vmul.f32 %v2438_v7, %v2411_v10  ;;  %v67_v17 = vcombine.high %v2144_v23, %v2144_v23 }
  0x19   :  { %v117_v61 = vcombine.high %v2148_v24, %v2148_v24  ;;  %v2462_v11 = vrot.slane %v2442_v21, %v2111_v12  ;;  %v311_v1 = vcombine.high %v2152_v25, %v2152_v25  ;;  %v361_v8 = vcombine.high %v2163_v28, %v2163_v28 }
  0x1a   :  { %v555_v63 = vcombine.high %v2167_v29, %v2167_v29  ;;  %v931_v9 = vadd.f32 %v923_v6, %v743_v39  ;;  %v2472_v23 = vrot.slane %v2432_v27, %v2113_v13  ;;  %v2475_v24 = vrot.slane %v67_v17, %v2111_v12  ;;  %v2496_v6 = vld [vmem:[%s3936_s0 + $0xe] sm:$0x3] }
  0x1b   :  { %4121 = vst [vmem:[#allocation33_spill] sm:$0xff] %v2462_v11  ;;  %v2478_v7 = vrot.slane %v117_v61, %v2111_v12  ;;  %v2482_v25 = vrot.slane %v2462_v11, %v2113_v13  ;;  %v2485_v28 = vrot.slane %v311_v1, %v2111_v12  ;;  %v2488_v29 = vrot.slane %v361_v8, %v2111_v12 }
  0x1c   :  { %4122 = vst [vmem:[#allocation34_spill] sm:$0xff] %v2472_v23  ;;  %4123 = vst [vmem:[#allocation35_spill] sm:$0xff] %v2475_v24  ;;  %v2491_v39 = vrot.slane %v555_v63, %v2111_v12  ;;  %v987_v17 = vsub.f32 %v931_v9, %v979_v19  ;;  %v2500_v61 = vrot.slane %v2475_v24, %v2113_v13 }
  0x1d   :  { %4124 = vst [vmem:[#allocation36_spill] sm:$0xff] %v2478_v7  ;;  %4125 = vst [vmem:[#allocation37_spill] sm:$0xff] %v2482_v25  ;;  %v2504_v1 = vrot.slane %v2478_v7, %v2113_v13  ;;  %v605_v8 = vcombine.high %v2171_v30, %v2171_v30  ;;  %v2510_v63 = vrot.slane %v2485_v28, %v2113_v13 }
  0x1e   :  { %4126 = vst [vmem:[#allocation38_spill] sm:$0xff] %v2485_v28  ;;  %4127 = vst [vmem:[#allocation39_spill] sm:$0xff] %v2488_v29  ;;  %v2514_v11 = vrot.slane %v2488_v29, %v2113_v13  ;;  %v2518_v9 = vrot.slane %v2491_v39, %v2113_v13  ;;  %v799_v19 = vcombine.high %v2175_v31, %v2175_v31  ;;  %v2532_v29 = vld [vmem:[%s3937_s1 + $0xe] sm:$0x3] }
  0x1f   :  { %4128 = vst [vmem:[#allocation40_spill] sm:$0xff] %v2491_v39  ;;  %4129 = vst [vmem:[#allocation41_spill] sm:$0xff] %v2500_v61  ;;  %v1175_v7 = vadd.f32 %v1167_v22, %v987_v17  ;;  %v192_v24 = vmul.f32 %v2500_v61, %v2180_v32  ;;  %v248_v30 = vmul.f32 %v2504_v1, %v2206_v38 }
  0x20   :  { %4130 = vst [vmem:[#allocation42_spill] sm:$0xff] %v2504_v1  ;;  %4131 = vst [vmem:[#allocation43_spill] sm:$0xff] %v2510_v63  ;;  %v2527_v28 = vrot.slane %v605_v8, %v2111_v12  ;;  %v1899_v39 = vmul.f32 %v2472_v23, %v2496_v6  ;;  %v436_v22 = vmul.f32 %v2510_v63, %v2201_v37 }
  0x21   :  { %4132 = vst [vmem:[#allocation44_spill] sm:$0xff] %v2514_v11  ;;  %4133 = vst [vmem:[#allocation45_spill] sm:$0xff] %v2518_v9  ;;  %v492_v31 = vmul.f32 %v2514_v11, %v2237_v45  ;;  %v2541_v17 = vrot.slane %v799_v19, %v2111_v12  ;;  %v1231_v61 = vsub.f32 %v1175_v7, %v1223_v5 }
  0x22   :  { %v256_v8 = vsub.f32 %v192_v24, %v248_v30  ;;  %v2545_v1 = vrot.slane %v2527_v28, %v2113_v13  ;;  %v849_v27 = vcombine.high %v2196_v36, %v2196_v36  ;;  %v1043_v63 = vcombine.high %v2318_v60, %v2318_v60 }
  0x23   :  { %v2551_v23 = vrot.slane %v2541_v17, %v2113_v13  ;;  %v1093_v19 = vcombine.high %v2333_v57, %v2333_v57  ;;  %v1287_v5 = vcombine.high %v2322_v26, %v2322_v26  ;;  %v1419_v7 = vadd.f32 %v1411_v16, %v1231_v61 }
  0x24   :  { %4134 = vst [vmem:[#allocation46_spill] sm:$0xff] %v2545_v1  ;;  %v1955_v24 = vmul.f32 %v2482_v25, %v2532_v29  ;;  %v444_v30 = vadd.f32 %v436_v22, %v256_v8  ;;  %v680_v36 = vmul.f32 %v2518_v9, %v2232_v44  ;;  %v736_v11 = vmul.f32 %v2545_v1, %v2242_v46 }
  0x25   :  { %4135 = vst [vmem:[#allocation47_spill] sm:$0xff] %v2551_v23  ;;  %v2566_v60 = vrot.slane %v849_v27, %v2111_v12  ;;  %v924_v57 = vmul.f32 %v2551_v23, %v2263_v51  ;;  %v2571_v26 = vrot.slane %v1043_v63, %v2111_v12  ;;  %v1475_v16 = vsub.f32 %v1419_v7, %v1467_v20 }
  0x26   :  { %v500_v61 = vsub.f32 %v444_v30, %v492_v31  ;;  %v2574_v22 = vrot.slane %v1287_v5, %v2111_v12  ;;  %v1337_v8 = vcombine.high %v2337_v58, %v2337_v58  ;;  %v2583_v27 = vrot.slane %v1093_v19, %v2111_v12 }
  0x27   :  { %v2580_v25 = vrot.slane %v2566_v60, %v2113_v13  ;;  %v2587_v23 = vrot.slane %v2571_v26, %v2113_v13  ;;  %v1531_v20 = vcombine.high %v2341_v18, %v2341_v18  ;;  %v1663_v63 = vadd.f32 %v1655_v62, %v1475_v16 }
  0x28   :  { %v688_v31 = vadd.f32 %v680_v36, %v500_v61  ;;  %v2592_v5 = vrot.slane %v1337_v8, %v2111_v12  ;;  %v2596_v58 = vrot.slane %v2574_v22, %v2113_v13  ;;  %v2604_v30 = vrot.slane %v2583_v27, %v2113_v13 }
  0x29   :  { %4136 = vst [vmem:[#allocation48_spill] sm:$0xff] %v2580_v25  ;;  %4137 = vst [vmem:[#allocation49_spill] sm:$0xff] %v2587_v23  ;;  %v980_v19 = vmul.f32 %v2580_v25, %v2284_v56  ;;  %v1168_v7 = vmul.f32 %v2587_v23, %v2358_v0  ;;  %v2607_v18 = vrot.slane %v1531_v20, %v2111_v12 }
  0x2a   :  { %4138 = vst [vmem:[#allocation50_spill] sm:$0xff] %v2596_v58  ;;  %4139 = vst [vmem:[#allocation51_spill] sm:$0xff] %v2604_v30  ;;  %v1719_v62 = vsub.f32 %v1663_v63, %v2454_v4  ;;  %v744_v36 = vsub.f32 %v688_v31, %v736_v11  ;;  %v2612_v16 = vrot.slane %v2592_v5, %v2113_v13 }
  0x2b   :  { %v1581_v61 = vcombine.high %v2353_v55, %v2353_v55  ;;  %v2618_v8 = vrot.slane %v2607_v18, %v2113_v13  ;;  %v1775_v23 = vcombine.high %v2379_v49, %v2379_v49  ;;  %v1825_v20 = vcombine.high %v2442_v21, %v2442_v21 }
  0x2c   :  { %4140 = vst [vmem:[#allocation52_spill] sm:$0xff] %v2612_v16  ;;  %v97_v4 = vcombine.high %v2184_v33, %v2184_v33  ;;  %v1907_v11 = vadd.f32 %v1899_v39, %v1719_v62  ;;  %v932_v63 = vadd.f32 %v924_v57, %v744_v36  ;;  %v1224_v31 = vmul.f32 %v2604_v30, %v2389_v47 }
  0x2d   :  { %4141 = vst [vmem:[#allocation53_spill] sm:$0xff] %v2618_v8  ;;  %v1412_v55 = vmul.f32 %v2596_v58, %v2363_v59  ;;  %v1468_v25 = vmul.f32 %v2612_v16, %v2394_v48  ;;  %v2633_v9 = vrot.slane %v1581_v61, %v2111_v12  ;;  %v1656_v21 = vmul.f32 %v2618_v8, %v2384_v52 }
  0x2e   :  { %v147_v33 = vcombine.high %v2188_v34, %v2188_v34  ;;  %v1963_v49 = vsub.f32 %v1907_v11, %v1955_v24  ;;  %v988_v39 = vsub.f32 %v932_v63, %v980_v19  ;;  %v2640_v57 = vrot.slane %v1775_v23, %v2111_v12 }
  0x2f   :  { %v2643_v62 = vrot.slane %v97_v4, %v2113_v13  ;;  %v2647_v36 = vrot.slane %v2633_v9, %v2113_v13  ;;  %v2650_v61 = vrot.slane %v1825_v20, %v2111_v12  ;;  %v341_v34 = vcombine.high %v2192_v35, %v2192_v35 }
  0x30   :  { %v2653_v8 = vrot.slane %v147_v33, %v2113_v13  ;;  %2004 = vst.msk [vmem:[%s3938_s4] sm:$0x3] %vm2003_vm0, %v1963_v49  ;;  %v1176_v23 = vadd.f32 %v1168_v7, %v988_v39  ;;  %v2663_v24 = vrot.slane %v2640_v57, %v2113_v13  ;;  %v391_v20 = vcombine.high %v2215_v40, %v2215_v40 }
  0x31   :  { %4142 = vst [vmem:[#allocation54_spill] sm:$0xff] %v2643_v62  ;;  %4143 = vst [vmem:[#allocation55_spill] sm:$0xff] %v2647_v36  ;;  %v193_v19 = vmul.f32 %v2643_v62, %v2180_v32  ;;  %v1712_v4 = vmul.f32 %v2647_v36, %v2411_v10  ;;  %v2673_v35 = vrot.slane %v2650_v61, %v2113_v13 }
  0x32   :  { %4144 = vst [vmem:[#allocation56_spill] sm:$0xff] %v2653_v8  ;;  %4145 = vst [vmem:[#allocation57_spill] sm:$0xff] %v2663_v24  ;;  %v249_v7 = vmul.f32 %v2653_v8, %v2206_v38  ;;  %v2678_v11 = vrot.slane %v341_v34, %v2113_v13  ;;  %v1232_v63 = vsub.f32 %v1176_v23, %v1224_v31 }
  0x33   :  { %4146 = vst [vmem:[#allocation58_spill] sm:$0xff] %v2673_v35  ;;  %v2681_v33 = vrot.slane %v391_v20, %v2113_v13  ;;  %v585_v40 = vcombine.high %v2219_v41, %v2219_v41  ;;  %v635_v49 = vcombine.high %v2223_v42, %v2223_v42  ;;  %v829_v58 = vcombine.high %v2227_v43, %v2227_v43 }
  0x34   :  { %4147 = vst [vmem:[#allocation59_spill] sm:$0xff] %v2678_v11  ;;  %v257_v39 = vsub.f32 %v193_v19, %v249_v7  ;;  %v437_v36 = vmul.f32 %v2678_v11, %v2201_v37  ;;  %v879_v34 = vcombine.high %v2258_v50, %v2258_v50  ;;  %v1420_v31 = vadd.f32 %v1412_v55, %v1232_v63 }
  0x35   :  { %4148 = vst [vmem:[#allocation60_spill] sm:$0xff] %v2681_v33  ;;  %v1900_v23 = vmul.f32 %v2663_v24, %v2496_v6  ;;  %v493_v41 = vmul.f32 %v2681_v33, %v2237_v45  ;;  %v2698_v20 = vrot.slane %v585_v40, %v2113_v13  ;;  %v2701_v19 = vrot.slane %v635_v49, %v2113_v13 }
  0x36   :  { %v445_v42 = vadd.f32 %v437_v36, %v257_v39  ;;  %v2704_v7 = vrot.slane %v829_v58, %v2113_v13  ;;  %v1073_v43 = vcombine.high %v2345_v15, %v2345_v15  ;;  %v1476_v50 = vsub.f32 %v1420_v31, %v1468_v25 }
  0x37   :  { %4149 = vst [vmem:[#allocation61_spill] sm:$0xff] %v2698_v20  ;;  %4150 = vst [vmem:[#allocation62_spill] sm:$0xff] %v2701_v19  ;;  %v1956_v55 = vmul.f32 %v2673_v35, %v2532_v29  ;;  %v681_v63 = vmul.f32 %v2698_v20, %v2232_v44  ;;  %v1123_v40 = vcombine.high %v2367_v3, %v2367_v3  ;;  %v4165_v35 = vld [vmem:[#allocation39_spill] sm:$0xff] }
  0x38   :  { %4151 = vst [vmem:[#allocation63_spill] sm:$0xff] %v2704_v7  ;;  %v501_v36 = vsub.f32 %v445_v42, %v493_v41  ;;  %v737_v49 = vmul.f32 %v2701_v19, %v2242_v46  ;;  %v2717_v58 = vrot.slane %v879_v34, %v2113_v13  ;;  %v2720_v39 = vrot.slane %v1073_v43, %v2113_v13 }
  0x39   :  { %v1664_v15 = vadd.f32 %v1656_v21, %v1476_v50  ;;  %v925_v25 = vmul.f32 %v2704_v7, %v2263_v51  ;;  %v1317_v31 = vcombine.high %v2349_v14, %v2349_v14  ;;  %v1367_v3 = vcombine.high %v2371_v53, %v2371_v53 }
  0x3a   :  { %4152 = vst [vmem:[#allocation64_spill] sm:$0xff] %v2717_v58  ;;  %4153 = vst [vmem:[#allocation65_spill] sm:$0xff] %v2720_v39  ;;  %v689_v41 = vadd.f32 %v681_v63, %v501_v36  ;;  %v981_v42 = vmul.f32 %v2717_v58, %v2284_v56  ;;  %v1561_v34 = vcombine.high %v2375_v54, %v2375_v54  ;;  %v4158_v54 = vld [vmem:[#allocation31_spill] sm:$0xff] }
  0x3b   :  { %v1611_v43 = vcombine.high %v2406_v2, %v2406_v2  ;;  %v1720_v21 = vsub.f32 %v1664_v15, %v1712_v4  ;;  %v1169_v50 = vmul.f32 %v2720_v39, %v2358_v0  ;;  %v2737_v24 = vrot.slane %v1123_v40, %v2113_v13  ;;  %v4160_v39 = vld [vmem:[#allocation33_spill] sm:$0xff] }
  0x3c   :  { %v2740_v14 = vrot.slane %v1317_v31, %v2113_v13  ;;  %v745_v53 = vsub.f32 %v689_v41, %v737_v49  ;;  %v2743_v63 = vrot.slane %v1367_v3, %v2113_v13  ;;  %v2746_v36 = vrot.slane %v1561_v34, %v2113_v13 }
  0x3d   :  { %4154 = vst [vmem:[#allocation66_spill] sm:$0xff] %v2737_v24  ;;  %v1805_v2 = vcombine.high %v4158_v54, %v4158_v54  ;;  %v1908_v4 = vadd.f32 %v1900_v23, %v1720_v21  ;;  %v1225_v15 = vmul.f32 %v2737_v24, %v2389_v47  ;;  %v2753_v40 = vrot.slane %v1611_v43, %v2113_v13  ;;  %v4161_v54 = vld [vmem:[#allocation35_spill] sm:$0xff]  ;;  %v4162_v24 = vld [vmem:[#allocation36_spill] sm:$0xff] }
  0x3e   :  { %4155 = vst [vmem:[#allocation67_spill] sm:$0xff] %v2740_v14  ;;  %4156 = vst [vmem:[#allocation68_spill] sm:$0xff] %v2743_v63  ;;  %v1855_v31 = vcombine.high %v4160_v39, %v4160_v39  ;;  %v933_v49 = vadd.f32 %v925_v25, %v745_v53  ;;  %v1413_v3 = vmul.f32 %v2740_v14, %v2363_v59  ;;  %v4164_v14 = vld [vmem:[#allocation38_spill] sm:$0xff] }
  0x3f   :  { %4157 = vst [vmem:[#allocation69_spill] sm:$0xff] %v2746_v36  ;;  %4159 = vst [vmem:[#allocation31_spill] sm:$0xff] %v2753_v40  ;;  %v1469_v41 = vmul.f32 %v2743_v63, %v2394_v48  ;;  %v1657_v34 = vmul.f32 %v2746_v36, %v2384_v52  ;;  %v1964_v23 = vsub.f32 %v1908_v4, %v1956_v55 }
  0x40   :  { %v1713_v21 = vmul.f32 %v2753_v40, %v2411_v10  ;;  %v99_v43 = vcombine.high %v4161_v54, %v4161_v54  ;;  %v149_v39 = vcombine.high %v4162_v24, %v4162_v24  ;;  %v989_v25 = vsub.f32 %v933_v49, %v981_v42 }
  0x41   :  { %v2770_v53 = vrot.slane %v1805_v2, %v2113_v13  ;;  %v343_v63 = vcombine.high %v4164_v14, %v4164_v14  ;;  %v393_v36 = vcombine.high %v4165_v35, %v4165_v35  ;;  %2005 = vst.msk [vmem:[%s3938_s4 + $0x2] sm:$0x3] %vm2003_vm0, %v1964_v23  ;;  %v2781_v55 = vrot.slane %v1855_v31, %v2113_v13  ;;  %v4169_v2 = vld [vmem:[#allocation40_spill] sm:$0xff] }
  0x42   :  { %v2784_v24 = vrot.slane %v99_v43, %v2113_v13  ;;  %v2787_v42 = vrot.slane %v149_v39, %v2113_v13  ;;  %v587_v14 = vcombine.high %v4169_v2, %v4169_v2  ;;  %v1177_v4 = vadd.f32 %v1169_v50, %v989_v25 }
  0x43   :  { %4163 = vst [vmem:[#allocation33_spill] sm:$0xff] %v2770_v53  ;;  %4166 = vst [vmem:[#allocation35_spill] sm:$0xff] %v2781_v55  ;;  %v2792_v35 = vrot.slane %v343_v63, %v2113_v13  ;;  %v2795_v49 = vrot.slane %v393_v36, %v2113_v13  ;;  %v637_v31 = vcombine.high %v2527_v28, %v2527_v28 }
  0x44   :  { %4167 = vst [vmem:[#allocation36_spill] sm:$0xff] %v2784_v24  ;;  %4168 = vst [vmem:[#allocation38_spill] sm:$0xff] %v2787_v42  ;;  %v194_v23 = vmul.f32 %v2784_v24, %v2180_v32  ;;  %v250_v54 = vmul.f32 %v2787_v42, %v2206_v38  ;;  %v2804_v43 = vrot.slane %v587_v14, %v2113_v13 }
  0x45   :  { %4170 = vst [vmem:[#allocation39_spill] sm:$0xff] %v2792_v35  ;;  %4171 = vst [vmem:[#allocation40_spill] sm:$0xff] %v2795_v49  ;;  %v831_v50 = vcombine.high %v2541_v17, %v2541_v17  ;;  %v1233_v63 = vsub.f32 %v1177_v4, %v1225_v15  ;;  %v1901_v36 = vmul.f32 %v2770_v53, %v2496_v6 }
  0x46   :  { %4172 = vst [vmem:[#allocation70_spill] sm:$0xff] %v2804_v43  ;;  %v438_v39 = vmul.f32 %v2792_v35, %v2201_v37  ;;  %v494_v28 = vmul.f32 %v2795_v49, %v2237_v45  ;;  %v258_v25 = vsub.f32 %v194_v23, %v250_v54  ;;  %v2815_v2 = vrot.slane %v637_v31, %v2113_v13 }
  0x47   :  { %v881_v14 = vcombine.high %v2566_v60, %v2566_v60  ;;  %v2820_v40 = vrot.slane %v831_v50, %v2113_v13  ;;  %v1421_v17 = vadd.f32 %v1413_v3, %v1233_v63  ;;  %v1957_v15 = vmul.f32 %v2781_v55, %v2532_v29 }
  0x48   :  { %4173 = vst [vmem:[#allocation71_spill] sm:$0xff] %v2815_v2  ;;  %v1075_v4 = vcombine.high %v2571_v26, %v2571_v26  ;;  %v1125_v53 = vcombine.high %v2583_v27, %v2583_v27  ;;  %v446_v23 = vadd.f32 %v438_v39, %v258_v25  ;;  %v682_v31 = vmul.f32 %v2804_v43, %v2232_v44 }
  0x49   :  { %4174 = vst [vmem:[#allocation72_spill] sm:$0xff] %v2820_v40  ;;  %v738_v60 = vmul.f32 %v2815_v2, %v2242_v46  ;;  %v1319_v54 = vcombine.high %v2574_v22, %v2574_v22  ;;  %v1477_v3 = vsub.f32 %v1421_v17, %v1469_v41  ;;  %v2835_v50 = vrot.slane %v881_v14, %v2113_v13 }
  0x4a   :  { %v2838_v63 = vrot.slane %v1075_v4, %v2113_v13  ;;  %v1369_v26 = vcombine.high %v2592_v5, %v2592_v5  ;;  %v502_v27 = vsub.f32 %v446_v23, %v494_v28  ;;  %v926_v39 = vmul.f32 %v2820_v40, %v2263_v51 }
  0x4b   :  { %4175 = vst [vmem:[#allocation73_spill] sm:$0xff] %v2835_v50  ;;  %v2845_v25 = vrot.slane %v1319_v54, %v2113_v13  ;;  %v1563_v22 = vcombine.high %v2607_v18, %v2607_v18  ;;  %v1665_v41 = vadd.f32 %v1657_v34, %v1477_v3  ;;  %v982_v14 = vmul.f32 %v2835_v50, %v2284_v56 }
  0x4c   :  { %4176 = vst [vmem:[#allocation74_spill] sm:$0xff] %v2838_v63  ;;  %v1170_v17 = vmul.f32 %v2838_v63, %v2358_v0  ;;  %v2854_v4 = vrot.slane %v1125_v53, %v2113_v13  ;;  %v690_v5 = vadd.f32 %v682_v31, %v502_v27  ;;  %v2857_v28 = vrot.slane %v1369_v26, %v2113_v13  ;;  %v4181_v27 = vld [vmem:[#allocation2_spill] sm:$0xff] }
  0x4d   :  { %4177 = vst [vmem:[#allocation75_spill] sm:$0xff] %v2845_v25  ;;  %v1613_v23 = vcombine.high %v2633_v9, %v2633_v9  ;;  %v2862_v54 = vrot.slane %v1563_v22, %v2113_v13  ;;  %v1721_v18 = vsub.f32 %v1665_v41, %v1713_v21  ;;  %v1807_v3 = vcombine.high %v2640_v57, %v2640_v57 }
  0x4e   :  { %4178 = vst [vmem:[#allocation76_spill] sm:$0xff] %v2854_v4  ;;  %4179 = vst [vmem:[#allocation77_spill] sm:$0xff] %v2857_v28  ;;  %v1226_v34 = vmul.f32 %v2854_v4, %v2389_v47  ;;  %v1857_v53 = vcombine.high %v2650_v61, %v2650_v61  ;;  %v746_v31 = vsub.f32 %v690_v5, %v738_v60  ;;  %v4185_v61 = vld [vmem:[#allocation9_spill] sm:$0xff] }
  0x4f   :  { %4180 = vst [vmem:[#allocation78_spill] sm:$0xff] %v2862_v54  ;;  %v1414_v26 = vmul.f32 %v2845_v25, %v2363_v59  ;;  %v1470_v9 = vmul.f32 %v2857_v28, %v2394_v48  ;;  %v4182_v21 = vcombine.high %v4181_v27, %v4181_v27  ;;  %v1909_v41 = vadd.f32 %v1901_v36, %v1721_v18  ;;  %v4186_v27 = vld [vmem:[#allocation3_spill] sm:$0xff] }
  0x50   :  { %v2881_v63 = vrot.slane %v1613_v23, %v2113_v13  ;;  %v2884_v57 = vrot.slane %v1807_v3, %v2113_v13  ;;  %v102_v60 = vcombine.high %v4185_v61, %v4185_v61  ;;  %v934_v5 = vadd.f32 %v926_v39, %v746_v31 }
  0x51   :  { %v2878_v22 = vrot.slane %v4182_v21, %v2111_v12  ;;  %v1658_v25 = vmul.f32 %v2862_v54, %v2384_v52  ;;  %v4187_v36 = vcombine.high %v4186_v27, %v4186_v27  ;;  %v1965_v18 = vsub.f32 %v1909_v41, %v1957_v15  ;;  %v4191_v41 = vld [vmem:[#allocation4_spill] sm:$0xff]  ;;  %v4193_v54 = vld [vmem:[#allocation11_spill] sm:$0xff] }
  0x52   :  { %4183 = vst [vmem:[#allocation2_spill] sm:$0xff] %v2881_v63  ;;  %4184 = vst [vmem:[#allocation79_spill] sm:$0xff] %v2884_v57  ;;  %v1714_v3 = vmul.f32 %v2881_v63, %v2411_v10  ;;  %v2903_v21 = vrot.slane %v1857_v53, %v2113_v13  ;;  %v2906_v39 = vrot.slane %v102_v60, %v2111_v12 }
  0x53   :  { %v2892_v28 = vrot.slane %v2878_v22, %v2111_v12  ;;  %v2898_v23 = vrot.slane %v4187_v36, %v2111_v12  ;;  %v990_v31 = vsub.f32 %v934_v5, %v982_v14  ;;  %v4190_v36 = vld [vmem:[#allocation10_spill] sm:$0xff]  ;;  %2006 = vst.msk [vmem:[%s3938_s4 + $0x4] sm:$0x3] %vm2003_vm0, %v1965_v18  ;;  %v1902_v53 = vmul.f32 %v2884_v57, %v2496_v6 }
  0x54   :  { %4188 = vst [vmem:[#allocation9_spill] sm:$0xff] %v2903_v21  ;;  %v346_v15 = vcombine.high %v4190_v36, %v4190_v36  ;;  %v2926_v14 = vrot.slane %v2906_v39, %v2111_v12  ;;  %v4192_v60 = vcombine.high %v4191_v41, %v4191_v41  ;;  %v590_v36 = vcombine.high %v4193_v54, %v4193_v54  ;;  %v4196_v54 = vld [vmem:[#allocation5_spill] sm:$0xff] }
  0x55   :  { %v2910_v61 = vrot.slane %v2892_v28, %v2113_v13  ;;  %v2914_v27 = vrot.slane %v2898_v23, %v2111_v12  ;;  %v1178_v63 = vadd.f32 %v1170_v17, %v990_v31  ;;  %v2938_v18 = vmul.f32 %v2903_v21, %v2532_v29 }
  0x56   :  { %v2932_v5 = vrot.slane %v4192_v60, %v2111_v12  ;;  %v2941_v57 = vrot.slane %v346_v15, %v2111_v12  ;;  %v2951_v60 = vrot.slane %v2926_v14, %v2113_v13  ;;  %v4197_v31 = vcombine.high %v4196_v54, %v4196_v54 }
  0x57   :  { %4189 = vst [vmem:[#allocation3_spill] sm:$0xff] %v2910_v61  ;;  %v2945_v55 = vrot.slane %v2914_v27, %v2113_v13  ;;  %v195_v41 = vmul.f32 %v2910_v61, %v2180_v32  ;;  %v1234_v21 = vsub.f32 %v1178_v63, %v1226_v34  ;;  %v2968_v40 = vrot.slane %v590_v36, %v2111_v12  ;;  %v4198_v61 = vld [vmem:[#allocation12_spill] sm:$0xff] }
  0x58   :  { %4195 = vst [vmem:[#allocation4_spill] sm:$0xff] %v2951_v60  ;;  %v2955_v17 = vrot.slane %v2932_v5, %v2111_v12  ;;  %v2961_v15 = vrot.slane %v4197_v31, %v2111_v12  ;;  %v2965_v4 = vrot.slane %v2941_v57, %v2111_v12  ;;  %v834_v50 = vcombine.high %v4198_v61, %v4198_v61 }
  0x59   :  { %4194 = vst [vmem:[#allocation10_spill] sm:$0xff] %v2945_v55  ;;  %v251_v43 = vmul.f32 %v2951_v60, %v2206_v38  ;;  %v439_v2 = vmul.f32 %v2945_v55, %v2201_v37  ;;  %v1422_v34 = vadd.f32 %v1414_v26, %v1234_v21  ;;  %v2990_v61 = vrot.slane %v2968_v40, %v2111_v12  ;;  %v4202_v26 = vld [vmem:[#allocation6_spill] sm:$0xff] }
  0x5a   :  { %v2978_v54 = vrot.slane %v2955_v17, %v2113_v13  ;;  %v2982_v63 = vrot.slane %v2961_v15, %v2111_v12  ;;  %v2986_v36 = vrot.slane %v2965_v4, %v2113_v13  ;;  %v2993_v31 = vrot.slane %v834_v50, %v2111_v12 }
  0x5b   :  { %v259_v55 = vsub.f32 %v195_v41, %v251_v43  ;;  %v4203_v21 = vcombine.high %v4202_v26, %v4202_v26  ;;  %v1478_v49 = vsub.f32 %v1422_v34, %v1470_v9  ;;  %v3011_v43 = vrot.slane %v2990_v61, %v2113_v13  ;;  %v4205_v26 = vld [vmem:[#allocation22_spill] sm:$0xff]  ;;  %v4206_v9 = vld [vmem:[#allocation7_spill] sm:$0xff] }
  0x5c   :  { %4199 = vst [vmem:[#allocation11_spill] sm:$0xff] %v2978_v54  ;;  %4200 = vst [vmem:[#allocation5_spill] sm:$0xff] %v2986_v36  ;;  %v683_v60 = vmul.f32 %v2978_v54, %v2232_v44  ;;  %v2999_v35 = vrot.slane %v2982_v63, %v2113_v13  ;;  %v495_v24 = vmul.f32 %v2986_v36, %v2237_v45 }
  0x5d   :  { %v3005_v7 = vrot.slane %v4203_v21, %v2111_v12  ;;  %4204 = vst [vmem:[#allocation6_spill] sm:$0xff] %v3011_v43  ;;  %v3015_v50 = vrot.slane %v2993_v31, %v2111_v12  ;;  %v447_v41 = vadd.f32 %v439_v2, %v259_v55  ;;  %v1078_v21 = vcombine.high %v4205_v26, %v4205_v26  ;;  %v4209_v2 = vld [vmem:[#allocation23_spill] sm:$0xff] }
  0x5e   :  { %4201 = vst [vmem:[#allocation12_spill] sm:$0xff] %v2999_v35  ;;  %v4207_v34 = vcombine.high %v4206_v9, %v4206_v9  ;;  %v1666_v42 = vadd.f32 %v1658_v25, %v1478_v49  ;;  %v739_v58 = vmul.f32 %v3011_v43, %v2242_v46  ;;  %v1322_v16 = vcombine.high %v4209_v2, %v4209_v2  ;;  %v4211_v49 = vld [vmem:[#allocation8_spill] sm:$0xff] }
  0x5f   :  { %v3019_v54 = vrot.slane %v3005_v7, %v2111_v12  ;;  %v3033_v55 = vrot.slane %v3015_v50, %v2113_v13  ;;  %v503_v20 = vsub.f32 %v447_v41, %v495_v24  ;;  %v4212_v25 = vcombine.high %v4211_v49, %v4211_v49 }
  0x60   :  { %v3027_v36 = vrot.slane %v4207_v34, %v2111_v12  ;;  %v1722_v43 = vsub.f32 %v1666_v42, %v1714_v3  ;;  %v927_v30 = vmul.f32 %v2999_v35, %v2263_v51  ;;  %v3054_v24 = vrot.slane %v1078_v21, %v2111_v12 }
  0x61   :  { %4208 = vst [vmem:[#allocation22_spill] sm:$0xff] %v3033_v55  ;;  %v3039_v26 = vrot.slane %v3019_v54, %v2113_v13  ;;  %v3049_v34 = vrot.slane %v4212_v25, %v2111_v12  ;;  %v3057_v41 = vrot.slane %v1322_v16, %v2111_v12  ;;  %v691_v2 = vadd.f32 %v683_v60, %v503_v20  ;;  %v4214_v20 = vld [vmem:[#allocation24_spill] sm:$0xff] }
  0x62   :  { %v3043_v9 = vrot.slane %v3027_v36, %v2111_v12  ;;  %v983_v19 = vmul.f32 %v3033_v55, %v2284_v56  ;;  %v1910_v3 = vadd.f32 %v1902_v53, %v1722_v43  ;;  %v3071_v21 = vrot.slane %v3054_v24, %v2111_v12  ;;  %v4216_v53 = vld [vmem:[#allocation13_spill] sm:$0xff] }
  0x63   :  { %4210 = vst [vmem:[#allocation7_spill] sm:$0xff] %v3039_v26  ;;  %v3067_v42 = vrot.slane %v3049_v34, %v2111_v12  ;;  %v3075_v16 = vrot.slane %v3057_v41, %v2111_v12  ;;  %v1566_v60 = vcombine.high %v4214_v20, %v4214_v20  ;;  %v747_v49 = vsub.f32 %v691_v2, %v739_v58 }
  0x64   :  { %v3063_v11 = vrot.slane %v3043_v9, %v2113_v13  ;;  %v1171_v25 = vmul.f32 %v3039_v26, %v2358_v0  ;;  %v4217_v43 = vcombine.high %v4216_v53, %v4216_v53  ;;  %v1966_v33 = vsub.f32 %v1910_v3, %v2938_v18  ;;  %v4221_v18 = vld [vmem:[#allocation27_spill] sm:$0xff] }
  0x65   :  { %v3083_v35 = vrot.slane %v3067_v42, %v2113_v13  ;;  %v3094_v62 = vrot.slane %v3071_v21, %v2113_v13  ;;  %v3100_v2 = vrot.slane %v3075_v16, %v2113_v13  ;;  %v935_v20 = vadd.f32 %v927_v30, %v747_v49 }
  0x66   :  { %4213 = vst [vmem:[#allocation23_spill] sm:$0xff] %v3063_v11  ;;  %v3089_v55 = vrot.slane %v4217_v43, %v2111_v12  ;;  %v1415_v58 = vmul.f32 %v3063_v11, %v2363_v59  ;;  %v3103_v26 = vrot.slane %v1566_v60, %v2111_v12  ;;  %v1810_v3 = vcombine.high %v4221_v18, %v4221_v18 }
  0x67   :  { %4215 = vst [vmem:[#allocation8_spill] sm:$0xff] %v3083_v35  ;;  %4218 = vst [vmem:[#allocation24_spill] sm:$0xff] %v3094_v62  ;;  %v1227_v43 = vmul.f32 %v3094_v62, %v2389_v47  ;;  %v1471_v30 = vmul.f32 %v3100_v2, %v2394_v48  ;;  %v1659_v60 = vmul.f32 %v3083_v35, %v2384_v52 }
  0x68   :  { %4219 = vst [vmem:[#allocation13_spill] sm:$0xff] %v3100_v2  ;;  %v3107_v53 = vrot.slane %v3089_v55, %v2111_v12  ;;  %2007 = vst.msk [vmem:[%s3938_s4 + $0x6] sm:$0x3] %vm2003_vm0, %v1966_v33  ;;  %v68_v49 = vcombine.high %v2878_v22, %v2878_v22  ;;  %v991_v11 = vsub.f32 %v935_v20, %v983_v19 }
  0x69   :  { %v3125_v18 = vrot.slane %v3103_v26, %v2111_v12  ;;  %v118_v33 = vcombine.high %v2906_v39, %v2906_v39  ;;  %v312_v62 = vcombine.high %v2898_v23, %v2898_v23  ;;  %v3132_v8 = vrot.slane %v1810_v3, %v2111_v12 }
  0x6a   :  { %4220 = vst [vmem:[#allocation80_spill] sm:$0xff] %v3107_v53  ;;  %v3136_v35 = vrot.slane %v3107_v53, %v2113_v13  ;;  %v3139_v22 = vrot.slane %v68_v49, %v2111_v12  ;;  %v362_v19 = vcombine.high %v2941_v57, %v2941_v57  ;;  %v1179_v20 = vadd.f32 %v1171_v25, %v991_v11 }
  0x6b   :  { %v3145_v39 = vrot.slane %v3125_v18, %v2113_v13  ;;  %v3148_v23 = vrot.slane %v118_v33, %v2111_v12  ;;  %v3151_v3 = vrot.slane %v312_v62, %v2111_v12  ;;  %v3155_v2 = vrot.slane %v3132_v8, %v2111_v12 }
  0x6c   :  { %4222 = vst [vmem:[#allocation27_spill] sm:$0xff] %v3136_v35  ;;  %v3159_v49 = vrot.slane %v3139_v22, %v2113_v13  ;;  %v3162_v11 = vrot.slane %v362_v19, %v2111_v12  ;;  %v556_v57 = vcombine.high %v2932_v5, %v2932_v5  ;;  %v1235_v25 = vsub.f32 %v1179_v20, %v1227_v43 }
  0x6d   :  { %4223 = vst [vmem:[#allocation81_spill] sm:$0xff] %v3145_v39  ;;  %4224 = vst [vmem:[#allocation82_spill] sm:$0xff] %v3151_v3  ;;  %v1715_v33 = vmul.f32 %v3145_v39, %v2411_v10  ;;  %v3170_v62 = vrot.slane %v3148_v23, %v2113_v13  ;;  %v3174_v1 = vrot.slane %v3151_v3, %v2113_v13 }
  0x6e   :  { %4225 = vst [vmem:[#allocation83_spill] sm:$0xff] %v3155_v2  ;;  %4226 = vst [vmem:[#allocation84_spill] sm:$0xff] %v3159_v49  ;;  %v196_v53 = vmul.f32 %v3159_v49, %v2180_v32  ;;  %v3180_v19 = vrot.slane %v3162_v11, %v2113_v13  ;;  %v3183_v5 = vrot.slane %v556_v57, %v2111_v12 }
  0x6f   :  { %4227 = vst [vmem:[#allocation85_spill] sm:$0xff] %v3162_v11  ;;  %4228 = vst [vmem:[#allocation86_spill] sm:$0xff] %v3170_v62  ;;  %v606_v43 = vcombine.high %v2968_v40, %v2968_v40  ;;  %v1423_v20 = vadd.f32 %v1415_v58, %v1235_v25  ;;  %v3189_v39 = vrot.slane %v3155_v2, %v2113_v13 }
  0x70   :  { %4229 = vst [vmem:[#allocation87_spill] sm:$0xff] %v3174_v1  ;;  %4230 = vst [vmem:[#allocation88_spill] sm:$0xff] %v3180_v19  ;;  %v252_v3 = vmul.f32 %v3170_v62, %v2206_v38  ;;  %v440_v49 = vmul.f32 %v3174_v1, %v2201_v37  ;;  %v496_v11 = vmul.f32 %v3180_v19, %v2237_v45 }
  0x71   :  { %4231 = vst [vmem:[#allocation89_spill] sm:$0xff] %v3183_v5  ;;  %4232 = vst [vmem:[#allocation90_spill] sm:$0xff] %v3189_v39  ;;  %v3198_v57 = vrot.slane %v606_v43, %v2111_v12  ;;  %v3202_v40 = vrot.slane %v3183_v5, %v2113_v13  ;;  %v800_v58 = vcombine.high %v2961_v15, %v2961_v15 }
  0x72   :  { %v1479_v25 = vsub.f32 %v1423_v20, %v1471_v30  ;;  %v260_v2 = vsub.f32 %v196_v53, %v252_v3  ;;  %v850_v62 = vcombine.high %v2993_v31, %v2993_v31  ;;  %v1044_v1 = vcombine.high %v3005_v7, %v3005_v7 }
  0x73   :  { %v1903_v19 = vmul.f32 %v3136_v35, %v2496_v6  ;;  %v1959_v43 = vmul.f32 %v3189_v39, %v2532_v29  ;;  %v3215_v5 = vrot.slane %v800_v58, %v2111_v12  ;;  %v1094_v15 = vcombine.high %v3054_v24, %v3054_v24 }
  0x74   :  { %v1667_v30 = vadd.f32 %v1659_v60, %v1479_v25  ;;  %v448_v53 = vadd.f32 %v440_v49, %v260_v2  ;;  %v684_v31 = vmul.f32 %v3202_v40, %v2232_v44  ;;  %v3223_v7 = vrot.slane %v3198_v57, %v2113_v13 }
  0x75   :  { %v3226_v3 = vrot.slane %v850_v62, %v2111_v12  ;;  %v3230_v20 = vrot.slane %v3215_v5, %v2113_v13  ;;  %v3233_v58 = vrot.slane %v1044_v1, %v2111_v12  ;;  %v1288_v24 = vcombine.high %v3027_v36, %v3027_v36 }
  0x76   :  { %v1723_v2 = vsub.f32 %v1667_v30, %v1715_v33  ;;  %v504_v60 = vsub.f32 %v448_v53, %v496_v11  ;;  %v740_v49 = vmul.f32 %v3223_v7, %v2242_v46  ;;  %v3240_v25 = vrot.slane %v1094_v15, %v2111_v12 }
  0x77   :  { %4233 = vst [vmem:[#allocation91_spill] sm:$0xff] %v3230_v20  ;;  %v3244_v62 = vrot.slane %v3226_v3, %v2113_v13  ;;  %v3248_v35 = vrot.slane %v3233_v58, %v2113_v13  ;;  %v3251_v1 = vrot.slane %v1288_v24, %v2111_v12  ;;  %v1338_v36 = vcombine.high %v3057_v41, %v3057_v41 }
  0x78   :  { %v1911_v11 = vadd.f32 %v1903_v19, %v1723_v2  ;;  %v692_v33 = vadd.f32 %v684_v31, %v504_v60  ;;  %v928_v15 = vmul.f32 %v3230_v20, %v2263_v51  ;;  %v3261_v53 = vrot.slane %v3240_v25, %v2113_v13 }
  0x79   :  { %4234 = vst [vmem:[#allocation92_spill] sm:$0xff] %v3248_v35  ;;  %v984_v30 = vmul.f32 %v3244_v62, %v2284_v56  ;;  %v3265_v39 = vrot.slane %v3251_v1, %v2113_v13  ;;  %v1532_v24 = vcombine.high %v3049_v34, %v3049_v34  ;;  %v1582_v31 = vcombine.high %v3103_v26, %v3103_v26 }
  0x7a   :  { %v1967_v41 = vsub.f32 %v1911_v11, %v1959_v43  ;;  %v748_v19 = vsub.f32 %v692_v33, %v740_v49  ;;  %v1776_v2 = vcombine.high %v3089_v55, %v3089_v55  ;;  %v1172_v60 = vmul.f32 %v3248_v35, %v2358_v0 }
  0x7b   :  { %4235 = vst [vmem:[#allocation93_spill] sm:$0xff] %v3265_v39  ;;  %v3276_v20 = vrot.slane %v1338_v36, %v2111_v12  ;;  %v1228_v43 = vmul.f32 %v3261_v53, %v2389_v47  ;;  %v1826_v26 = vcombine.high %v3132_v8, %v3132_v8  ;;  %v98_v55 = vcombine.high %v2892_v28, %v2892_v28 }
  0x7c   :  { %2008 = vst.msk [vmem:[%s3938_s4 + $0x8] sm:$0x3] %vm2003_vm0, %v1967_v41  ;;  %v936_v34 = vadd.f32 %v928_v15, %v748_v19  ;;  %v1416_v49 = vmul.f32 %v3265_v39, %v2363_v59  ;;  %v3295_v11 = vrot.slane %v1532_v24, %v2111_v12  ;;  %v148_v33 = vcombine.high %v2926_v14, %v2926_v14 }
  0x7d   :  { %v3292_v36 = vrot.slane %v3276_v20, %v2113_v13  ;;  %v3300_v41 = vrot.slane %v1582_v31, %v2111_v12  ;;  %v3303_v8 = vrot.slane %v1776_v2, %v2111_v12  ;;  %v3306_v28 = vrot.slane %v98_v55, %v2113_v13 }
  0x7e   :  { %v992_v15 = vsub.f32 %v936_v34, %v984_v30  ;;  %v3312_v24 = vrot.slane %v3295_v11, %v2113_v13  ;;  %v3315_v39 = vrot.slane %v148_v33, %v2113_v13  ;;  %v342_v14 = vcombine.high %v2914_v27, %v2914_v27 }
  0x7f   :  { %4236 = vst [vmem:[#allocation94_spill] sm:$0xff] %v3292_v36  ;;  %v1472_v19 = vmul.f32 %v3292_v36, %v2394_v48  ;;  %v3321_v31 = vrot.slane %v3300_v41, %v2113_v13  ;;  %v3324_v2 = vrot.slane %v1826_v26, %v2111_v12  ;;  %v197_v34 = vmul.f32 %v3306_v28, %v2180_v32 }
  0x80   :  { %4237 = vst [vmem:[#allocation95_spill] sm:$0xff] %v3312_v24  ;;  %v1180_v30 = vadd.f32 %v1172_v60, %v992_v15  ;;  %v3330_v55 = vrot.slane %v3303_v8, %v2113_v13  ;;  %v253_v33 = vmul.f32 %v3315_v39, %v2206_v38  ;;  %v392_v27 = vcombine.high %v2965_v4, %v2965_v4 }
  0x81   :  { %4238 = vst [vmem:[#allocation96_spill] sm:$0xff] %v3321_v31  ;;  %v3337_v60 = vrot.slane %v342_v14, %v2113_v13  ;;  %v586_v12 = vcombine.high %v2955_v17, %v2955_v17  ;;  %v636_v32 = vcombine.high %v2990_v61, %v2990_v61  ;;  %v830_v26 = vcombine.high %v2982_v63, %v2982_v63 }
  0x82   :  { %4239 = vst [vmem:[#allocation97_spill] sm:$0xff] %v3330_v55  ;;  %v1236_v15 = vsub.f32 %v1180_v30, %v1228_v43  ;;  %v261_v36 = vsub.f32 %v197_v34, %v253_v33  ;;  %v3348_v35 = vrot.slane %v392_v27, %v2113_v13  ;;  %v880_v4 = vcombine.high %v3015_v50, %v3015_v50 }
  0x83   :  { %v441_v38 = vmul.f32 %v3337_v60, %v2201_v37  ;;  %v1660_v17 = vmul.f32 %v3312_v24, %v2384_v52  ;;  %v3355_v14 = vrot.slane %v586_v12, %v2113_v13  ;;  %v3358_v61 = vrot.slane %v830_v26, %v2113_v13  ;;  %v4290_v24 = vld [vmem:[#allocation60_spill] sm:$0xff] }
  0x84   :  { %v1424_v43 = vadd.f32 %v1416_v49, %v1236_v15  ;;  %v497_v37 = vmul.f32 %v3348_v35, %v2237_v45  ;;  %v3363_v30 = vrot.slane %v636_v32, %v2113_v13  ;;  %v1074_v50 = vcombine.high %v3019_v54, %v3019_v54 }
  0x85   :  { %4240 = vst [vmem:[#allocation98_spill] sm:$0xff] %v3358_v61  ;;  %v449_v63 = vadd.f32 %v441_v38, %v261_v36  ;;  %v1716_v34 = vmul.f32 %v3321_v31, %v2411_v10  ;;  %v3371_v33 = vrot.slane %v3324_v2, %v2113_v13  ;;  %v685_v36 = vmul.f32 %v3355_v14, %v2232_v44 }
  0x86   :  { %v1480_v49 = vsub.f32 %v1424_v43, %v1472_v19  ;;  %v1904_v45 = vmul.f32 %v3330_v55, %v2496_v6  ;;  %v741_v15 = vmul.f32 %v3363_v30, %v2242_v46  ;;  %v3380_v54 = vrot.slane %v880_v4, %v2113_v13 }
  0x87   :  { %4241 = vst [vmem:[#allocation99_spill] sm:$0xff] %v3371_v33  ;;  %v505_v27 = vsub.f32 %v449_v63, %v497_v37  ;;  %v929_v12 = vmul.f32 %v3358_v61, %v2263_v51  ;;  %v1124_v32 = vcombine.high %v3071_v21, %v3071_v21  ;;  %v3387_v26 = vrot.slane %v1074_v50, %v2113_v13 }
  0x88   :  { %v1668_v19 = vadd.f32 %v1660_v17, %v1480_v49  ;;  %v1318_v38 = vcombine.high %v3043_v9, %v3043_v9  ;;  %v1368_v46 = vcombine.high %v3075_v16, %v3075_v16  ;;  %v1562_v4 = vcombine.high %v3067_v42, %v3067_v42 }
  0x89   :  { %4242 = vst [vmem:[#allocation100_spill] sm:$0xff] %v3387_v26  ;;  %v693_v44 = vadd.f32 %v685_v36, %v505_v27  ;;  %v1960_v51 = vmul.f32 %v3371_v33, %v2532_v29  ;;  %v985_v21 = vmul.f32 %v3380_v54, %v2284_v56  ;;  %v1173_v37 = vmul.f32 %v3387_v26, %v2358_v0 }
  0x8a   :  { %v1724_v43 = vsub.f32 %v1668_v19, %v1716_v34  ;;  %v3402_v9 = vrot.slane %v1124_v32, %v2113_v13  ;;  %v1612_v16 = vcombine.high %v3125_v18, %v3125_v18  ;;  %v3407_v42 = vrot.slane %v1318_v38, %v2113_v13  ;;  %v4248_v19 = vld [vmem:[#allocation80_spill] sm:$0xff]  ;;  %v4249_v32 = vld [vmem:[#allocation85_spill] sm:$0xff] }
  0x8b   :  { %v749_v17 = vsub.f32 %v693_v44, %v741_v15  ;;  %v3410_v49 = vrot.slane %v1368_v46, %v2113_v13  ;;  %v3413_v34 = vrot.slane %v1562_v4, %v2113_v13  ;;  %v100_v0 = vcombine.high %v3139_v22, %v3139_v22 }
  0x8c   :  { %v1912_v63 = vadd.f32 %v1904_v45, %v1724_v43  ;;  %4243 = vst [vmem:[#allocation101_spill] sm:$0xff] %v3402_v9  ;;  %4244 = vst [vmem:[#allocation102_spill] sm:$0xff] %v3407_v42  ;;  %v150_v36 = vcombine.high %v3148_v23, %v3148_v23  ;;  %v4247_v45 = vld [vmem:[#allocation82_spill] sm:$0xff]  ;;  %v1229_v15 = vmul.f32 %v3402_v9, %v2389_v47  ;;  %v4251_v47 = vld [vmem:[#allocation89_spill] sm:$0xff] }
  0x8d   :  { %v937_v50 = vadd.f32 %v929_v12, %v749_v17  ;;  %4245 = vst [vmem:[#allocation103_spill] sm:$0xff] %v3410_v49  ;;  %4246 = vst [vmem:[#allocation104_spill] sm:$0xff] %v3413_v34  ;;  %v344_v18 = vcombine.high %v4247_v45, %v4247_v45  ;;  %v1806_v12 = vcombine.high %v4248_v19, %v4248_v19 }
  0x8e   :  { %v1968_v56 = vsub.f32 %v1912_v63, %v1960_v51  ;;  %v394_v44 = vcombine.high %v4249_v32, %v4249_v32  ;;  %v3432_v22 = vrot.slane %v100_v0, %v2113_v13  ;;  %v3435_v23 = vrot.slane %v150_v36, %v2113_v13 }
  0x8f   :  { %v993_v27 = vsub.f32 %v937_v50, %v985_v21  ;;  %v3438_v38 = vrot.slane %v344_v18, %v2113_v13  ;;  %v588_v46 = vcombine.high %v4251_v47, %v4251_v47  ;;  %v1417_v43 = vmul.f32 %v3407_v42, %v2363_v59  ;;  %v3452_v21 = vld [vmem:[%s3936_s0] sm:$0x3] }
  0x90   :  { %2009 = vst.msk [vmem:[%s3938_s4 + $0xa] sm:$0x3] %vm2003_vm0, %v1968_v56  ;;  %v3445_v51 = vrot.slane %v394_v44, %v2113_v13  ;;  %v638_v17 = vcombine.high %v3198_v57, %v3198_v57  ;;  %v198_v63 = vmul.f32 %v3452_v21, %v3432_v22  ;;  %v3466_v57 = vld [vmem:[%s3936_s0 + $0x2] sm:$0x3]  ;;  %v1473_v36 = vmul.f32 %v3410_v49, %v2394_v48  ;;  %v4255_v44 = vld [vmem:[#allocation83_spill] sm:$0xff]  ;;  %v4281_v49 = vld [vmem:[#allocation25_spill] sm:$0xff] }
  0x91   :  { %4250 = vst [vmem:[#allocation82_spill] sm:$0xff] %v3438_v38  ;;  %v1181_v4 = vadd.f32 %v1173_v37, %v993_v27  ;;  %v3459_v37 = vld [vmem:[%s3937_s1] sm:$0x3]  ;;  %v442_v50 = vmul.f32 %v3466_v57, %v3438_v38  ;;  %v3471_v56 = vrot.slane %v588_v46, %v2113_v13  ;;  %v3476_v45 = vrot.slane %v1612_v16, %v2113_v13  ;;  %v3502_v46 = vld [vmem:[%s3936_s0 + $0x4] sm:$0x3] }
  0x92   :  { %v254_v59 = vmul.f32 %v3459_v37, %v3435_v23  ;;  %v832_v18 = vcombine.high %v3215_v5, %v3215_v5  ;;  %v1661_v27 = vmul.f32 %v3413_v34, %v2384_v52  ;;  %v3483_v19 = vrot.slane %v1806_v12, %v2113_v13 }
  0x93   :  { %4252 = vst [vmem:[#allocation80_spill] sm:$0xff] %v3471_v56  ;;  %v1237_v0 = vsub.f32 %v1181_v4, %v1229_v15  ;;  %4253 = vst [vmem:[#allocation85_spill] sm:$0xff] %v3476_v45  ;;  %v3488_v15 = vld [vmem:[%s3937_s1 + $0x2] sm:$0x3]  ;;  %v1856_v47 = vcombine.high %v4255_v44, %v4255_v44  ;;  %v3495_v5 = vrot.slane %v638_v17, %v2113_v13 }
  0x94   :  { %4254 = vst [vmem:[#allocation89_spill] sm:$0xff] %v3483_v19  ;;  %v262_v32 = vsub.f32 %v198_v63, %v254_v59  ;;  %v498_v48 = vmul.f32 %v3488_v15, %v3445_v51  ;;  %v1076_v52 = vcombine.high %v3233_v58, %v3233_v58  ;;  %v686_v4 = vmul.f32 %v3502_v46, %v3471_v56 }
  0x95   :  { %v1425_v16 = vadd.f32 %v1417_v43, %v1237_v0  ;;  %4256 = vst [vmem:[#allocation83_spill] sm:$0xff] %v3495_v5  ;;  %v882_v43 = vcombine.high %v3226_v3, %v3226_v3  ;;  %v3509_v63 = vrot.slane %v832_v18, %v2113_v13  ;;  %v1717_v59 = vmul.f32 %v3476_v45, %v2411_v10 }
  0x96   :  { %v450_v12 = vadd.f32 %v442_v50, %v262_v32  ;;  %v1126_v58 = vcombine.high %v3240_v25, %v3240_v25  ;;  %v1905_v50 = vmul.f32 %v3483_v19, %v2496_v6  ;;  %v3520_v32 = vld [vmem:[%s3937_s1 + $0x4] sm:$0x3]  ;;  %v3528_v10 = vrot.slane %v1076_v52, %v2113_v13 }
  0x97   :  { %4257 = vst [vmem:[#allocation105_spill] sm:$0xff] %v3509_v63  ;;  %v1481_v17 = vsub.f32 %v1425_v16, %v1473_v36  ;;  %v742_v3 = vmul.f32 %v3520_v32, %v3495_v5  ;;  %v3525_v36 = vrot.slane %v1856_v47, %v2113_v13  ;;  %v1320_v25 = vcombine.high %v3251_v1, %v3251_v1 }
  0x98   :  { %v506_v0 = vsub.f32 %v450_v12, %v498_v48  ;;  %4259 = vst [vmem:[#allocation107_spill] sm:$0xff] %v3528_v10  ;;  %v3535_v48 = vld [vmem:[%s3936_s0 + $0x6] sm:$0x3]  ;;  %v3545_v52 = vrot.slane %v1126_v58, %v2113_v13  ;;  %v1564_v1 = vcombine.high %v3295_v11, %v3295_v11  ;;  %v3563_v11 = vld [vmem:[%s3936_s0 + $0x8] sm:$0x3] }
  0x99   :  { %v1669_v18 = vadd.f32 %v1661_v27, %v1481_v17  ;;  %4258 = vst [vmem:[#allocation106_spill] sm:$0xff] %v3525_v36  ;;  %v930_v16 = vmul.f32 %v3535_v48, %v3509_v63  ;;  %v3540_v27 = vrot.slane %v882_v43, %v2113_v13  ;;  %v1961_v47 = vmul.f32 %v3525_v36, %v2532_v29  ;;  %v4278_v63 = vld [vmem:[#allocation43_spill] sm:$0xff] }
  0x9a   :  { %v694_v6 = vadd.f32 %v686_v4, %v506_v0  ;;  %4261 = vst [vmem:[#allocation109_spill] sm:$0xff] %v3545_v52  ;;  %v3552_v4 = vld [vmem:[%s3937_s1 + $0x6] sm:$0x3]  ;;  %v1370_v17 = vcombine.high %v3276_v20, %v3276_v20  ;;  %v1614_v20 = vcombine.high %v3300_v41, %v3300_v41  ;;  %v3579_v45 = vrot.slane %v1564_v1, %v2113_v13 }
  0x9b   :  { %4260 = vst [vmem:[#allocation108_spill] sm:$0xff] %v3540_v27  ;;  %v1725_v44 = vsub.f32 %v1669_v18, %v1717_v59  ;;  %v986_v43 = vmul.f32 %v3552_v4, %v3540_v27  ;;  %v4262_v59 = vld [vmem:[#allocation15_spill] sm:$0xff]  ;;  %v3568_v18 = vrot.slane %v1320_v25, %v2113_v13  ;;  %v4267_v25 = vld [vmem:[#allocation16_spill] sm:$0xff] }
  0x9c   :  { %v750_v12 = vsub.f32 %v694_v6, %v742_v3  ;;  %v263_v0 = vmul.f32 %v3452_v21, %v4262_v59  ;;  %v1174_v3 = vmul.f32 %v3563_v11, %v3528_v10  ;;  %v4264_v6 = vld [vmem:[#allocation14_spill] sm:$0xff]  ;;  %v523_v42 = vmul.f32 %v3488_v15, %v4267_v25 }
  0x9d   :  { %v1913_v58 = vadd.f32 %v1905_v50, %v1725_v44  ;;  %4263 = vst [vmem:[#allocation15_spill] sm:$0xff] %v3568_v18  ;;  %v279_v19 = vmul.f32 %v3459_v37, %v4264_v6  ;;  %v1808_v50 = vcombine.high %v3303_v8, %v3303_v8  ;;  %v4265_v44 = vld [vmem:[#allocation17_spill] sm:$0xff]  ;;  %4266 = vst [vmem:[#allocation14_spill] sm:$0xff] %v3579_v45  ;;  %v4272_v6 = vld [vmem:[#allocation18_spill] sm:$0xff] }
  0x9e   :  { %v938_v36 = vadd.f32 %v930_v16, %v750_v12  ;;  %v507_v59 = vmul.f32 %v3466_v57, %v4265_v44  ;;  %v3586_v16 = vld [vmem:[%s3937_s1 + $0x8] sm:$0x3]  ;;  %v3591_v8 = vrot.slane %v1370_v17, %v2113_v13  ;;  %v767_v44 = vmul.f32 %v3520_v32, %v4272_v6  ;;  %v4273_v25 = vld [vmem:[#allocation42_spill] sm:$0xff] }
  0x9f   :  { %v1969_v34 = vsub.f32 %v1913_v58, %v1961_v47  ;;  %v287_v10 = vadd.f32 %v279_v19, %v263_v0  ;;  %v1230_v41 = vmul.f32 %v3586_v16, %v3545_v52  ;;  %v1858_v19 = vcombine.high %v3324_v2, %v3324_v2  ;;  %v4269_v47 = vld [vmem:[#allocation19_spill] sm:$0xff] }
  0xa0   :  { %v994_v55 = vsub.f32 %v938_v36, %v986_v43  ;;  %4268 = vst [vmem:[#allocation17_spill] sm:$0xff] %v3591_v8  ;;  %v751_v1 = vmul.f32 %v3502_v46, %v4269_v47  ;;  %v3604_v43 = vld [vmem:[%s3936_s0 + $0xa] sm:$0x3]  ;;  %v3626_v58 = vrot.slane %v1614_v20, %v2113_v13  ;;  %v4274_v47 = vld [vmem:[#allocation41_spill] sm:$0xff]  ;;  %v1255_v33 = vmul.f32 %v3586_v16, %v4281_v49  ;;  %v4287_v49 = vld [vmem:[#allocation54_spill] sm:$0xff] }
  0xa1   :  { %2010 = vst.msk [vmem:[%s3938_s4 + $0xc] sm:$0x3] %vm2003_vm0, %v1969_v34  ;;  %v515_v36 = vadd.f32 %v507_v59, %v287_v10  ;;  %v1418_v17 = vmul.f32 %v3604_v43, %v3568_v18  ;;  %v3611_v34 = vld [vmem:[%s3937_s1 + $0xa] sm:$0x3]  ;;  %v3616_v10 = vrot.slane %v1808_v50, %v2113_v13  ;;  %v264_v50 = vmul.f32 %v3452_v21, %v4273_v25 }
  0xa2   :  { %v1182_v12 = vadd.f32 %v1174_v3, %v994_v55  ;;  %v1474_v2 = vmul.f32 %v3611_v34, %v3591_v8  ;;  %v3621_v55 = vld [vmem:[%s3936_s0 + $0xc] sm:$0x3]  ;;  %4271 = vst [vmem:[#allocation19_spill] sm:$0xff] %v3626_v58  ;;  %v280_v18 = vmul.f32 %v3459_v37, %v4274_v47  ;;  %v4275_v8 = vld [vmem:[#allocation44_spill] sm:$0xff]  ;;  %v3644_v20 = vrot.slane %v1858_v19, %v2113_v13 }
  0xa3   :  { %4270 = vst [vmem:[#allocation16_spill] sm:$0xff] %v3616_v10  ;;  %v1662_v0 = vmul.f32 %v3621_v55, %v3579_v45  ;;  %v531_v3 = vadd.f32 %v523_v42, %v515_v36  ;;  %v508_v52 = vmul.f32 %v3466_v57, %v4275_v8  ;;  %v3639_v45 = vld [vmem:[%s3937_s1 + $0xc] sm:$0x3]  ;;  %v4277_v36 = vld [vmem:[#allocation21_spill] sm:$0xff]  ;;  %v3651_v8 = vld [vmem:[%s3936_s0 + $0xe] sm:$0x3] }
  0xa4   :  { %v1238_v59 = vsub.f32 %v1182_v12, %v1230_v41  ;;  %v1718_v42 = vmul.f32 %v3639_v45, %v3626_v58  ;;  %4276 = vst [vmem:[#allocation18_spill] sm:$0xff] %v3644_v20  ;;  %v995_v12 = vmul.f32 %v3535_v48, %v4277_v36  ;;  %v1906_v25 = vmul.f32 %v3651_v8, %v3616_v10  ;;  %v4282_v10 = vld [vmem:[#allocation46_spill] sm:$0xff] }
  0xa5   :  { %v759_v41 = vadd.f32 %v751_v1, %v531_v3  ;;  %v288_v47 = vadd.f32 %v280_v18, %v264_v50  ;;  %v524_v58 = vmul.f32 %v3488_v15, %v4278_v63  ;;  %v1962_v13 = vmul.f32 %v3644_v20, %v2532_v29  ;;  %v4279_v1 = vld [vmem:[#allocation20_spill] sm:$0xff]  ;;  %v4283_v63 = vld [vmem:[#allocation29_spill] sm:$0xff]  ;;  %v4284_v29 = vld [vmem:[#allocation26_spill] sm:$0xff] }
  0xa6   :  { %v1426_v6 = vadd.f32 %v1418_v17, %v1238_v59  ;;  %v1011_v3 = vmul.f32 %v3552_v4, %v4279_v1  ;;  %v4280_v17 = vld [vmem:[#allocation28_spill] sm:$0xff]  ;;  %v752_v18 = vmul.f32 %v3502_v46, %v4282_v10  ;;  %v1483_v26 = vmul.f32 %v3604_v43, %v4283_v63 }
  0xa7   :  { %v775_v19 = vadd.f32 %v767_v44, %v759_v41  ;;  %v1239_v59 = vmul.f32 %v3563_v11, %v4280_v17  ;;  %v516_v27 = vadd.f32 %v508_v52, %v288_v47  ;;  %v1499_v44 = vmul.f32 %v3611_v34, %v4284_v29  ;;  %v4285_v41 = vld [vmem:[#allocation45_spill] sm:$0xff]  ;;  %v4288_v10 = vld [vmem:[#allocation32_spill] sm:$0xff] }
  0xa8   :  { %v1482_v36 = vsub.f32 %v1426_v6, %v1474_v2  ;;  %v768_v1 = vmul.f32 %v3520_v32, %v4285_v41  ;;  %v4286_v2 = vld [vmem:[#allocation56_spill] sm:$0xff]  ;;  %v281_v52 = vmul.f32 %v3459_v37, %v4287_v49  ;;  %v509_v29 = vmul.f32 %v3466_v57, %v4290_v24  ;;  %v4295_v24 = vld [vmem:[#allocation62_spill] sm:$0xff] }
  0xa9   :  { %v1003_v50 = vadd.f32 %v995_v12, %v775_v19  ;;  %v532_v17 = vadd.f32 %v524_v58, %v516_v27  ;;  %v265_v6 = vmul.f32 %v3452_v21, %v4286_v2  ;;  %v1727_v12 = vmul.f32 %v3621_v55, %v4288_v10  ;;  %v4289_v19 = vld [vmem:[#allocation48_spill] sm:$0xff]  ;;  %v4291_v27 = vld [vmem:[#allocation59_spill] sm:$0xff]  ;;  %v4292_v2 = vld [vmem:[#allocation30_spill] sm:$0xff] }
  0xaa   :  { %v1670_v20 = vadd.f32 %v1662_v0, %v1482_v36  ;;  %v996_v63 = vmul.f32 %v3535_v48, %v4289_v19  ;;  %v525_v58 = vmul.f32 %v3488_v15, %v4291_v27  ;;  %v1743_v49 = vmul.f32 %v3639_v45, %v4292_v2  ;;  %v4294_v10 = vld [vmem:[#allocation47_spill] sm:$0xff]  ;;  %v4300_v27 = vld [vmem:[#allocation52_spill] sm:$0xff] }
  0xab   :  { %v1019_v47 = vadd.f32 %v1011_v3, %v1003_v50  ;;  %v760_v41 = vadd.f32 %v752_v18, %v532_v17  ;;  %v289_v0 = vadd.f32 %v281_v52, %v265_v6  ;;  %v4293_v3 = vld [vmem:[#allocation37_spill] sm:$0xff]  ;;  %v1012_v9 = vmul.f32 %v3552_v4, %v4294_v10  ;;  %v4296_v18 = vld [vmem:[#allocation34_spill] sm:$0xff]  ;;  %v4297_v6 = vld [vmem:[#allocation51_spill] sm:$0xff] }
  0xac   :  { %v1726_v56 = vsub.f32 %v1670_v20, %v1718_v42  ;;  %v1971_v50 = vmul.f32 %v3651_v8, %v4293_v3  ;;  %v753_v42 = vmul.f32 %v3502_v46, %v4295_v24  ;;  %v1240_v52 = vmul.f32 %v3563_v11, %v4297_v6  ;;  %v4301_v2 = vld [vmem:[#allocation64_spill] sm:$0xff]  ;;  %v4302_v10 = vld [vmem:[#allocation38_spill] sm:$0xff]  ;;  %v4306_v6 = vld [vmem:[#allocation55_spill] sm:$0xff] }
  0xad   :  { %v1247_v36 = vadd.f32 %v1239_v59, %v1019_v47  ;;  %v776_v31 = vadd.f32 %v768_v1, %v760_v41  ;;  %v517_v5 = vadd.f32 %v509_v29, %v289_v0  ;;  %v3696_v59 = vld [vmem:[%s3937_s1 + $0xe] sm:$0x3]  ;;  %v4298_v47 = vld [vmem:[#allocation49_spill] sm:$0xff]  ;;  %v997_v3 = vmul.f32 %v3535_v48, %v4301_v2 }
  0xae   :  { %v1914_v19 = vadd.f32 %v1906_v25, %v1726_v56  ;;  %v1987_v17 = vmul.f32 %v3696_v59, %v4296_v18  ;;  %v1256_v56 = vmul.f32 %v3586_v16, %v4298_v47  ;;  %v4299_v41 = vld [vmem:[#allocation61_spill] sm:$0xff]  ;;  %v266_v24 = vmul.f32 %v3452_v21, %v4302_v10 }
  0xaf   :  { %v1263_v20 = vadd.f32 %v1255_v33, %v1247_v36  ;;  %v1004_v1 = vadd.f32 %v996_v63, %v776_v31  ;;  %v533_v29 = vadd.f32 %v525_v58, %v517_v5  ;;  %v769_v33 = vmul.f32 %v3520_v32, %v4299_v41  ;;  %v4307_v41 = vld [vmem:[#allocation63_spill] sm:$0xff]  ;;  %v4309_v10 = vld [vmem:[#allocation53_spill] sm:$0xff] }
  0xb0   :  { %v1970_v25 = vsub.f32 %v1914_v19, %v1962_v13  ;;  %v1484_v36 = vmul.f32 %v3604_v43, %v4300_v27  ;;  %v4303_v13 = vld [vmem:[#allocation36_spill] sm:$0xff]  ;;  %v1728_v47 = vmul.f32 %v3621_v55, %v4306_v6  ;;  %v1013_v27 = vmul.f32 %v3552_v4, %v4307_v41  ;;  %v4312_v41 = vld [vmem:[#allocation71_spill] sm:$0xff] }
  0xb1   :  { %v1491_v0 = vadd.f32 %v1483_v26, %v1263_v20  ;;  %v1020_v31 = vadd.f32 %v1012_v9, %v1004_v1  ;;  %v761_v5 = vadd.f32 %v753_v42, %v533_v29  ;;  %v282_v63 = vmul.f32 %v3459_v37, %v4303_v13  ;;  %v4304_v26 = vld [vmem:[#allocation40_spill] sm:$0xff]  ;;  %v4305_v20 = vld [vmem:[#allocation50_spill] sm:$0xff]  ;;  %v4308_v42 = vld [vmem:[#allocation39_spill] sm:$0xff] }
  0xb2   :  { %2011 = vst.msk [vmem:[%s3938_s4 + $0xe] sm:$0x3] %vm2003_vm0, %v1970_v25  ;;  %v510_v58 = vmul.f32 %v3466_v57, %v4304_v26  ;;  %v1500_v18 = vmul.f32 %v3611_v34, %v4305_v20  ;;  %v526_v1 = vmul.f32 %v3488_v15, %v4308_v42  ;;  %v1744_v13 = vmul.f32 %v3639_v45, %v4309_v10  ;;  %v4311_v26 = vld [vmem:[#allocation66_spill] sm:$0xff] }
  0xb3   :  { %v1507_v19 = vadd.f32 %v1499_v44, %v1491_v0  ;;  %v1248_v2 = vadd.f32 %v1240_v52, %v1020_v31  ;;  %v777_v25 = vadd.f32 %v769_v33, %v761_v5  ;;  %v290_v9 = vadd.f32 %v282_v63, %v266_v24  ;;  %v4310_v44 = vld [vmem:[#allocation58_spill] sm:$0xff]  ;;  %v4313_v24 = vld [vmem:[#allocation57_spill] sm:$0xff]  ;;  %v4315_v63 = vld [vmem:[#allocation68_spill] sm:$0xff] }
  0xb4   :  { %v1972_v0 = vmul.f32 %v3651_v8, %v4310_v44  ;;  %v1241_v20 = vmul.f32 %v3563_v11, %v4311_v26  ;;  %v754_v52 = vmul.f32 %v3502_v46, %v4312_v41  ;;  %v1988_v31 = vmul.f32 %v3696_v59, %v4313_v24  ;;  %v4316_v26 = vld [vmem:[#allocation70_spill] sm:$0xff] }
  0xb5   :  { %v1735_v29 = vadd.f32 %v1727_v12, %v1507_v19  ;;  %v1264_v6 = vadd.f32 %v1256_v56, %v1248_v2  ;;  %v1005_v61 = vadd.f32 %v997_v3, %v777_v25  ;;  %v518_v38 = vadd.f32 %v510_v58, %v290_v9  ;;  %v4314_v12 = vld [vmem:[#allocation65_spill] sm:$0xff]  ;;  %v4319_v9 = vld [vmem:[#allocation3_spill] sm:$0xff] }
  0xb6   :  { %v1257_v5 = vmul.f32 %v3586_v16, %v4314_v12  ;;  %v1485_v19 = vmul.f32 %v3604_v43, %v4315_v63  ;;  %v770_v56 = vmul.f32 %v3520_v32, %v4316_v26  ;;  %v4317_v58 = vld [vmem:[#allocation73_spill] sm:$0xff] }
  0xb7   :  { %v1751_v33 = vadd.f32 %v1743_v49, %v1735_v29  ;;  %v1492_v42 = vadd.f32 %v1484_v36, %v1264_v6  ;;  %v1021_v10 = vadd.f32 %v1013_v27, %v1005_v61  ;;  %v534_v44 = vadd.f32 %v526_v1, %v518_v38  ;;  %v4318_v49 = vld [vmem:[#allocation4_spill] sm:$0xff]  ;;  %v4320_v63 = vld [vmem:[#allocation5_spill] sm:$0xff]  ;;  %v4321_v36 = vld [vmem:[#allocation67_spill] sm:$0xff] }
  0xb8   :  { %v998_v2 = vmul.f32 %v3535_v48, %v4317_v58  ;;  %v267_v25 = vmul.f32 %v3452_v21, %v4318_v49  ;;  %v283_v29 = vmul.f32 %v3459_v37, %v4319_v9  ;;  %v511_v61 = vmul.f32 %v3466_v57, %v4320_v63  ;;  %v4322_v1 = vld [vmem:[#allocation10_spill] sm:$0xff]  ;;  %v4323_v49 = vld [vmem:[#allocation72_spill] sm:$0xff] }
  0xb9   :  { %v1979_v3 = vadd.f32 %v1971_v50, %v1751_v33  ;;  %v1508_v41 = vadd.f32 %v1500_v18, %v1492_v42  ;;  %v1249_v24 = vadd.f32 %v1241_v20, %v1021_v10  ;;  %v762_v12 = vadd.f32 %v754_v52, %v534_v44  ;;  %v4324_v18 = vld [vmem:[#allocation31_spill] sm:$0xff]  ;;  %v4325_v20 = vld [vmem:[#allocation69_spill] sm:$0xff]  ;;  %v4326_v10 = vld [vmem:[#allocation6_spill] sm:$0xff] }
  0xba   :  { %v1501_v27 = vmul.f32 %v3611_v34, %v4321_v36  ;;  %v291_v50 = vadd.f32 %v283_v29, %v267_v25  ;;  %v527_v6 = vmul.f32 %v3488_v15, %v4322_v1  ;;  %v1014_v9 = vmul.f32 %v3552_v4, %v4323_v49  ;;  %v4328_v29 = vld [vmem:[#allocation35_spill] sm:$0xff]  ;;  %v4331_v49 = vld [vmem:[#allocation74_spill] sm:$0xff] }
  0xbb   :  { %v1995_v38 = vadd.f32 %v1987_v17, %v1979_v3  ;;  %v1736_v33 = vadd.f32 %v1728_v47, %v1508_v41  ;;  %v1265_v26 = vadd.f32 %v1257_v5, %v1249_v24  ;;  %v778_v58 = vadd.f32 %v770_v56, %v762_v12  ;;  %v4327_v3 = vld [vmem:[#allocation76_spill] sm:$0xff]  ;;  %v4329_v24 = vld [vmem:[#allocation33_spill] sm:$0xff] }
  0xbc   :  { %v1729_v17 = vmul.f32 %v3621_v55, %v4324_v18  ;;  %v1745_v52 = vmul.f32 %v3639_v45, %v4325_v20  ;;  %v519_v42 = vadd.f32 %v511_v61, %v291_v50  ;;  %v755_v47 = vmul.f32 %v3502_v46, %v4326_v10  ;;  %v4334_v18 = vld [vmem:[#allocation86_spill] sm:$0xff] }
  0xbd   :  { %2012 = vst.msk [vmem:[%s3939_s5] sm:$0x3] %vm2003_vm0, %v1995_v38  ;;  %v1752_v5 = vadd.f32 %v1744_v13, %v1736_v33  ;;  %v1493_v44 = vadd.f32 %v1485_v19, %v1265_v26  ;;  %v1006_v56 = vadd.f32 %v998_v2, %v778_v58  ;;  %v1242_v25 = vmul.f32 %v3563_v11, %v4327_v3  ;;  %v4330_v38 = vld [vmem:[#allocation11_spill] sm:$0xff]  ;;  %v4332_v19 = vld [vmem:[#allocation77_spill] sm:$0xff]  ;;  %v4333_v26 = vld [vmem:[#allocation22_spill] sm:$0xff] }
  0xbe   :  { %v1973_v41 = vmul.f32 %v3651_v8, %v4328_v29  ;;  %v1989_v12 = vmul.f32 %v3696_v59, %v4329_v24  ;;  %v535_v63 = vadd.f32 %v527_v6, %v519_v42  ;;  %v771_v36 = vmul.f32 %v3520_v32, %v4330_v38  ;;  %v4335_v3 = vld [vmem:[#allocation84_spill] sm:$0xff]  ;;  %v4339_v24 = vld [vmem:[#allocation87_spill] sm:$0xff]  ;;  %v4340_v38 = vld [vmem:[#allocation2_spill] sm:$0xff] }
  0xbf   :  { %v1980_v61 = vadd.f32 %v1972_v0, %v1752_v5  ;;  %v1509_v50 = vadd.f32 %v1501_v27, %v1493_v44  ;;  %v1022_v1 = vadd.f32 %v1014_v9, %v1006_v56  ;;  %v1258_v13 = vmul.f32 %v3586_v16, %v4331_v49  ;;  %v4336_v27 = vld [vmem:[#allocation75_spill] sm:$0xff]  ;;  %v4337_v44 = vld [vmem:[#allocation12_spill] sm:$0xff] }
  0xc0   :  { %v1486_v2 = vmul.f32 %v3604_v43, %v4332_v19  ;;  %v763_v33 = vadd.f32 %v755_v47, %v535_v63  ;;  %v999_v58 = vmul.f32 %v3535_v48, %v4333_v26  ;;  %v268_v20 = vmul.f32 %v3452_v21, %v4334_v18  ;;  %v4338_v47 = vld [vmem:[#allocation88_spill] sm:$0xff]  ;;  %v4342_v18 = vld [vmem:[#allocation78_spill] sm:$0xff] }
  0xc1   :  { %v1996_v6 = vadd.f32 %v1988_v31, %v1980_v61  ;;  %v1737_v42 = vadd.f32 %v1729_v17, %v1509_v50  ;;  %v1250_v10 = vadd.f32 %v1242_v25, %v1022_v1  ;;  %v284_v0 = vmul.f32 %v3459_v37, %v4335_v3  ;;  %v4341_v50 = vld [vmem:[#allocation24_spill] sm:$0xff] }
  0xc2   :  { %v1502_v9 = vmul.f32 %v3611_v34, %v4336_v27  ;;  %v779_v5 = vadd.f32 %v771_v36, %v763_v33  ;;  %v1015_v56 = vmul.f32 %v3552_v4, %v4337_v44  ;;  %v512_v29 = vmul.f32 %v3466_v57, %v4338_v47  ;;  %v4345_v27 = vld [vmem:[#allocation13_spill] sm:$0xff]  ;;  %v4346_v47 = vld [vmem:[#allocation79_spill] sm:$0xff] }
  0xc3   :  { %2013 = vst.msk [vmem:[%s3939_s5 + $0x2] sm:$0x3] %vm2003_vm0, %v1996_v6  ;;  %v1753_v31 = vadd.f32 %v1745_v52, %v1737_v42  ;;  %v1266_v17 = vadd.f32 %v1258_v13, %v1250_v10  ;;  %v292_v25 = vadd.f32 %v284_v0, %v268_v20  ;;  %v528_v63 = vmul.f32 %v3488_v15, %v4339_v24  ;;  %v4343_v13 = vld [vmem:[#allocation9_spill] sm:$0xff]  ;;  %v4344_v42 = vld [vmem:[#allocation7_spill] sm:$0xff] }
  0xc4   :  { %v1730_v36 = vmul.f32 %v3621_v55, %v4340_v38  ;;  %v1007_v61 = vadd.f32 %v999_v58, %v779_v5  ;;  %v1243_v1 = vmul.f32 %v3563_v11, %v4341_v50  ;;  %v756_v26 = vmul.f32 %v3502_v46, %v3223_v7 }
  0xc5   :  { %v1981_v49 = vadd.f32 %v1973_v41, %v1753_v31  ;;  %v1494_v19 = vadd.f32 %v1486_v2, %v1266_v17  ;;  %v520_v33 = vadd.f32 %v512_v29, %v292_v25  ;;  %v1746_v52 = vmul.f32 %v3639_v45, %v4342_v18  ;;  %v4347_v31 = vld [vmem:[#allocation23_spill] sm:$0xff]  ;;  %v4350_v18 = vld [vmem:[#allocation8_spill] sm:$0xff] }
  0xc6   :  { %v1974_v20 = vmul.f32 %v3651_v8, %v4343_v13  ;;  %v1023_v6 = vadd.f32 %v1015_v56, %v1007_v61  ;;  %v1259_v10 = vmul.f32 %v3586_v16, %v4344_v42  ;;  %v772_v41 = vmul.f32 %v3520_v32, %v3202_v40  ;;  %v4348_v17 = vld [vmem:[#allocation91_spill] sm:$0xff]  ;;  %v4349_v61 = vld [vmem:[#allocation81_spill] sm:$0xff]  ;;  %v4351_v13 = vld [vmem:[#allocation90_spill] sm:$0xff] }
  0xc7   :  { %v1997_v58 = vadd.f32 %v1989_v12, %v1981_v49  ;;  %v1510_v3 = vadd.f32 %v1502_v9, %v1494_v19  ;;  %v536_v0 = vadd.f32 %v528_v63, %v520_v33  ;;  %v1487_v7 = vmul.f32 %v3604_v43, %v4345_v27 }
  0xc8   :  { %v1251_v2 = vadd.f32 %v1243_v1, %v1023_v6  ;;  %v1000_v5 = vmul.f32 %v3535_v48, %v3244_v62  ;;  %v269_v44 = vmul.f32 %v3452_v21, %v3315_v39  ;;  %v285_v40 = vmul.f32 %v3459_v37, %v3306_v28  ;;  %v4352_v6 = vld [vmem:[#allocation92_spill] sm:$0xff] }
  0xc9   :  { %2014 = vst.msk [vmem:[%s3939_s5 + $0x4] sm:$0x3] %vm2003_vm0, %v1997_v58  ;;  %v1738_v12 = vadd.f32 %v1730_v36, %v1510_v3  ;;  %v764_v9 = vadd.f32 %v756_v26, %v536_v0  ;;  %v513_v56 = vmul.f32 %v3466_v57, %v3348_v35  ;;  %v1990_v29 = vmul.f32 %v3696_v59, %v4346_v47  ;;  %v4353_v0 = vld [vmem:[#allocation94_spill] sm:$0xff] }
  0xca   :  { %v1267_v62 = vadd.f32 %v1259_v10, %v1251_v2  ;;  %v1503_v39 = vmul.f32 %v3611_v34, %v4347_v31  ;;  %v1016_v25 = vmul.f32 %v3552_v4, %v4348_v17  ;;  %v293_v38 = vadd.f32 %v285_v40, %v269_v44  ;;  %v4356_v40 = vld [vmem:[#allocation93_spill] sm:$0xff]  ;;  %v4359_v17 = vld [vmem:[#allocation96_spill] sm:$0xff] }
  0xcb   :  { %v1754_v24 = vadd.f32 %v1746_v52, %v1738_v12  ;;  %v780_v63 = vadd.f32 %v772_v41, %v764_v9  ;;  %v529_v36 = vmul.f32 %v3488_v15, %v3337_v60  ;;  %v1731_v35 = vmul.f32 %v3621_v55, %v4349_v61  ;;  %v4354_v12 = vld [vmem:[#allocation27_spill] sm:$0xff]  ;;  %v4355_v9 = vld [vmem:[#allocation82_spill] sm:$0xff] }
  0xcc   :  { %v1495_v28 = vadd.f32 %v1487_v7, %v1267_v62  ;;  %v1244_v50 = vmul.f32 %v3563_v11, %v3261_v53  ;;  %v521_v19 = vadd.f32 %v513_v56, %v293_v38  ;;  %v757_v33 = vmul.f32 %v3502_v46, %v3363_v30 }
  0xcd   :  { %v1982_v1 = vadd.f32 %v1974_v20, %v1754_v24  ;;  %v1008_v49 = vadd.f32 %v1000_v5, %v780_v63  ;;  %v1747_v52 = vmul.f32 %v3639_v45, %v4350_v18  ;;  %v1975_v60 = vmul.f32 %v3651_v8, %v4351_v13  ;;  %v4360_v63 = vld [vmem:[#allocation101_spill] sm:$0xff]  ;;  %v4365_v13 = vld [vmem:[#allocation99_spill] sm:$0xff] }
  0xce   :  { %v1511_v26 = vadd.f32 %v1503_v39, %v1495_v28  ;;  %v1260_v42 = vmul.f32 %v3586_v16, %v4352_v6  ;;  %v537_v3 = vadd.f32 %v529_v36, %v521_v19  ;;  %v773_v53 = vmul.f32 %v3520_v32, %v3355_v14  ;;  %v4358_v39 = vld [vmem:[#allocation83_spill] sm:$0xff]  ;;  %v4361_v28 = vld [vmem:[#allocation80_spill] sm:$0xff] }
  0xcf   :  { %v1998_v10 = vadd.f32 %v1990_v29, %v1982_v1  ;;  %v1024_v58 = vadd.f32 %v1016_v25, %v1008_v49  ;;  %v1488_v30 = vmul.f32 %v3604_v43, %v4353_v0  ;;  %v270_v41 = vmul.f32 %v3452_v21, %v3435_v23  ;;  %v4357_v29 = vld [vmem:[#allocation98_spill] sm:$0xff]  ;;  %v4363_v19 = vld [vmem:[#allocation100_spill] sm:$0xff]  ;;  %v4366_v6 = vld [vmem:[#allocation103_spill] sm:$0xff] }
  0xd0   :  { %v1739_v20 = vadd.f32 %v1731_v35, %v1511_v26  ;;  %v286_v2 = vmul.f32 %v3459_v37, %v3432_v22  ;;  %v765_v7 = vadd.f32 %v757_v33, %v537_v3  ;;  %v1001_v14 = vmul.f32 %v3535_v48, %v3380_v54  ;;  %v4364_v26 = vld [vmem:[#allocation108_spill] sm:$0xff] }
  0xd1   :  { %2015 = vst.msk [vmem:[%s3939_s5 + $0x6] sm:$0x3] %vm2003_vm0, %v1998_v10  ;;  %v1252_v27 = vadd.f32 %v1244_v50, %v1024_v58  ;;  %v514_v5 = vmul.f32 %v3466_v57, %v3445_v51  ;;  %v1991_v23 = vmul.f32 %v3696_v59, %v4354_v12  ;;  %v530_v22 = vmul.f32 %v3488_v15, %v4355_v9  ;;  %v4362_v50 = vld [vmem:[#allocation95_spill] sm:$0xff]  ;;  %v4367_v58 = vld [vmem:[#allocation105_spill] sm:$0xff] }
  0xd2   :  { %v1755_v44 = vadd.f32 %v1747_v52, %v1739_v20  ;;  %v294_v21 = vadd.f32 %v286_v2, %v270_v41  ;;  %v1504_v56 = vmul.f32 %v3611_v34, %v4356_v40  ;;  %v781_v47 = vadd.f32 %v773_v53, %v765_v7  ;;  %v4368_v20 = vld [vmem:[#allocation97_spill] sm:$0xff]  ;;  %v4369_v41 = vld [vmem:[#allocation102_spill] sm:$0xff] }
  0xd3   :  { %v1268_v37 = vadd.f32 %v1260_v42, %v1252_v27  ;;  %v1017_v62 = vmul.f32 %v3552_v4, %v4357_v29  ;;  %v758_v51 = vmul.f32 %v3502_v46, %v4358_v39  ;;  %v1732_v25 = vmul.f32 %v3621_v55, %v4359_v17  ;;  %v4370_v27 = vld [vmem:[#allocation109_spill] sm:$0xff] }
  0xd4   :  { %v1983_v54 = vadd.f32 %v1975_v60, %v1755_v44  ;;  %v522_v31 = vadd.f32 %v514_v5, %v294_v21  ;;  %v1009_v24 = vadd.f32 %v1001_v14, %v781_v47  ;;  %v1245_v15 = vmul.f32 %v3563_v11, %v4360_v63  ;;  %v4371_v44 = vld [vmem:[#allocation85_spill] sm:$0xff]  ;;  %v4372_v21 = vld [vmem:[#allocation107_spill] sm:$0xff] }
  0xd5   :  { %v1496_v57 = vadd.f32 %v1488_v30, %v1268_v37  ;;  %v774_v61 = vmul.f32 %v3520_v32, %v4361_v28  ;;  %v1748_v1 = vmul.f32 %v3639_v45, %v4362_v50  ;;  %v1261_v46 = vmul.f32 %v3586_v16, %v4363_v19  ;;  %v4373_v37 = vld [vmem:[#allocation104_spill] sm:$0xff]  ;;  %v4374_v47 = vld [vmem:[#allocation17_spill] sm:$0xff] }
  0xd6   :  { %v1999_v38 = vadd.f32 %v1991_v23, %v1983_v54  ;;  %v538_v36 = vadd.f32 %v530_v22, %v522_v31  ;;  %v1025_v49 = vadd.f32 %v1017_v62, %v1009_v24  ;;  %v1002_v18 = vmul.f32 %v3535_v48, %v4364_v26  ;;  %v4375_v62 = vld [vmem:[#allocation106_spill] sm:$0xff]  ;;  %v4378_v24 = vld [vmem:[#allocation19_spill] sm:$0xff] }
  0xd7   :  { %v1512_v35 = vadd.f32 %v1504_v56, %v1496_v57  ;;  %v1976_v32 = vmul.f32 %v3651_v8, %v4365_v13  ;;  %v1489_v42 = vmul.f32 %v3604_v43, %v4366_v6  ;;  %v1018_v3 = vmul.f32 %v3552_v4, %v4367_v58  ;;  %v4377_v57 = vld [vmem:[#allocation89_spill] sm:$0xff] }
  0xd8   :  { %2016 = vst.msk [vmem:[%s3939_s5 + $0x8] sm:$0x3] %vm2003_vm0, %v1999_v38  ;;  %v766_v33 = vadd.f32 %v758_v51, %v538_v36  ;;  %v1253_v60 = vadd.f32 %v1245_v15, %v1025_v49  ;;  %v1992_v0 = vmul.f32 %v3696_v59, %v4368_v20  ;;  %v1505_v48 = vmul.f32 %v3611_v34, %v4369_v41  ;;  %v4379_v38 = vld [vmem:[#allocation14_spill] sm:$0xff] }
  0xd9   :  { %v1740_v52 = vadd.f32 %v1732_v25, %v1512_v35  ;;  %v1246_v7 = vmul.f32 %v3563_v11, %v4370_v27  ;;  %v1733_v12 = vmul.f32 %v3621_v55, %v4371_v44  ;;  %v1262_v4 = vmul.f32 %v3586_v16, %v4372_v21  ;;  %v4376_v16 = vld [vmem:[#allocation15_spill] sm:$0xff]  ;;  %v4380_v35 = vld [vmem:[#allocation18_spill] sm:$0xff] }
  0xda   :  { %v782_v10 = vadd.f32 %v774_v61, %v766_v33  ;;  %v1269_v30 = vadd.f32 %v1261_v46, %v1253_v60  ;;  %v1749_v40 = vmul.f32 %v3639_v45, %v4373_v37  ;;  %v1490_v29 = vmul.f32 %v3604_v43, %v4374_v47 }
  0xdb   :  { %v1756_v53 = vadd.f32 %v1748_v1, %v1740_v52  ;;  %v1977_v54 = vmul.f32 %v3651_v8, %v4375_v62  ;;  %v1506_v39 = vmul.f32 %v3611_v34, %v4376_v16  ;;  %v1993_v17 = vmul.f32 %v3696_v59, %v4377_v57  ;;  %v4381_v1 = vld [vmem:[#allocation16_spill] sm:$0xff] }
  0xdc   :  { %v1010_v2 = vadd.f32 %v1002_v18, %v782_v10  ;;  %v1497_v5 = vadd.f32 %v1489_v42, %v1269_v30  ;;  %v1734_v43 = vmul.f32 %v3621_v55, %v4378_v24  ;;  %v1750_v36 = vmul.f32 %v3639_v45, %v4379_v38 }
  0xdd   :  { %v1984_v14 = vadd.f32 %v1976_v32, %v1756_v53  ;;  %v1978_v50 = vmul.f32 %v3651_v8, %v4380_v35  ;;  %v1994_v49 = vmul.f32 %v3696_v59, %v4381_v1 }
  0xde   :  { %v1026_v23 = vadd.f32 %v1018_v3, %v1010_v2  ;;  %v1513_v22 = vadd.f32 %v1505_v48, %v1497_v5 }
  0xdf   :  { %v2000_v9 = vadd.f32 %v1992_v0, %v1984_v14 }
  0xe0   :  { %v1254_v56 = vadd.f32 %v1246_v7, %v1026_v23  ;;  %v1741_v11 = vadd.f32 %v1733_v12, %v1513_v22 }
  0xe1   :  { %2017 = vst.msk [vmem:[%s3939_s5 + $0xa] sm:$0x3] %vm2003_vm0, %v2000_v9 }
  0xe2   :  { %v1270_v31 = vadd.f32 %v1262_v4, %v1254_v56  ;;  %v1757_v51 = vadd.f32 %v1749_v40, %v1741_v11 }
  0xe4   :  { %v1498_v25 = vadd.f32 %v1490_v29, %v1270_v31  ;;  %v1985_v63 = vadd.f32 %v1977_v54, %v1757_v51 }
  0xe6   :  { %v1514_v15 = vadd.f32 %v1506_v39, %v1498_v25  ;;  %v2001_v28 = vadd.f32 %v1993_v17, %v1985_v63 }
  0xe8   :  { %v1742_v61 = vadd.f32 %v1734_v43, %v1514_v15  ;;  %2018 = vst.msk [vmem:[%s3939_s5 + $0xc] sm:$0x3] %vm2003_vm0, %v2001_v28 }
  0xea   :  { %v1758_v34 = vadd.f32 %v1750_v36, %v1742_v61 }
  0xec   :  { %v1986_v55 = vadd.f32 %v1978_v50, %v1758_v34 }
  0xee   :  { %v2002_v19 = vadd.f32 %v1994_v49, %v1986_v55 }
  0xf0   :  { %2019 = vst.msk [vmem:[%s3939_s5 + $0xe] sm:$0x3] %vm2003_vm0, %v2002_v19 }

// kernel: fno2d_deep_small_forward.8
= control target key start
LH: loop header
LB: loop body
LE: loop exit
PB: predicated region body
PF: predicated region fallthrough
CT: control target
= control target key end

     0   :  { %vm31_vm0 = vcmask 1042432   ;;  %v201_v2 = vmov 0.0   ;;  %v202_v5 = vmov 0   ;;  %vm27_vm1 = vcmask 23552   ;;  %s251_s0 = inlined_call_operand.vmem [shape: f32[3,512], index: 0, kind: input, shape index: {}]   ;;  %s252_s1 = inlined_call_operand.vmem [shape: f32[8,3], index: 1, kind: input, shape index: {}]   ;;  %s253_s2 = inlined_call_operand.vmem [shape: f32[8,1], index: 2, kind: input, shape index: {}]   ;;  %s254_s3 = inlined_call_operand.vmem [shape: f32[8,512], index: 3, kind: output, shape index: {}]  }
   0x1   :  { %v15_v0 = vld [vmem:[%s251_s0] sm:$0x77]  ;;  %v16_v1 = vld [vmem:[%s251_s0 + $0x8] sm:$0x77]  ;;  %104 = vmatprep.mubr.f32.mxu0 %v201_v2  ;;  %175 = vmatprep.mubr.f32.mxu1 %v201_v2 }
   0x2   :  { %v25_v3 = vcombine.high %v15_v0, %v15_v0  ;;  %v26_v4 = vcombine.high %v16_v1, %v16_v1  ;;  %198 = vset.pattern.permute.xlu0 %v202_v5  ;;  %v17_v6 = vld [vmem:[%s253_s2] sm:$0xff] }
   0x3   :  { %v14_v7 = vld [vmem:[%s252_s1] sm:$0xff]  ;;  %20 = vperm.xlu0 %198, %v17_v6  }
   0x4   :  { %190 = vmatprep.subr.msk.mxu0 %vm31_vm0, %v25_v3  ;;  %193 = vmatprep.subr.msk.mxu1 %vm31_vm0, %v26_v4 }
   0x5   :  { %191 = vmatpush1.msk.msra.mxu0 %vm31_vm0, %v15_v0  ;;  %194 = vmatpush1.msk.msra.mxu1 %vm31_vm0, %v16_v1 }
   0x6   :  { %192 = vmatmul.mubr.msk.f32.vlgmr.msra.gmra.mxu0 %vm27_vm1, %v14_v7  ;;  %195 = vmatmul.mubr.msk.f32.vlgmr.msra.gmra.mxu1 %vm27_vm1, %v14_v7 }
  0x7e   :  { %v21_v8 = vpop.permute.xlu0 %20 }
  0xc6   :  { %v106_v9 = vpop.f32.mrf.mxu0  ;;  %v177_v10 = vpop.f32.mrf.mxu1 }
  0xc7   :  { %v107_v11 = vadd.f32 %v106_v9, %v21_v8  ;;  %v178_v12 = vadd.f32 %v177_v10, %v21_v8 }
  0xc8   :  { %v108_v13 = vpop.f32.mrf.mxu0  ;;  %v179_v14 = vpop.f32.mrf.mxu1 }
  0xc9   :  { %182 = vst [vmem:[%s254_s3] sm:$0xff] %v107_v11  ;;  %184 = vst [vmem:[%s254_s3 + $0x10] sm:$0xff] %v178_v12  ;;  %v109_v15 = vadd.f32 %v108_v13, %v21_v8  ;;  %v180_v16 = vadd.f32 %v179_v14, %v21_v8 }
  0xcb   :  { %183 = vst [vmem:[%s254_s3 + $0x8] sm:$0xff] %v109_v15  ;;  %185 = vst [vmem:[%s254_s3 + $0x18] sm:$0xff] %v180_v16 }

// kernel: fno2d_deep_small_forward.9
= control target key start
LH: loop header
LB: loop body
LE: loop exit
PB: predicated region body
PF: predicated region fallthrough
CT: control target
= control target key end

     0   :  { %v569_v3 = vmov 0.0   ;;  %vm37_vm0 = vcmask 64512   ;;  %v570_v13 = vmov 0   ;;  %vm535_vm1 = vcmask 801792   ;;  %s800_s0 = inlined_call_operand.vmem [shape: f32[8,1250], index: 0, kind: input, shape index: {}]   ;;  %s801_s1 = inlined_call_operand.vmem [shape: f32[8,8], index: 1, kind: input, shape index: {}]   ;;  %s802_s2 = inlined_call_operand.vmem [shape: f32[8,1], index: 2, kind: input, shape index: {}]   ;;  %s803_s3 = inlined_call_operand.vmem [shape: f32[8,1250], index: 3, kind: input, shape index: {}]   ;;  %s804_s4 = inlined_call_operand.vmem [shape: f32[8,1250], index: 4, kind: input, shape index: {}]   ;;  %s805_s5 = inlined_call_operand.vmem [shape: f32[8,1250], index: 5, kind: output, shape index: {}]  }
   0x1   :  { %v22_v0 = vld [vmem:[%s800_s0 + $0x8] sm:$0xff]  ;;  %v24_v1 = vld [vmem:[%s800_s0 + $0x18] sm:$0xff]  ;;  %v21_v2 = vld [vmem:[%s800_s0] sm:$0xff]  ;;  %105 = vmatprep.mubr.f32.mxu0 %v569_v3  ;;  %176 = vmatprep.mubr.f32.mxu1 %v569_v3 }
   0x2   :  { %71 = vmatprep.subr.mxu0 %v22_v0  ;;  %142 = vmatprep.subr.mxu1 %v24_v1  ;;  %v23_v4 = vld [vmem:[%s800_s0 + $0x10] sm:$0xff]  ;;  %v20_v5 = vld [vmem:[%s801_s1] sm:$0xff]  ;;  %v26_v6 = vld [vmem:[%s800_s0 + $0x28] sm:$0xff] }
   0x3   :  { %72 = vmatpush1.msra.mxu0 %v21_v2  ;;  %143 = vmatpush1.msra.mxu1 %v23_v4  ;;  %v25_v7 = vld [vmem:[%s800_s0 + $0x20] sm:$0xff]  ;;  %v28_v8 = vld [vmem:[%s800_s0 + $0x38] sm:$0xff]  ;;  %v27_v9 = vld [vmem:[%s800_s0 + $0x30] sm:$0xff] }
   0x4   :  { %541 = vmatmul.mubr.msk.f32.vlgmr.msra.gmra.mxu0 %vm37_vm0, %v20_v5  ;;  %542 = vmatmul.mubr.msk.f32.vlgmr.msra.gmra.mxu1 %vm37_vm0, %v20_v5  ;;  %v30_v10 = vld [vmem:[%s800_s0 + $0x48] sm:$0xff]  ;;  %v29_v11 = vld [vmem:[%s800_s0 + $0x40] sm:$0xff]  ;;  %v398_v18 = vld [vmem:[%s803_s3 + $0x10] sm:$0xff] }
   0x5   :  { %213 = vmatprep.subr.mxu0 %v26_v6  ;;  %284 = vmatprep.subr.mxu1 %v28_v8  ;;  %v31_v12 = vld [vmem:[%s802_s2] sm:$0xff]  ;;  %v418_v22 = vld [vmem:[%s804_s4 + $0x10] sm:$0xff]  ;;  %v397_v24 = vld [vmem:[%s803_s3 + $0x8] sm:$0xff] }
   0x6   :  { %214 = vmatpush1.msra.mxu0 %v25_v7  ;;  %247 = vmatprep.mubr.f32.mxu0 %v569_v3  ;;  %v396_v16 = vld [vmem:[%s803_s3] sm:$0xff]  ;;  %v399_v26 = vld [vmem:[%s803_s3 + $0x18] sm:$0xff]  ;;  %v417_v31 = vld [vmem:[%s804_s4 + $0x8] sm:$0xff] }
   0x7   :  { %285 = vmatpush1.msra.mxu1 %v27_v9  ;;  %318 = vmatprep.mubr.f32.mxu1 %v569_v3  ;;  %v416_v20 = vld [vmem:[%s804_s4] sm:$0xff]  ;;  %v419_v38 = vld [vmem:[%s804_s4 + $0x18] sm:$0xff]  ;;  %v402_v40 = vld [vmem:[%s803_s3 + $0x30] sm:$0xff] }
   0x8   :  { %543 = vmatmul.mubr.msk.f32.vlgmr.msra.gmra.mxu0 %vm37_vm0, %v20_v5  ;;  %544 = vmatmul.mubr.msk.f32.vlgmr.msra.gmra.mxu1 %vm37_vm0, %v20_v5  ;;  %v400_v39 = vld [vmem:[%s803_s3 + $0x20] sm:$0xff]  ;;  %v422_v52 = vld [vmem:[%s804_s4 + $0x30] sm:$0xff]  ;;  %v401_v56 = vld [vmem:[%s803_s3 + $0x28] sm:$0xff] }
   0x9   :  { %355 = vmatprep.subr.mxu0 %v30_v10  ;;  %389 = vmatprep.mubr.f32.mxu0 %v569_v3  ;;  %v420_v50 = vld [vmem:[%s804_s4 + $0x20] sm:$0xff]  ;;  %v403_v58 = vld [vmem:[%s803_s3 + $0x38] sm:$0xff]  ;;  %v421_v4 = vld [vmem:[%s804_s4 + $0x28] sm:$0xff] }
   0xa   :  { %356 = vmatpush1.msra.mxu0 %v29_v11  ;;  %548 = vset.pattern.permute.xlu0 %v570_v13  ;;  %v423_v9 = vld [vmem:[%s804_s4 + $0x38] sm:$0xff] }
   0xb   :  { %34 = vperm.xlu0 %548, %v31_v12  }
   0xc   :  { %545 = vmatmul.mubr.msk.f32.vlgmr.msra.gmra.mxu0 %vm37_vm0, %v20_v5 }
  0x86   :  { %v642_v14 = vpop.permute.xlu0 %34 }
  0xc4   :  { %v107_v15 = vpop.f32.mrf.mxu0  ;;  %v178_v17 = vpop.f32.mrf.mxu1 }
  0xc5   :  { %v108_v19 = vadd.f32 %v107_v15, %v642_v14  ;;  %v179_v21 = vadd.f32 %v178_v17, %v642_v14 }
  0xc6   :  { %v109_v23 = vpop.f32.mrf.mxu0  ;;  %v180_v25 = vpop.f32.mrf.mxu1 }
  0xc7   :  { %v406_v27 = vadd.f32 %v396_v16, %v108_v19  ;;  %v408_v28 = vadd.f32 %v398_v18, %v179_v21  ;;  %v110_v29 = vadd.f32 %v109_v23, %v642_v14  ;;  %v181_v30 = vadd.f32 %v180_v25, %v642_v14 }
  0xc8   :  { %v249_v32 = vpop.f32.mrf.mxu0  ;;  %v320_v33 = vpop.f32.mrf.mxu1 }
  0xc9   :  { %v669_v34 = vadd.f32 %v416_v20, %v406_v27  ;;  %v671_v35 = vadd.f32 %v418_v22, %v408_v28  ;;  %v407_v36 = vadd.f32 %v397_v24, %v110_v29  ;;  %v409_v37 = vadd.f32 %v399_v26, %v181_v30 }
  0xca   :  { %v250_v41 = vadd.f32 %v249_v32, %v642_v14  ;;  %v321_v42 = vadd.f32 %v320_v33, %v642_v14  ;;  %v251_v43 = vpop.f32.mrf.mxu0  ;;  %v322_v44 = vpop.f32.mrf.mxu1  ;;  %v404_v32 = vld [vmem:[%s803_s3 + $0x40] sm:$0xff]  ;;  %v405_v33 = vld [vmem:[%s803_s3 + $0x48] sm:$0xff] }
  0xcb   :  { %v446_v45 = vmul.f32 0.044715, %v669_v34  ;;  %v448_v46 = vmul.f32 0.044715, %v671_v35  ;;  %v686_v47 = vadd.f32 %v417_v31, %v407_v36  ;;  %v688_v48 = vadd.f32 %v419_v38, %v409_v37 }
  0xcc   :  { %v410_v49 = vadd.f32 %v400_v39, %v250_v41  ;;  %v412_v51 = vadd.f32 %v402_v40, %v321_v42  ;;  %v252_v55 = vadd.f32 %v251_v43, %v642_v14  ;;  %v323_v57 = vadd.f32 %v322_v44, %v642_v14  ;;  %v391_v10 = vpop.f32.mrf.mxu0  ;;  %v424_v42 = vld [vmem:[%s804_s4 + $0x40] sm:$0xff]  ;;  %v425_v43 = vld [vmem:[%s804_s4 + $0x48] sm:$0xff] }
  0xcd   :  { %v456_v53 = vmul.f32 %v446_v45, %v669_v34  ;;  %v458_v54 = vmul.f32 %v448_v46, %v671_v35  ;;  %v447_v59 = vmul.f32 0.044715, %v686_v47  ;;  %v449_v60 = vmul.f32 0.044715, %v688_v48 }
  0xce   :  { %v710_v63 = vadd.f32 %v420_v50, %v410_v49  ;;  %v712_v0 = vadd.f32 %v422_v52, %v412_v51  ;;  %v411_v3 = vadd.f32 %v401_v56, %v252_v55  ;;  %v413_v5 = vadd.f32 %v403_v58, %v323_v57  ;;  %v393_v25 = vpop.f32.mrf.mxu0 }
  0xcf   :  { %v466_v61 = vmul.f32 %v456_v53, %v669_v34  ;;  %v468_v62 = vmul.f32 %v458_v54, %v671_v35  ;;  %v457_v1 = vmul.f32 %v447_v59, %v686_v47  ;;  %v459_v2 = vmul.f32 %v449_v60, %v688_v48 }
  0xd0   :  { %v450_v8 = vmul.f32 0.044715, %v710_v63  ;;  %v452_v13 = vmul.f32 0.044715, %v712_v0  ;;  %v729_v18 = vadd.f32 %v421_v4, %v411_v3  ;;  %v734_v22 = vadd.f32 %v423_v9, %v413_v5 }
  0xd1   :  { %v476_v6 = vadd.f32 %v466_v61, %v669_v34  ;;  %v478_v7 = vadd.f32 %v468_v62, %v671_v35  ;;  %v467_v11 = vmul.f32 %v457_v1, %v686_v47  ;;  %v469_v12 = vmul.f32 %v459_v2, %v688_v48 }
  0xd2   :  { %v460_v17 = vmul.f32 %v450_v8, %v710_v63  ;;  %v462_v21 = vmul.f32 %v452_v13, %v712_v0  ;;  %v451_v24 = vmul.f32 0.044715, %v729_v18  ;;  %v453_v31 = vmul.f32 0.044715, %v734_v22 }
  0xd3   :  { %v486_v15 = vmul.f32 0.7978846, %v476_v6  ;;  %v488_v16 = vmul.f32 0.7978846, %v478_v7  ;;  %v477_v19 = vadd.f32 %v467_v11, %v686_v47  ;;  %v479_v20 = vadd.f32 %v469_v12, %v688_v48 }
  0xd4   :  { %v470_v23 = vmul.f32 %v460_v17, %v710_v63  ;;  %v472_v28 = vmul.f32 %v462_v21, %v712_v0  ;;  %v461_v30 = vmul.f32 %v451_v24, %v729_v18  ;;  %v392_v37 = vadd.f32 %v391_v10, %v642_v14 }
  0xd5   :  { %549 = vtanh.f32 %v486_v15  ;;  %v487_v26 = vmul.f32 0.7978846, %v477_v19  ;;  %v489_v27 = vmul.f32 0.7978846, %v479_v20  ;;  %v394_v38 = vadd.f32 %v393_v25, %v642_v14 }
  0xd6   :  { %551 = vtanh.f32 %v488_v16  ;;  %v480_v29 = vadd.f32 %v470_v23, %v710_v63  ;;  %v482_v36 = vadd.f32 %v472_v28, %v712_v0  ;;  %v471_v40 = vmul.f32 %v461_v30, %v729_v18 }
  0xd7   :  { %553 = vtanh.f32 %v487_v26  ;;  %v463_v41 = vmul.f32 %v453_v31, %v734_v22  ;;  %v414_v45 = vadd.f32 %v404_v32, %v392_v37  ;;  %v415_v46 = vadd.f32 %v405_v33, %v394_v38 }
  0xd8   :  { %555 = vtanh.f32 %v489_v27  ;;  %v490_v39 = vmul.f32 0.7978846, %v480_v29  ;;  %v492_v44 = vmul.f32 0.7978846, %v482_v36  ;;  %v481_v14 = vadd.f32 %v471_v40, %v729_v18 }
  0xd9   :  { %v473_v49 = vmul.f32 %v463_v41, %v734_v22  ;;  %v434_v50 = vadd.f32 %v424_v42, %v414_v45  ;;  %v435_v51 = vadd.f32 %v425_v43, %v415_v46  ;;  %v436_v1 = vmul.f32 0.5, %v669_v34 }
  0xda   :  { %557 = vtanh.f32 %v490_v39  ;;  %v491_v52 = vmul.f32 0.7978846, %v481_v14  ;;  %v438_v3 = vmul.f32 0.5, %v671_v35  ;;  %v437_v9 = vmul.f32 0.5, %v686_v47 }
  0xdb   :  { %559 = vtanh.f32 %v492_v44  ;;  %v483_v53 = vadd.f32 %v473_v49, %v734_v22  ;;  %v454_v54 = vmul.f32 0.044715, %v434_v50  ;;  %v455_v55 = vmul.f32 0.044715, %v435_v51 }
  0xdc   :  { %561 = vtanh.f32 %v491_v52  ;;  %v439_v34 = vmul.f32 0.5, %v688_v48  ;;  %v440_v20 = vmul.f32 0.5, %v710_v63  ;;  %v442_v48 = vmul.f32 0.5, %v712_v0 }
  0xdd   :  { %v493_v56 = vmul.f32 0.7978846, %v483_v53  ;;  %v464_v57 = vmul.f32 %v454_v54, %v434_v50  ;;  %v465_v58 = vmul.f32 %v455_v55, %v435_v51  ;;  %v441_v63 = vmul.f32 0.5, %v729_v18 }
  0xde   :  { %v443_v29 = vmul.f32 0.5, %v734_v22  ;;  %v444_v33 = vmul.f32 0.5, %v434_v50  ;;  %v445_v37 = vmul.f32 0.5, %v435_v51 }
  0xdf   :  { %563 = vtanh.f32 %v493_v56  ;;  %v474_v60 = vmul.f32 %v464_v57, %v434_v50  ;;  %v475_v61 = vmul.f32 %v465_v58, %v435_v51 }
  0xe1   :  { %v484_v5 = vadd.f32 %v474_v60, %v434_v50  ;;  %v485_v6 = vadd.f32 %v475_v61, %v435_v51 }
  0xe2   :  { %v550_v59 = vpop.eup %549 }
  0xe3   :  { %v552_v62 = vpop.eup %551  ;;  %v506_v2 = vadd.f32 1.0, %v550_v59  ;;  %v494_v13 = vmul.f32 0.7978846, %v484_v5  ;;  %v495_v15 = vmul.f32 0.7978846, %v485_v6 }
  0xe4   :  { %v508_v4 = vadd.f32 1.0, %v552_v62  ;;  %v554_v7 = vpop.eup %553 }
  0xe5   :  { %v516_v8 = vmul.f32 %v506_v2, %v436_v1  ;;  %v556_v10 = vpop.eup %555  ;;  %v507_v12 = vadd.f32 1.0, %v554_v7  ;;  %565 = vtanh.f32 %v494_v13 }
  0xe6   :  { %v518_v11 = vmul.f32 %v508_v4, %v438_v3  ;;  %v509_v16 = vadd.f32 1.0, %v556_v10  ;;  %567 = vtanh.f32 %v495_v15 }
  0xe7   :  { %526 = vst [vmem:[%s805_s5] sm:$0xff] %v516_v8  ;;  %v558_v35 = vpop.eup %557  ;;  %v517_v17 = vmul.f32 %v507_v12, %v437_v9 }
  0xe8   :  { %528 = vst [vmem:[%s805_s5 + $0x10] sm:$0xff] %v518_v11  ;;  %v560_v47 = vpop.eup %559  ;;  %v519_v19 = vmul.f32 %v509_v16, %v439_v34  ;;  %v510_v21 = vadd.f32 1.0, %v558_v35 }
  0xe9   :  { %527 = vst [vmem:[%s805_s5 + $0x8] sm:$0xff] %v517_v17  ;;  %v512_v23 = vadd.f32 1.0, %v560_v47  ;;  %v562_v25 = vpop.eup %561 }
  0xea   :  { %529 = vst [vmem:[%s805_s5 + $0x18] sm:$0xff] %v519_v19  ;;  %v520_v24 = vmul.f32 %v510_v21, %v440_v20  ;;  %v511_v27 = vadd.f32 1.0, %v562_v25 }
  0xeb   :  { %v522_v26 = vmul.f32 %v512_v23, %v442_v48 }
  0xec   :  { %530 = vst [vmem:[%s805_s5 + $0x20] sm:$0xff] %v520_v24  ;;  %v564_v28 = vpop.eup %563  ;;  %v521_v0 = vmul.f32 %v511_v27, %v441_v63 }
  0xed   :  { %532 = vst [vmem:[%s805_s5 + $0x30] sm:$0xff] %v522_v26  ;;  %v513_v30 = vadd.f32 1.0, %v564_v28 }
  0xee   :  { %531 = vst [vmem:[%s805_s5 + $0x28] sm:$0xff] %v521_v0 }
  0xef   :  { %v523_v31 = vmul.f32 %v513_v30, %v443_v29 }
  0xf1   :  { %533 = vst [vmem:[%s805_s5 + $0x38] sm:$0xff] %v523_v31 }
  0xf2   :  { %v566_v18 = vpop.eup %565 }
  0xf3   :  { %v568_v32 = vpop.eup %567  ;;  %v514_v36 = vadd.f32 1.0, %v566_v18 }
  0xf4   :  { %v515_v38 = vadd.f32 1.0, %v568_v32 }
  0xf5   :  { %v524_v39 = vmul.f32 %v514_v36, %v444_v33 }
  0xf6   :  { %v525_v40 = vmul.f32 %v515_v38, %v445_v37 }
  0xf7   :  { %534 = vst [vmem:[%s805_s5 + $0x40] sm:$0xff] %v524_v39 }
  0xf8   :  { %536 = vst.msk [vmem:[%s805_s5 + $0x48] sm:$0xff] %vm535_vm1, %v525_v40 }

// kernel: fno2d_deep_small_forward.13
= control target key start
LH: loop header
LB: loop body
LE: loop exit
PB: predicated region body
PF: predicated region fallthrough
CT: control target
= control target key end

     0   :  { %v2543_v3 = vmov 0.0   ;;  %vm48_vm0 = vcmask 64512   ;;  %v1844_v13 = vmov 0   ;;  %vm1283_vm1 = vcmask 261120   ;;  %s2534_s0 = inlined_call_operand.vmem [shape: f32[8,1250], index: 0, kind: input, shape index: {}]   ;;  %s2535_s2 = inlined_call_operand.vmem [shape: f32[8,8], index: 2, kind: input, shape index: {}]   ;;  %s2536_s3 = inlined_call_operand.vmem [shape: f32[8,1], index: 3, kind: input, shape index: {}]   ;;  %s2537_s5 = inlined_call_operand.vmem [shape: f32[32,1], index: 5, kind: input, shape index: {}]   ;;  %s2538_s7 = inlined_call_operand.<no memory space> [shape: f32[1,1], index: 7, kind: input, shape index: {}]   ;;  %s2539_s1 = inlined_call_operand.vmem [shape: f32[8,1250], index: 1, kind: input, shape index: {}]   ;;  %s2540_s4 = inlined_call_operand.vmem [shape: f32[32,8], index: 4, kind: input, shape index: {}]   ;;  %s2541_s6 = inlined_call_operand.vmem [shape: f32[1,32], index: 6, kind: input, shape index: {}]   ;;  %s2542_s8 = inlined_call_operand.vmem [shape: f32[1,1250], index: 8, kind: output, shape index: {}]  }
   0x1   :  { %v33_v0 = vld [vmem:[%s2534_s0 + $0x8] sm:$0xff]  ;;  %v35_v1 = vld [vmem:[%s2534_s0 + $0x18] sm:$0xff]  ;;  %v32_v2 = vld [vmem:[%s2534_s0] sm:$0xff]  ;;  %116 = vmatprep.mubr.f32.mxu0 %v2543_v3  ;;  %187 = vmatprep.mubr.f32.mxu1 %v2543_v3  ;;  %v13_v17 = vstv %s2538_s7 }
   0x2   :  { %82 = vmatprep.subr.mxu0 %v33_v0  ;;  %153 = vmatprep.subr.mxu1 %v35_v1  ;;  %v34_v4 = vld [vmem:[%s2534_s0 + $0x10] sm:$0xff]  ;;  %v31_v5 = vld [vmem:[%s2535_s2] sm:$0xff]  ;;  %v37_v6 = vld [vmem:[%s2534_s0 + $0x28] sm:$0xff]  ;;  %14 = vst [vmem:[#allocation2] sm:$0x1] %v13_v17 }
   0x3   :  { %83 = vmatpush1.msra.mxu0 %v32_v2  ;;  %154 = vmatpush1.msra.mxu1 %v34_v4  ;;  %v39_v7 = vld [vmem:[%s2534_s0 + $0x38] sm:$0xff]  ;;  %v36_v8 = vld [vmem:[%s2534_s0 + $0x20] sm:$0xff]  ;;  %v38_v9 = vld [vmem:[%s2534_s0 + $0x30] sm:$0xff] }
   0x4   :  { %1728 = vmatmul.mubr.msk.f32.vlgmr.msra.gmra.mxu0 %vm48_vm0, %v31_v5  ;;  %1729 = vmatmul.mubr.msk.f32.vlgmr.msra.gmra.mxu1 %vm48_vm0, %v31_v5  ;;  %v41_v10 = vld [vmem:[%s2534_s0 + $0x48] sm:$0xff]  ;;  %v40_v11 = vld [vmem:[%s2534_s0 + $0x40] sm:$0xff]  ;;  %v434_v14 = vld [vmem:[%s2537_s5 + $0x18] sm:$0xff] }
   0x5   :  { %224 = vmatprep.subr.mxu0 %v37_v6  ;;  %295 = vmatprep.subr.mxu1 %v39_v7  ;;  %v42_v12 = vld [vmem:[%s2536_s3] sm:$0xff]  ;;  %v433_v16 = vld [vmem:[%s2537_s5 + $0x10] sm:$0xff]  ;;  %v432_v18 = vld [vmem:[%s2537_s5 + $0x8] sm:$0xff] }
   0x6   :  { %225 = vmatpush1.msra.mxu0 %v36_v8  ;;  %258 = vmatprep.mubr.f32.mxu0 %v2543_v3  ;;  %v431_v15 = vld [vmem:[%s2537_s5] sm:$0xff]  ;;  %v409_v25 = vld [vmem:[%s2539_s1 + $0x10] sm:$0xff]  ;;  %v408_v27 = vld [vmem:[%s2539_s1 + $0x8] sm:$0xff] }
   0x7   :  { %296 = vmatpush1.msra.mxu1 %v38_v9  ;;  %329 = vmatprep.mubr.f32.mxu1 %v2543_v3  ;;  %v410_v29 = vld [vmem:[%s2539_s1 + $0x18] sm:$0xff]  ;;  %v407_v30 = vld [vmem:[%s2539_s1] sm:$0xff]  ;;  %v412_v41 = vld [vmem:[%s2539_s1 + $0x28] sm:$0xff] }
   0x8   :  { %1730 = vmatmul.mubr.msk.f32.vlgmr.msra.gmra.mxu0 %vm48_vm0, %v31_v5  ;;  %1731 = vmatmul.mubr.msk.f32.vlgmr.msra.gmra.mxu1 %vm48_vm0, %v31_v5  ;;  %v414_v43 = vld [vmem:[%s2539_s1 + $0x38] sm:$0xff]  ;;  %v1982_v44 = vld [vmem:[%s2540_s4] sm:$0xff]  ;;  %v413_v49 = vld [vmem:[%s2539_s1 + $0x30] sm:$0xff] }
   0x9   :  { %366 = vmatprep.subr.mxu0 %v41_v10  ;;  %400 = vmatprep.mubr.f32.mxu0 %v2543_v3  ;;  %v1273_v19 = vld [vmem:[#allocation2] sm:$0x1]  ;;  %v416_v55 = vld [vmem:[%s2539_s1 + $0x48] sm:$0xff]  ;;  %v429_v60 = vld [vmem:[%s2540_s4 + $0x10] sm:$0xff] }
   0xa   :  { %367 = vmatpush1.msra.mxu0 %v40_v11  ;;  %1761 = vset.pattern.permute.xlu0 %v1844_v13  ;;  %v411_v45 = vld [vmem:[%s2539_s1 + $0x20] sm:$0xff]  ;;  %v428_v56 = vld [vmem:[%s2540_s4 + $0x8] sm:$0xff]  ;;  %v430_v61 = vld [vmem:[%s2540_s4 + $0x18] sm:$0xff] }
   0xb   :  { %45 = vperm.xlu0 %1761, %v42_v12   ;;  %531 = vmatprep.mubr.f32.mxu1 %v2543_v3  ;;  %v415_v63 = vld [vmem:[%s2539_s1 + $0x40] sm:$0xff] }
   0xc   :  { %1732 = vmatmul.mubr.msk.f32.vlgmr.msra.gmra.mxu0 %vm48_vm0, %v31_v5  ;;  %1762 = vset.pattern.permute.xlu1 %v1844_v13 }
   0xd   :  { %620 = vmatprep.mubr.f32.mxu0 %v2543_v3  ;;  %447 = vperm.xlu1 %1762, %v433_v16  }
   0xf   :  { %452 = vperm.xlu0 %1761, %v434_v14  }
  0x11   :  { %442 = vperm.xlu1 %1762, %v432_v18  }
  0x13   :  { %437 = vperm.xlu0 %1761, %v431_v15  }
  0x15   :  { %1276 = vperm.xlu1 %1762, %v1273_v19  }
  0x86   :  { %v1954_v20 = vpop.permute.xlu0 %45 }
  0x88   :  { %v2057_v2 = vpop.permute.xlu1 %447 }
  0x8a   :  { %v2055_v1 = vpop.permute.xlu0 %452 }
  0x8c   :  { %v2063_v10 = vpop.permute.xlu1 %442 }
  0x8e   :  { %v2059_v4 = vpop.permute.xlu0 %437 }
  0xc4   :  { %v118_v21 = vpop.f32.mrf.mxu0  ;;  %v189_v22 = vpop.f32.mrf.mxu1 }
  0xc5   :  { %v190_v23 = vadd.f32 %v189_v22, %v1954_v20  ;;  %v119_v24 = vadd.f32 %v118_v21, %v1954_v20 }
  0xc6   :  { %v120_v26 = vpop.f32.mrf.mxu0  ;;  %v191_v28 = vpop.f32.mrf.mxu1 }
  0xc7   :  { %v121_v31 = vadd.f32 %v120_v26, %v1954_v20  ;;  %v192_v32 = vadd.f32 %v191_v28, %v1954_v20  ;;  %v419_v35 = vadd.f32 %v409_v25, %v190_v23  ;;  %v417_v38 = vadd.f32 %v407_v30, %v119_v24 }
  0xc8   :  { %v260_v33 = vpop.f32.mrf.mxu0  ;;  %v331_v34 = vpop.f32.mrf.mxu1 }
  0xc9   :  { %v418_v36 = vadd.f32 %v408_v27, %v121_v31  ;;  %v420_v37 = vadd.f32 %v410_v29, %v192_v32  ;;  %v261_v39 = vadd.f32 %v260_v33, %v1954_v20  ;;  %v332_v46 = vadd.f32 %v331_v34, %v1954_v20 }
  0xca   :  { %v262_v40 = vpop.f32.mrf.mxu0  ;;  %v333_v42 = vpop.f32.mrf.mxu1 }
  0xcb   :  { %v263_v47 = vadd.f32 %v262_v40, %v1954_v20  ;;  %v334_v48 = vadd.f32 %v333_v42, %v1954_v20  ;;  %497 = vmatprep.subr.mxu1 %v418_v36  ;;  %586 = vmatprep.subr.mxu0 %v420_v37  ;;  %v421_v53 = vadd.f32 %v411_v45, %v261_v39 }
  0xcc   :  { %v402_v50 = vpop.f32.mrf.mxu0  ;;  %498 = vmatpush1.msra.mxu1 %v417_v38  ;;  %587 = vmatpush1.msra.mxu0 %v419_v35  ;;  %v423_v57 = vadd.f32 %v413_v49, %v332_v46 }
  0xcd   :  { %v422_v51 = vadd.f32 %v412_v41, %v263_v47  ;;  %v424_v52 = vadd.f32 %v414_v43, %v334_v48  ;;  %1733 = vmatmul.mubr.msk.f32.vlgmr.msra.gmra.mxu1 %vm48_vm0, %v1982_v44  ;;  %1737 = vmatmul.mubr.msk.f32.vlgmr.msra.gmra.mxu0 %vm48_vm0, %v1982_v44  ;;  %v403_v62 = vadd.f32 %v402_v50, %v1954_v20 }
  0xce   :  { %v404_v54 = vpop.f32.mrf.mxu0  ;;  %537 = vmatprep.mubr.f32.mxu1 %v2543_v3  ;;  %626 = vmatprep.mubr.f32.mxu0 %v2543_v3 }
  0xcf   :  { %v405_v58 = vadd.f32 %v404_v54, %v1954_v20  ;;  %675 = vmatprep.subr.mxu1 %v422_v51  ;;  %764 = vmatprep.subr.mxu0 %v424_v52  ;;  %v425_v0 = vadd.f32 %v415_v63, %v403_v62 }
  0xd0   :  { %676 = vmatpush1.msra.mxu1 %v421_v53  ;;  %765 = vmatpush1.msra.mxu0 %v423_v57 }
  0xd1   :  { %v426_v59 = vadd.f32 %v416_v55, %v405_v58  ;;  %1734 = vmatmul.mubr.msk.f32.gmra.mxu1 %vm48_vm0, %v428_v56  ;;  %1738 = vmatmul.mubr.msk.f32.gmra.mxu0 %vm48_vm0, %v428_v56 }
  0xd2   :  { %543 = vmatprep.mubr.f32.mxu1 %v2543_v3  ;;  %632 = vmatprep.mubr.f32.mxu0 %v2543_v3 }
  0xd3   :  { %853 = vmatprep.subr.mxu1 %v426_v59 }
  0xd5   :  { %1735 = vmatmul.mubr.msk.f32.gmra.mxu1 %vm48_vm0, %v429_v60  ;;  %1739 = vmatmul.mubr.msk.f32.gmra.mxu0 %vm48_vm0, %v429_v60 }
  0xd6   :  { %549 = vmatprep.mubr.f32.mxu1 %v2543_v3  ;;  %638 = vmatprep.mubr.f32.mxu0 %v2543_v3 }
  0xd9   :  { %1736 = vmatmul.mubr.msk.f32.gmra.mxu1 %vm48_vm0, %v430_v61  ;;  %1740 = vmatmul.mubr.msk.f32.gmra.mxu0 %vm48_vm0, %v430_v61 }
  0xda   :  { %709 = vmatprep.mubr.f32.mxu1 %v2543_v3  ;;  %798 = vmatprep.mubr.f32.mxu0 %v2543_v3 }
  0xdd   :  { %1741 = vmatmul.mubr.msk.f32.vlgmr.msra.gmra.mxu1 %vm48_vm0, %v1982_v44  ;;  %1745 = vmatmul.mubr.msk.f32.vlgmr.msra.gmra.mxu0 %vm48_vm0, %v1982_v44 }
  0xde   :  { %854 = vmatpush1.msra.mxu1 %v425_v0  ;;  %715 = vmatprep.mubr.f32.mxu1 %v2543_v3 }
  0xdf   :  { %804 = vmatprep.mubr.f32.mxu0 %v2543_v3 }
  0xe1   :  { %1742 = vmatmul.mubr.msk.f32.gmra.mxu1 %vm48_vm0, %v428_v56  ;;  %1746 = vmatmul.mubr.msk.f32.gmra.mxu0 %vm48_vm0, %v428_v56 }
  0xe2   :  { %721 = vmatprep.mubr.f32.mxu1 %v2543_v3  ;;  %810 = vmatprep.mubr.f32.mxu0 %v2543_v3 }
  0xe5   :  { %1743 = vmatmul.mubr.msk.f32.gmra.mxu1 %vm48_vm0, %v429_v60  ;;  %1747 = vmatmul.mubr.msk.f32.gmra.mxu0 %vm48_vm0, %v429_v60 }
  0xe6   :  { %727 = vmatprep.mubr.f32.mxu1 %v2543_v3  ;;  %816 = vmatprep.mubr.f32.mxu0 %v2543_v3 }
  0xe9   :  { %1744 = vmatmul.mubr.msk.f32.gmra.mxu1 %vm48_vm0, %v430_v61  ;;  %1748 = vmatmul.mubr.msk.f32.gmra.mxu0 %vm48_vm0, %v430_v61 }
  0xea   :  { %887 = vmatprep.mubr.f32.mxu1 %v2543_v3  ;;  %1351 = vmatprep.mubr.f32.mxu0 %v2543_v3 }
  0xed   :  { %1749 = vmatmul.mubr.msk.f32.vlgmr.msra.gmra.mxu1 %vm48_vm0, %v1982_v44 }
  0xee   :  { %893 = vmatprep.mubr.f32.mxu1 %v2543_v3 }
  0xf1   :  { %1750 = vmatmul.mubr.msk.f32.gmra.mxu1 %vm48_vm0, %v428_v56 }
  0xf2   :  { %899 = vmatprep.mubr.f32.mxu1 %v2543_v3 }
  0xf5   :  { %1751 = vmatmul.mubr.msk.f32.gmra.mxu1 %vm48_vm0, %v429_v60 }
  0xf6   :  { %905 = vmatprep.mubr.f32.mxu1 %v2543_v3 }
  0xf9   :  { %1752 = vmatmul.mubr.msk.f32.gmra.mxu1 %vm48_vm0, %v430_v61 }
  0xfa   :  { %1493 = vmatprep.mubr.f32.mxu1 %v2543_v3 }
 0x18d   :  { %v533_v5 = vpop.f32.mrf.mxu1  ;;  %v622_v7 = vpop.f32.mrf.mxu0 }
 0x18e   :  { %v534_v6 = vadd.f32 %v533_v5, %v2059_v4  ;;  %v623_v8 = vadd.f32 %v622_v7, %v2059_v4 }
 0x18f   :  { %v535_v9 = vpop.f32.mrf.mxu1  ;;  %v624_v11 = vpop.f32.mrf.mxu0 }
 0x190   :  { %v952_v13 = vmul.f32 0.044715, %v534_v6  ;;  %v954_v14 = vmul.f32 0.044715, %v623_v8  ;;  %v2066_v15 = vadd.f32 %v535_v9, %v2059_v4  ;;  %v2072_v18 = vadd.f32 %v624_v11, %v2059_v4 }
 0x191   :  { %v539_v12 = vpop.f32.mrf.mxu1  ;;  %v628_v17 = vpop.f32.mrf.mxu0  ;;  %v2090_v34 = vmul.f32 0.5, %v534_v6  ;;  %v2099_v39 = vmul.f32 0.5, %v623_v8 }
 0x192   :  { %v2069_v16 = vadd.f32 %v539_v12, %v2063_v10  ;;  %v2075_v19 = vadd.f32 %v628_v17, %v2063_v10  ;;  %v992_v25 = vmul.f32 %v952_v13, %v534_v6  ;;  %v994_v26 = vmul.f32 %v954_v14, %v623_v8 }
 0x193   :  { %v541_v20 = vpop.f32.mrf.mxu1  ;;  %v630_v21 = vpop.f32.mrf.mxu0  ;;  %v953_v27 = vmul.f32 0.044715, %v2066_v15  ;;  %v955_v30 = vmul.f32 0.044715, %v2072_v18  ;;  %2560 = vst [vmem:[#allocation5_spill] sm:$0xff] %v2090_v34  ;;  %v2097_v38 = vmul.f32 0.5, %v2066_v15 }
 0x194   :  { %2558 = vst [vmem:[#allocation3_spill] sm:$0xff] %v2075_v19  ;;  %v962_v22 = vmul.f32 0.044715, %v2069_v16  ;;  %v964_v23 = vmul.f32 0.044715, %v2075_v19  ;;  %v2085_v31 = vadd.f32 %v541_v20, %v2063_v10  ;;  %v2093_v35 = vadd.f32 %v630_v21, %v2063_v10  ;;  %2562 = vst [vmem:[#allocation7_spill] sm:$0xff] %v2099_v39 }
 0x195   :  { %v545_v24 = vpop.f32.mrf.mxu1  ;;  %v634_v29 = vpop.f32.mrf.mxu0  ;;  %2561 = vst [vmem:[#allocation6_spill] sm:$0xff] %v2097_v38  ;;  %v2105_v44 = vmul.f32 0.5, %v2072_v18  ;;  %v1032_v45 = vmul.f32 %v992_v25, %v534_v6  ;;  %v1034_v46 = vmul.f32 %v994_v26, %v623_v8  ;;  %v2108_v47 = vmul.f32 %v953_v27, %v2066_v15 }
 0x196   :  { %v2081_v28 = vadd.f32 %v545_v24, %v2057_v2  ;;  %v2088_v32 = vadd.f32 %v634_v29, %v2057_v2  ;;  %v1002_v40 = vmul.f32 %v962_v22, %v2069_v16  ;;  %v1004_v41 = vmul.f32 %v964_v23, %v2075_v19 }
 0x197   :  { %v547_v33 = vpop.f32.mrf.mxu1  ;;  %v636_v37 = vpop.f32.mrf.mxu0  ;;  %2563 = vst [vmem:[#allocation8_spill] sm:$0xff] %v2105_v44  ;;  %v2114_v50 = vmul.f32 %v955_v30, %v2072_v18  ;;  %v963_v51 = vmul.f32 0.044715, %v2085_v31  ;;  %v965_v55 = vmul.f32 0.044715, %v2093_v35  ;;  %v2135_v5 = vadd.f32 %v1032_v45, %v534_v6 }
 0x198   :  { %2559 = vst [vmem:[#allocation4_spill] sm:$0xff] %v2088_v32  ;;  %v972_v36 = vmul.f32 0.044715, %v2081_v28  ;;  %v974_v42 = vmul.f32 0.044715, %v2088_v32  ;;  %v2118_v52 = vadd.f32 %v547_v33, %v2057_v2  ;;  %v2126_v57 = vadd.f32 %v636_v37, %v2057_v2 }
 0x199   :  { %v551_v43 = vpop.f32.mrf.mxu1  ;;  %v640_v49 = vpop.f32.mrf.mxu0  ;;  %v1042_v60 = vmul.f32 %v1002_v40, %v2069_v16  ;;  %v1044_v61 = vmul.f32 %v1004_v41, %v2075_v19  ;;  %v2144_v13 = vadd.f32 %v1034_v46, %v623_v8  ;;  %v2152_v21 = vmul.f32 %v963_v51, %v2085_v31 }
 0x19a   :  { %v2111_v48 = vadd.f32 %v551_v43, %v2055_v1  ;;  %v2121_v53 = vadd.f32 %v640_v49, %v2055_v1  ;;  %v1012_v56 = vmul.f32 %v972_v36, %v2081_v28  ;;  %v1014_v62 = vmul.f32 %v974_v42, %v2088_v32 }
 0x19b   :  { %v553_v54 = vpop.f32.mrf.mxu1  ;;  %v642_v59 = vpop.f32.mrf.mxu0  ;;  %2566 = vst [vmem:[#allocation11_spill] sm:$0xff] %v2144_v13  ;;  %v973_v14 = vmul.f32 0.044715, %v2118_v52  ;;  %v2155_v22 = vmul.f32 %v965_v55, %v2093_v35  ;;  %v975_v24 = vmul.f32 0.044715, %v2126_v57  ;;  %v2160_v25 = vadd.f32 %v1042_v60, %v2069_v16 }
 0x19c   :  { %2564 = vst [vmem:[#allocation9_spill] sm:$0xff] %v2121_v53  ;;  %v982_v58 = vmul.f32 0.044715, %v2111_v48  ;;  %v2133_v63 = vadd.f32 %v553_v54, %v2055_v1  ;;  %v984_v7 = vmul.f32 0.044715, %v2121_v53  ;;  %v2139_v9 = vadd.f32 %v642_v59, %v2055_v1 }
 0x19d   :  { %v711_v0 = vpop.f32.mrf.mxu1  ;;  %v800_v12 = vpop.f32.mrf.mxu0  ;;  %v1052_v23 = vmul.f32 %v1012_v56, %v2081_v28  ;;  %v2163_v26 = vadd.f32 %v1044_v61, %v2075_v19  ;;  %v1054_v27 = vmul.f32 %v1014_v62, %v2088_v32  ;;  %v2174_v42 = vmul.f32 %v973_v14, %v2118_v52 }
 0x19e   :  { %v2142_v11 = vadd.f32 %v711_v0, %v2059_v4  ;;  %v1022_v17 = vmul.f32 %v982_v58, %v2111_v48  ;;  %v2149_v20 = vadd.f32 %v800_v12, %v2059_v4  ;;  %v983_v29 = vmul.f32 0.044715, %v2133_v63 }
 0x19f   :  { %v713_v6 = vpop.f32.mrf.mxu1  ;;  %v802_v8 = vpop.f32.mrf.mxu0  ;;  %v1024_v33 = vmul.f32 %v984_v7, %v2121_v53  ;;  %v985_v36 = vmul.f32 0.044715, %v2139_v9  ;;  %v2182_v51 = vadd.f32 %v1052_v23, %v2081_v28  ;;  %v2185_v54 = vmul.f32 %v975_v24, %v2126_v57 }
 0x1a0   :  { %2565 = vst [vmem:[#allocation10_spill] sm:$0xff] %v2142_v11  ;;  %2567 = vst [vmem:[#allocation12_spill] sm:$0xff] %v2149_v20  ;;  %v956_v37 = vmul.f32 0.044715, %v2142_v11  ;;  %v1062_v43 = vmul.f32 %v1022_v17, %v2111_v48  ;;  %v958_v45 = vmul.f32 0.044715, %v2149_v20  ;;  %v2188_v55 = vadd.f32 %v713_v6, %v2059_v4 }
 0x1a1   :  { %v717_v30 = vpop.f32.mrf.mxu1  ;;  %v806_v41 = vpop.f32.mrf.mxu0  ;;  %v2192_v59 = vadd.f32 %v1054_v27, %v2088_v32  ;;  %v1023_v60 = vmul.f32 %v983_v29, %v2133_v63  ;;  %v2196_v61 = vadd.f32 %v802_v8, %v2059_v4  ;;  %v1064_v7 = vmul.f32 %v1024_v33, %v2121_v53 }
 0x1a2   :  { %v2171_v40 = vadd.f32 %v717_v30, %v2063_v10  ;;  %v2179_v46 = vadd.f32 %v806_v41, %v2063_v10  ;;  %2570 = vst [vmem:[#allocation15_spill] sm:$0xff] %v2188_v55  ;;  %v2201_v12 = vmul.f32 %v985_v36, %v2139_v9  ;;  %v996_v14 = vmul.f32 %v956_v37, %v2142_v11 }
 0x1a3   :  { %v719_v49 = vpop.f32.mrf.mxu1  ;;  %v808_v58 = vpop.f32.mrf.mxu0  ;;  %2571 = vst [vmem:[#allocation16_spill] sm:$0xff] %v2196_v61  ;;  %v1102_v23 = vadd.f32 %v1062_v43, %v2111_v48  ;;  %v998_v24 = vmul.f32 %v958_v45, %v2149_v20  ;;  %v957_v30 = vmul.f32 0.044715, %v2188_v55  ;;  %v959_v43 = vmul.f32 0.044715, %v2196_v61 }
 0x1a4   :  { %2568 = vst [vmem:[#allocation13_spill] sm:$0xff] %v2171_v40  ;;  %2569 = vst [vmem:[#allocation14_spill] sm:$0xff] %v2179_v46  ;;  %v966_v56 = vmul.f32 0.044715, %v2171_v40  ;;  %v968_v62 = vmul.f32 0.044715, %v2179_v46  ;;  %v2210_v8 = vadd.f32 %v719_v49, %v2063_v10  ;;  %v2218_v36 = vadd.f32 %v808_v58, %v2063_v10 }
 0x1a5   :  { %v723_v0 = vpop.f32.mrf.mxu1  ;;  %v812_v6 = vpop.f32.mrf.mxu0  ;;  %v2228_v3 = vadd.f32 %v1064_v7, %v2121_v53  ;;  %v2244_v34 = vmul.f32 %v957_v30, %v2188_v55 }
 0x1a6   :  { %v2205_v17 = vadd.f32 %v723_v0, %v2057_v2  ;;  %v2213_v27 = vadd.f32 %v812_v6, %v2057_v2  ;;  %v1006_v33 = vmul.f32 %v966_v56, %v2171_v40  ;;  %v1008_v45 = vmul.f32 %v968_v62, %v2179_v46 }
 0x1a7   :  { %v725_v29 = vpop.f32.mrf.mxu1  ;;  %v814_v41 = vpop.f32.mrf.mxu0  ;;  %v1036_v56 = vmul.f32 %v996_v14, %v2142_v11  ;;  %v1038_v62 = vmul.f32 %v998_v24, %v2149_v20  ;;  %v967_v19 = vmul.f32 0.044715, %v2210_v8  ;;  %2574 = vst [vmem:[#allocation19_spill] sm:$0xff] %v2244_v34  ;;  %v2250_v24 = vmul.f32 %v959_v43, %v2196_v61 }
 0x1a8   :  { %2572 = vst [vmem:[#allocation17_spill] sm:$0xff] %v2205_v17  ;;  %2573 = vst [vmem:[#allocation18_spill] sm:$0xff] %v2213_v27  ;;  %v976_v37 = vmul.f32 0.044715, %v2205_v17  ;;  %v978_v49 = vmul.f32 0.044715, %v2213_v27  ;;  %v2225_v0 = vadd.f32 %v725_v29, %v2057_v2  ;;  %v2232_v58 = vadd.f32 %v814_v41, %v2057_v2 }
 0x1a9   :  { %v729_v6 = vpop.f32.mrf.mxu1  ;;  %v818_v44 = vpop.f32.mrf.mxu0  ;;  %v1046_v14 = vmul.f32 %v1006_v33, %v2171_v40  ;;  %v969_v41 = vmul.f32 0.044715, %v2218_v36  ;;  %2575 = vst [vmem:[#allocation20_spill] sm:$0xff] %v2250_v24  ;;  %v1048_v53 = vmul.f32 %v1008_v45, %v2179_v46  ;;  %v2256_v30 = vadd.f32 %v1036_v56, %v2142_v11 }
 0x1aa   :  { %v2235_v39 = vadd.f32 %v729_v6, %v2055_v1  ;;  %v1016_v29 = vmul.f32 %v976_v37, %v2205_v17  ;;  %v2241_v32 = vadd.f32 %v818_v44, %v2055_v1  ;;  %v1018_v6 = vmul.f32 %v978_v49, %v2213_v27 }
 0x1ab   :  { %v731_v7 = vpop.f32.mrf.mxu1  ;;  %v820_v38 = vpop.f32.mrf.mxu0  ;;  %v977_v37 = vmul.f32 0.044715, %v2225_v0  ;;  %2576 = vst [vmem:[#allocation21_spill] sm:$0xff] %v2256_v30  ;;  %v979_v33 = vmul.f32 0.044715, %v2232_v58  ;;  %v2264_v43 = vadd.f32 %v1038_v62, %v2149_v20  ;;  %v2267_v45 = vmul.f32 %v967_v19, %v2210_v8 }
 0x1ac   :  { %v986_v44 = vmul.f32 0.044715, %v2235_v39  ;;  %v988_v34 = vmul.f32 0.044715, %v2241_v32  ;;  %v2261_v49 = vadd.f32 %v731_v7, %v2055_v1  ;;  %v1056_v24 = vmul.f32 %v1016_v29, %v2205_v17 }
 0x1ad   :  { %v889_v13 = vpop.f32.mrf.mxu1  ;;  %2577 = vst [vmem:[#allocation22_spill] sm:$0xff] %v2264_v43  ;;  %v2271_v61 = vadd.f32 %v820_v38, %v2055_v1  ;;  %v2274_v11 = vadd.f32 %v1046_v14, %v2171_v40  ;;  %v2277_v30 = vmul.f32 %v969_v41, %v2218_v36  ;;  %v1058_v7 = vmul.f32 %v1018_v6, %v2213_v27 }
 0x1ae   :  { %v2281_v62 = vadd.f32 %v889_v13, %v2059_v4  ;;  %v2284_v19 = vadd.f32 %v1048_v53, %v2179_v46  ;;  %v2287_v29 = vmul.f32 %v977_v37, %v2225_v0  ;;  %v1026_v38 = vmul.f32 %v986_v44, %v2235_v39 }
 0x1af   :  { %v891_v56 = vpop.f32.mrf.mxu1  ;;  %v1063_v14 = vmul.f32 %v1023_v60, %v2133_v63  ;;  %v2292_v40 = vmul.f32 %v979_v33, %v2232_v58  ;;  %v1028_v41 = vmul.f32 %v988_v34, %v2241_v32  ;;  %v987_v6 = vmul.f32 0.044715, %v2261_v49 }
 0x1b0   :  { %v2300_v53 = vadd.f32 %v1056_v24, %v2205_v17  ;;  %v989_v37 = vmul.f32 0.044715, %v2271_v61  ;;  %v1142_v43 = vmul.f32 0.7978846, %v1102_v23  ;;  %v2305_v60 = vadd.f32 %v1058_v7, %v2213_v27 }
 0x1b1   :  { %v895_v20 = vpop.f32.mrf.mxu1  ;;  %v1103_v44 = vadd.f32 %v1063_v14, %v2133_v63  ;;  %v960_v33 = vmul.f32 0.044715, %v2281_v62  ;;  %v2309_v34 = vadd.f32 %v891_v56, %v2059_v4  ;;  %v1066_v24 = vmul.f32 %v1026_v38, %v2235_v39 }
 0x1b2   :  { %v2297_v13 = vadd.f32 %v895_v20, %v2063_v10  ;;  %v2312_v20 = vmul.f32 0.5, %v2133_v63  ;;  %1763 = vtanh.f32 %v1142_v43  ;;  %v1053_v14 = vmul.f32 %v2174_v42, %v2118_v52 }
 0x1b3   :  { %v897_v46 = vpop.f32.mrf.mxu1  ;;  %v1143_v55 = vmul.f32 0.7978846, %v1103_v44  ;;  %v1068_v23 = vmul.f32 %v1028_v41, %v2241_v32  ;;  %v2319_v7 = vmul.f32 %v987_v6, %v2261_v49  ;;  %v2326_v63 = vmul.f32 %v989_v37, %v2271_v61 }
 0x1b4   :  { %v970_v27 = vmul.f32 0.044715, %v2297_v13  ;;  %v1093_v43 = vadd.f32 %v1053_v14, %v2118_v52  ;;  %v1132_v38 = vmul.f32 0.7978846, %v2182_v51  ;;  %v1000_v42 = vmul.f32 %v960_v33, %v2281_v62 }
 0x1b5   :  { %v901_v17 = vpop.f32.mrf.mxu1  ;;  %1765 = vtanh.f32 %v1143_v55  ;;  %v961_v41 = vmul.f32 0.044715, %v2309_v34  ;;  %v2333_v6 = vadd.f32 %v897_v46, %v2063_v10  ;;  %v2336_v44 = vmul.f32 0.5, %v2111_v48 }
 0x1b6   :  { %v2323_v4 = vadd.f32 %v901_v17, %v2057_v2  ;;  %v2339_v17 = vadd.f32 %v1066_v24, %v2235_v39  ;;  %v1133_v37 = vmul.f32 0.7978846, %v1093_v43  ;;  %1767 = vtanh.f32 %v1132_v38 }
 0x1b7   :  { %v903_v56 = vpop.f32.mrf.mxu1  ;;  %v1043_v55 = vmul.f32 %v2152_v21, %v2085_v31  ;;  %v2344_v51 = vadd.f32 %v1068_v23, %v2241_v32  ;;  %v1010_v33 = vmul.f32 %v970_v27, %v2297_v13  ;;  %v1122_v46 = vmul.f32 0.7978846, %v2160_v25 }
 0x1b8   :  { %v980_v14 = vmul.f32 0.044715, %v2323_v4  ;;  %v2349_v10 = vadd.f32 %v903_v56, %v2057_v2  ;;  %1769 = vtanh.f32 %v1133_v37  ;;  %v1033_v24 = vmul.f32 %v2108_v47, %v2066_v15 }
 0x1b9   :  { %v1083_v48 = vadd.f32 %v1043_v55, %v2085_v31  ;;  %v2356_v21 = vmul.f32 %v1000_v42, %v2281_v62  ;;  %v2359_v23 = vmul.f32 %v961_v41, %v2309_v34  ;;  %v971_v27 = vmul.f32 0.044715, %v2333_v6  ;;  %v907_v43 = vpop.f32.mrf.mxu1 }
 0x1ba   :  { %v2363_v2 = vmul.f32 0.5, %v2118_v52  ;;  %1771 = vtanh.f32 %v1122_v46  ;;  %v1073_v38 = vadd.f32 %v1033_v24, %v2066_v15  ;;  %v1112_v25 = vmul.f32 0.7978846, %v2135_v5 }
 0x1bb   :  { %v1123_v56 = vmul.f32 0.7978846, %v1083_v48  ;;  %v1050_v47 = vmul.f32 %v1010_v33, %v2297_v13  ;;  %v1020_v42 = vmul.f32 %v980_v14, %v2323_v4  ;;  %v981_v37 = vmul.f32 0.044715, %v2349_v10 }
 0x1bc   :  { %v932_v41 = vmul.f32 0.5, %v2081_v28  ;;  %v2372_v55 = vadd.f32 %v907_v43, %v2055_v1  ;;  %v1113_v52 = vmul.f32 0.7978846, %v1073_v38  ;;  %v1065_v48 = vmul.f32 %v2201_v12, %v2139_v9 }
 0x1bd   :  { %1773 = vtanh.f32 %v1123_v56  ;;  %v2377_v15 = vmul.f32 %v971_v27, %v2333_v6  ;;  %v2380_v5 = vmul.f32 0.5, %v2085_v31  ;;  %v1144_v33 = vmul.f32 0.7978846, %v2228_v3  ;;  %v909_v31 = vpop.f32.mrf.mxu1 }
 0x1be   :  { %1775 = vtanh.f32 %v1112_v25  ;;  %v2384_v14 = vmul.f32 0.5, %v2069_v16  ;;  %v1105_v28 = vadd.f32 %v1065_v48, %v2139_v9  ;;  %v1055_v46 = vmul.f32 %v2185_v54, %v2126_v57 }
 0x1bf   :  { %1777 = vtanh.f32 %v1113_v52  ;;  %v1764_v24 = vpop.eup %1763  ;;  %v2390_v12 = vadd.f32 %v1050_v47, %v2297_v13  ;;  %v2393_v27 = vmul.f32 %v1020_v42, %v2323_v4  ;;  %v1134_v3 = vmul.f32 0.7978846, %v2192_v59 }
 0x1c0   :  { %1779 = vtanh.f32 %v1144_v33  ;;  %v2397_v16 = vmul.f32 %v981_v37, %v2349_v10  ;;  %v990_v43 = vmul.f32 0.044715, %v2372_v55  ;;  %v1145_v56 = vmul.f32 0.7978846, %v1105_v28 }
 0x1c1   :  { %v1095_v38 = vadd.f32 %v1055_v46, %v2126_v57  ;;  %v1222_v25 = vadd.f32 1.0, %v1764_v24  ;;  %1781 = vtanh.f32 %v1134_v3  ;;  %v1045_v47 = vmul.f32 %v2155_v22, %v2093_v35  ;;  %v2578_v46 = vld [vmem:[#allocation11_spill] sm:$0xff] }
 0x1c2   :  { %v1766_v54 = vpop.eup %1765  ;;  %v1124_v42 = vmul.f32 0.7978846, %v2163_v26  ;;  %v2405_v48 = vadd.f32 %v909_v31, %v2055_v1  ;;  %1783 = vtanh.f32 %v1145_v56  ;;  %v1035_v28 = vmul.f32 %v2114_v50, %v2072_v18 }
 0x1c3   :  { %v1223_v52 = vadd.f32 1.0, %v1766_v54  ;;  %v1135_v59 = vmul.f32 0.7978846, %v1095_v38  ;;  %v1768_v37 = vpop.eup %1767  ;;  %v1085_v33 = vadd.f32 %v1045_v47, %v2093_v35  ;;  %v1114_v24 = vmul.f32 0.7978846, %v2578_v46 }
 0x1c4   :  { %1785 = vtanh.f32 %v1124_v42  ;;  %v1030_v3 = vmul.f32 %v990_v43, %v2372_v55  ;;  %v1212_v26 = vadd.f32 1.0, %v1768_v37  ;;  %v1262_v1 = vmul.f32 %v1222_v25, %v2336_v44 }
 0x1c5   :  { %v1263_v22 = vmul.f32 %v1223_v52, %v2312_v20  ;;  %1787 = vtanh.f32 %v1135_v59  ;;  %v1770_v54 = vpop.eup %1769  ;;  %v1125_v31 = vmul.f32 0.7978846, %v1085_v33  ;;  %v1075_v56 = vadd.f32 %v1035_v28, %v2072_v18 }
 0x1c6   :  { %v1067_v38 = vmul.f32 %v2319_v7, %v2261_v49  ;;  %v991_v50 = vmul.f32 0.044715, %v2405_v48  ;;  %v1213_v47 = vadd.f32 1.0, %v1770_v54  ;;  %1789 = vtanh.f32 %v1114_v24 }
 0x1c7   :  { %1311 = vmatprep.subr.mxu0 %v1263_v22  ;;  %v1069_v43 = vmul.f32 %v2326_v63, %v2271_v61  ;;  %v1772_v20 = vpop.eup %1771  ;;  %v945_v42 = vmul.f32 0.5, %v2139_v9  ;;  %1791 = vtanh.f32 %v1125_v31  ;;  %v1115_v44 = vmul.f32 0.7978846, %v1075_v56 }
 0x1c8   :  { %1312 = vmatpush1.msra.mxu0 %v1262_v1  ;;  %v1107_v18 = vadd.f32 %v1067_v38, %v2261_v49  ;;  %v1253_v25 = vmul.f32 %v1213_v47, %v2363_v2  ;;  %v1252_v7 = vmul.f32 %v1212_v26, %v932_v41  ;;  %v1146_v59 = vmul.f32 0.7978846, %v2339_v17  ;;  %v2579_v41 = vld [vmem:[#allocation9_spill] sm:$0xff] }
 0x1c9   :  { %v1109_v52 = vadd.f32 %v1069_v43, %v2271_v61  ;;  %v1202_v33 = vadd.f32 1.0, %v1772_v20  ;;  %1793 = vtanh.f32 %v1115_v44  ;;  %v1148_v28 = vmul.f32 0.7978846, %v2344_v51 }
 0x1ca   :  { %v1774_v37 = vpop.eup %1773  ;;  %v1147_v63 = vmul.f32 0.7978846, %v1107_v18  ;;  %v1070_v9 = vmul.f32 %v1030_v3, %v2372_v55  ;;  %1313 = vmatprep.subr.mxu0 %v1253_v25  ;;  %1795 = vtanh.f32 %v1146_v59  ;;  %v944_v26 = vmul.f32 0.5, %v2579_v41 }
 0x1cb   :  { %v1776_v46 = vpop.eup %1775  ;;  %v1203_v24 = vadd.f32 1.0, %v1774_v37  ;;  %v1149_v22 = vmul.f32 0.7978846, %v1109_v52  ;;  %1314 = vmatpush1.msra.mxu0 %v1252_v7  ;;  %v1057_v17 = vmul.f32 %v2287_v29, %v2225_v0  ;;  %v2431_v31 = vmul.f32 %v991_v50, %v2405_v48  ;;  %v2580_v29 = vld [vmem:[#allocation6_spill] sm:$0xff]  ;;  %v2582_v52 = vld [vmem:[#allocation4_spill] sm:$0xff] }
 0x1cc   :  { %v1778_v54 = vpop.eup %1777  ;;  %v1192_v2 = vadd.f32 1.0, %v1776_v46  ;;  %1797 = vtanh.f32 %v1147_v63  ;;  %v1242_v56 = vmul.f32 %v1202_v33, %v2384_v14  ;;  %v935_v38 = vmul.f32 0.5, %v2126_v57  ;;  %v2581_v14 = vld [vmem:[#allocation5_spill] sm:$0xff]  ;;  %v2448_v57 = vld [vmem:[%s2541_s6] sm:$0x1] }
 0x1cd   :  { %v1780_v1 = vpop.eup %1779  ;;  %v1243_v51 = vmul.f32 %v1203_v24, %v2380_v5  ;;  %v1193_v3 = vadd.f32 1.0, %v1778_v54  ;;  %1799 = vtanh.f32 %v1149_v22  ;;  %v1097_v47 = vadd.f32 %v1057_v17, %v2225_v0 }
 0x1ce   :  { %1801 = vtanh.f32 %v1148_v28  ;;  %v1782_v43 = vpop.eup %1781  ;;  %v2438_v20 = vadd.f32 %v1070_v9, %v2372_v55  ;;  %v1059_v50 = vmul.f32 %v2292_v40, %v2232_v58  ;;  %v1136_v5 = vmul.f32 0.7978846, %v2300_v53 }
 0x1cf   :  { %1315 = vmatprep.subr.mxu0 %v1243_v51  ;;  %v1233_v44 = vmul.f32 %v1193_v3, %v2580_v29  ;;  %v1784_v18 = vpop.eup %1783  ;;  %v1232_v25 = vmul.f32 %v1192_v2, %v2581_v14  ;;  %v1224_v7 = vadd.f32 1.0, %v1780_v1  ;;  %v934_v59 = vmul.f32 0.5, %v2582_v52  ;;  %v2583_v1 = vld [vmem:[#allocation3_spill] sm:$0xff] }
 0x1d0   :  { %1316 = vmatpush1.msra.mxu0 %v1242_v56  ;;  %v1137_v37 = vmul.f32 0.7978846, %v1097_v47  ;;  %v1225_v63 = vadd.f32 1.0, %v1784_v18  ;;  %v1099_v40 = vadd.f32 %v1059_v50, %v2232_v58  ;;  %1803 = vtanh.f32 %v1136_v5 }
 0x1d1   :  { %v1786_v33 = vpop.eup %1785  ;;  %1317 = vmatprep.subr.mxu0 %v1233_v44  ;;  %v1138_v53 = vmul.f32 0.7978846, %v2305_v60  ;;  %v1214_v46 = vadd.f32 1.0, %v1782_v43  ;;  %v925_v9 = vmul.f32 0.5, %v2093_v35  ;;  %v1264_v17 = vmul.f32 %v1224_v7, %v944_v26 }
 0x1d2   :  { %v1788_v28 = vpop.eup %1787  ;;  %1318 = vmatpush1.msra.mxu0 %v1232_v25  ;;  %v1204_v24 = vadd.f32 1.0, %v1786_v33  ;;  %1805 = vtanh.f32 %v1137_v37  ;;  %v1265_v22 = vmul.f32 %v1225_v63, %v945_v42  ;;  %v1139_v2 = vmul.f32 0.7978846, %v1099_v40  ;;  %v2585_v37 = vld [vmem:[#allocation15_spill] sm:$0xff]  ;;  %v2587_v40 = vld [vmem:[#allocation8_spill] sm:$0xff] }
 0x1d3   :  { %1753 = vmatmul.mubr.msk.f32.vlgmr.msra.gmra.mxu0 %vm1283_vm1, %v2448_v57  ;;  %v1215_v54 = vadd.f32 1.0, %v1788_v28  ;;  %1807 = vtanh.f32 %v1138_v53  ;;  %v1790_v41 = vpop.eup %1789  ;;  %v924_v51 = vmul.f32 0.5, %v2583_v1  ;;  %v2584_v3 = vmov 0.0   ;;  %v2589_v1 = vld [vmem:[#allocation16_spill] sm:$0xff] }
 0x1d4   :  { %1422 = vmatprep.mubr.f32.mxu0 %v2584_v3  ;;  %v947_v60 = vmul.f32 0.5, %v2261_v49  ;;  %v1047_v35 = vmul.f32 %v2267_v45, %v2210_v8  ;;  %v1792_v56 = vpop.eup %1791  ;;  %1382 = vmatprep.subr.mxu0 %v1265_v22  ;;  %v949_v43 = vmul.f32 0.5, %v2271_v61  ;;  %1809 = vtanh.f32 %v1139_v2 }
 0x1d5   :  { %v1255_v47 = vmul.f32 %v1215_v54, %v935_v38  ;;  %v1049_v42 = vmul.f32 %v2277_v30, %v2218_v36  ;;  %1383 = vmatpush1.msra.mxu0 %v1264_v17  ;;  %v1254_v26 = vmul.f32 %v1214_v46, %v934_v59  ;;  %v1205_v29 = vadd.f32 1.0, %v1792_v56 }
 0x1d6   :  { %v1087_v44 = vadd.f32 %v1047_v35, %v2210_v8  ;;  %v1126_v50 = vmul.f32 0.7978846, %v2274_v11  ;;  %v1794_v49 = vpop.eup %1793  ;;  %v1244_v5 = vmul.f32 %v1204_v24, %v924_v51  ;;  %v1194_v45 = vadd.f32 1.0, %v1790_v41  ;;  %v2586_v11 = vld [vmem:[#allocation19_spill] sm:$0xff]  ;;  %v2590_v51 = vld [vmem:[#allocation20_spill] sm:$0xff] }
 0x1d7   :  { %1384 = vmatprep.subr.mxu0 %v1255_v47  ;;  %v1089_v18 = vadd.f32 %v1049_v42, %v2218_v36  ;;  %v1128_v38 = vmul.f32 0.7978846, %v2284_v19  ;;  %v1796_v61 = vpop.eup %1795  ;;  %v1245_v14 = vmul.f32 %v1205_v29, %v925_v9  ;;  %v1195_v25 = vadd.f32 1.0, %v1794_v49  ;;  %v2588_v9 = vld [vmem:[#allocation7_spill] sm:$0xff]  ;;  %v2591_v42 = vld [vmem:[#allocation21_spill] sm:$0xff] }
 0x1d8   :  { %1385 = vmatpush1.msra.mxu0 %v1254_v26  ;;  %v1127_v30 = vmul.f32 0.7978846, %v1087_v44  ;;  %1811 = vtanh.f32 %v1126_v50  ;;  %v1226_v52 = vadd.f32 1.0, %v1796_v61  ;;  %v1037_v33 = vmul.f32 %v2586_v11, %v2585_v37  ;;  %v2592_v50 = vld [vmem:[#allocation22_spill] sm:$0xff] }
 0x1d9   :  { %v1798_v7 = vpop.eup %1797  ;;  %v1129_v59 = vmul.f32 0.7978846, %v1089_v18  ;;  %1813 = vtanh.f32 %v1128_v38  ;;  %1386 = vmatprep.subr.mxu0 %v1245_v14  ;;  %v1235_v53 = vmul.f32 %v1195_v25, %v2587_v40  ;;  %v946_v19 = vmul.f32 0.5, %v2235_v39 }
 0x1da   :  { %v1800_v63 = vpop.eup %1799  ;;  %v1227_v28 = vadd.f32 1.0, %v1798_v7  ;;  %1815 = vtanh.f32 %v1127_v30  ;;  %1387 = vmatpush1.msra.mxu0 %v1244_v5  ;;  %v1234_v24 = vmul.f32 %v1194_v45, %v2588_v9  ;;  %v1077_v54 = vadd.f32 %v1037_v33, %v2585_v37  ;;  %v2593_v30 = vld [vmem:[#allocation17_spill] sm:$0xff] }
 0x1db   :  { %v1802_v46 = vpop.eup %1801  ;;  %v1229_v22 = vadd.f32 1.0, %v1800_v63  ;;  %1817 = vtanh.f32 %v1129_v59  ;;  %1388 = vmatprep.subr.mxu0 %v1235_v53  ;;  %v948_v41 = vmul.f32 0.5, %v2241_v32  ;;  %v1039_v35 = vmul.f32 %v2590_v51, %v2589_v1 }
 0x1dc   :  { %v1267_v2 = vmul.f32 %v1227_v28, %v947_v60  ;;  %v1228_v17 = vadd.f32 1.0, %v1802_v46  ;;  %1389 = vmatpush1.msra.mxu0 %v1234_v24  ;;  %v1266_v39 = vmul.f32 %v1226_v52, %v946_v19  ;;  %v1117_v47 = vmul.f32 0.7978846, %v1077_v54 }
 0x1dd   :  { %v1269_v56 = vmul.f32 %v1229_v22, %v949_v43  ;;  %v1116_v26 = vmul.f32 0.7978846, %v2591_v42  ;;  %v1804_v29 = vpop.eup %1803  ;;  %v1100_v44 = vadd.f32 %v2393_v27, %v2323_v4  ;;  %1754 = vmatmul.mubr.msk.f32.vlgmr.msra.gmra.mxu0 %vm1283_vm1, %v2448_v57  ;;  %v1079_v32 = vadd.f32 %v1039_v35, %v2589_v1 }
 0x1de   :  { %1453 = vmatprep.subr.mxu1 %v1267_v2  ;;  %v1268_v60 = vmul.f32 %v1228_v17, %v948_v41  ;;  %v1118_v49 = vmul.f32 0.7978846, %v2592_v50  ;;  %v937_v43 = vmul.f32 0.5, %v2225_v0  ;;  %v1216_v45 = vadd.f32 1.0, %v1804_v29  ;;  %1564 = vmatprep.mubr.f32.mxu0 %v2584_v3 }
 0x1df   :  { %v1806_v5 = vpop.eup %1805  ;;  %1524 = vmatprep.subr.mxu0 %v1269_v56  ;;  %1454 = vmatpush1.msra.mxu1 %v1266_v39  ;;  %1819 = vtanh.f32 %v1117_v47  ;;  %v1071_v18 = vmul.f32 %v2431_v31, %v2405_v48  ;;  %v1119_v61 = vmul.f32 0.7978846, %v1079_v32  ;;  %v1150_v14 = vmul.f32 0.7978846, %v2438_v20  ;;  %v2594_v20 = vld [vmem:[#allocation18_spill] sm:$0xff] }
 0x1e0   :  { %v1808_v27 = vpop.eup %1807  ;;  %1525 = vmatpush1.msra.mxu0 %v1268_v60  ;;  %v1217_v38 = vadd.f32 1.0, %v1806_v5  ;;  %1821 = vtanh.f32 %v1116_v26  ;;  %v939_v25 = vmul.f32 0.5, %v2232_v58  ;;  %v936_v7 = vmul.f32 0.5, %v2593_v30  ;;  %v2595_v26 = vld [vmem:[#allocation13_spill] sm:$0xff] }
 0x1e1   :  { %1823 = vtanh.f32 %v1118_v49  ;;  %v1111_v0 = vadd.f32 %v1071_v18, %v2405_v48  ;;  %v1810_v52 = vpop.eup %1809  ;;  %v1218_v11 = vadd.f32 1.0, %v1808_v27  ;;  %v1061_v31 = vmul.f32 %v2397_v16, %v2349_v10 }
 0x1e2   :  { %v1257_v59 = vmul.f32 %v1217_v38, %v937_v43  ;;  %1825 = vtanh.f32 %v1119_v61  ;;  %v1219_v33 = vadd.f32 1.0, %v1810_v52  ;;  %v1256_v63 = vmul.f32 %v1216_v45, %v936_v7  ;;  %v2597_v61 = vld [vmem:[#allocation10_spill] sm:$0xff] }
 0x1e3   :  { %v1151_v40 = vmul.f32 0.7978846, %v1111_v0  ;;  %1827 = vtanh.f32 %v1150_v14  ;;  %v938_v53 = vmul.f32 0.5, %v2594_v20  ;;  %v1101_v58 = vadd.f32 %v1061_v31, %v2349_v10 }
 0x1e4   :  { %1455 = vmatprep.subr.mxu1 %v1257_v59  ;;  %v1140_v28 = vmul.f32 0.7978846, %v1100_v44  ;;  %v1080_v46 = vadd.f32 %v2356_v21, %v2281_v62  ;;  %v1259_v9 = vmul.f32 %v1219_v33, %v939_v25  ;;  %v1051_v16 = vmul.f32 %v2377_v15, %v2333_v6  ;;  %v2598_v33 = vld [vmem:[#allocation12_spill] sm:$0xff] }
 0x1e5   :  { %v1812_v19 = vpop.eup %1811  ;;  %1456 = vmatpush1.msra.mxu1 %v1256_v63  ;;  %1829 = vtanh.f32 %v1151_v40  ;;  %v1258_v22 = vmul.f32 %v1218_v11, %v938_v53  ;;  %v1141_v54 = vmul.f32 0.7978846, %v1101_v58  ;;  %v1130_v2 = vmul.f32 0.7978846, %v2390_v12 }
 0x1e6   :  { %v1814_v24 = vpop.eup %1813  ;;  %1831 = vtanh.f32 %v1140_v28  ;;  %1526 = vmatprep.subr.mxu0 %v1259_v9  ;;  %v927_v17 = vmul.f32 0.5, %v2210_v8  ;;  %v1206_v51 = vadd.f32 1.0, %v1812_v19  ;;  %v1091_v35 = vadd.f32 %v1051_v16, %v2333_v6  ;;  %v2596_v8 = vld [vmem:[#allocation14_spill] sm:$0xff] }
 0x1e7   :  { %v1816_v41 = vpop.eup %1815  ;;  %v1041_v21 = vmul.f32 %v2359_v23, %v2309_v34  ;;  %1527 = vmatpush1.msra.mxu0 %v1258_v22  ;;  %v929_v15 = vmul.f32 0.5, %v2218_v36  ;;  %v1208_v47 = vadd.f32 1.0, %v1814_v24  ;;  %1833 = vtanh.f32 %v1141_v54 }
 0x1e8   :  { %v1818_v56 = vpop.eup %1817  ;;  %v1207_v39 = vadd.f32 1.0, %v1816_v41  ;;  %v926_v12 = vmul.f32 0.5, %v2595_v26  ;;  %v1131_v29 = vmul.f32 0.7978846, %v1091_v35  ;;  %1835 = vtanh.f32 %v1130_v2 }
 0x1e9   :  { %v1209_v42 = vadd.f32 1.0, %v1818_v56  ;;  %v928_v60 = vmul.f32 0.5, %v2596_v8  ;;  %v1081_v32 = vadd.f32 %v1041_v21, %v2309_v34  ;;  %v1120_v50 = vmul.f32 0.7978846, %v1080_v46 }
 0x1ea   :  { %v1247_v44 = vmul.f32 %v1207_v39, %v927_v17  ;;  %v1246_v23 = vmul.f32 %v1206_v51, %v926_v12  ;;  %1837 = vtanh.f32 %v1131_v29  ;;  %v917_v18 = vmul.f32 0.5, %v2585_v37 }
 0x1eb   :  { %v1249_v49 = vmul.f32 %v1209_v42, %v929_v15  ;;  %v1248_v43 = vmul.f32 %v1208_v47, %v928_v60  ;;  %v1121_v36 = vmul.f32 0.7978846, %v1081_v32  ;;  %1839 = vtanh.f32 %v1120_v50  ;;  %v1277_v50 = vpop.permute.xlu1 %1276 }
 0x1ec   :  { %v1820_v5 = vpop.eup %1819  ;;  %1457 = vmatprep.subr.mxu1 %v1247_v44  ;;  %v916_v14 = vmul.f32 0.5, %v2597_v61  ;;  %v919_v59 = vmul.f32 0.5, %v2589_v1  ;;  %v918_v63 = vmul.f32 0.5, %v2598_v33  ;;  %v951_v28 = vmul.f32 0.5, %v2405_v48 }
 0x1ed   :  { %v1822_v45 = vpop.eup %1821  ;;  %1528 = vmatprep.subr.mxu0 %v1249_v49  ;;  %1458 = vmatpush1.msra.mxu1 %v1246_v23  ;;  %v1197_v27 = vadd.f32 1.0, %v1820_v5  ;;  %1841 = vtanh.f32 %v1121_v36  ;;  %v950_v1 = vmul.f32 0.5, %v2372_v55  ;;  %v941_v54 = vmul.f32 0.5, %v2349_v10 }
 0x1ee   :  { %v1824_v38 = vpop.eup %1823  ;;  %1529 = vmatpush1.msra.mxu0 %v1248_v43  ;;  %v1196_v25 = vadd.f32 1.0, %v1822_v45  ;;  %v940_v48 = vmul.f32 0.5, %v2323_v4  ;;  %v931_v35 = vmul.f32 0.5, %v2333_v6  ;;  %v930_v56 = vmul.f32 0.5, %v2297_v13 }
 0x1ef   :  { %v1826_v30 = vpop.eup %1825  ;;  %v1237_v7 = vmul.f32 %v1197_v27, %v917_v18  ;;  %v1198_v0 = vadd.f32 1.0, %v1824_v38  ;;  %v921_v42 = vmul.f32 0.5, %v2309_v34  ;;  %v920_v26 = vmul.f32 0.5, %v2281_v62 }
 0x1f0   :  { %v1828_v52 = vpop.eup %1827  ;;  %v1199_v11 = vadd.f32 1.0, %v1826_v30  ;;  %v1236_v31 = vmul.f32 %v1196_v25, %v916_v14  ;;  %v1279_v13 = vlaneseq  ;;  %v1845_v49 = vmov 1966171168  }
 0x1f1   :  { %1459 = vmatprep.subr.mxu1 %v1237_v7  ;;  %v1230_v20 = vadd.f32 1.0, %v1828_v52  ;;  %v1238_v58 = vmul.f32 %v1198_v0, %v918_v63  ;;  %v1657_v23 = vunpack.c.l.s4 %v1845_v49 }
 0x1f2   :  { %v1830_v40 = vpop.eup %1829  ;;  %v1239_v37 = vmul.f32 %v1199_v11, %v919_v59  ;;  %1460 = vmatpush1.msra.mxu1 %v1236_v31  ;;  %v1280_v44 = vshrl.u32 %v1279_v13, 7  ;;  %vm1721_vm2 = vcmp.lt.s32.totalorder %v1279_v13, 226 }
 0x1f3   :  { %v1832_v53 = vpop.eup %1831  ;;  %1755 = vmatmul.mubr.msk.f32.vlgmr.msra.gmra.mxu1 %vm1283_vm1, %v2448_v57  ;;  %v1231_v19 = vadd.f32 1.0, %v1830_v40  ;;  %v1270_v22 = vmul.f32 %v1230_v20, %v950_v1  ;;  %v1658_v43 = vunpack.c.0.s8 %v1657_v23 }
 0x1f4   :  { %1530 = vmatprep.subr.mxu0 %v1239_v37  ;;  %1635 = vmatprep.mubr.f32.mxu1 %v2584_v3  ;;  %v1834_v46 = vpop.eup %1833  ;;  %v1220_v16 = vadd.f32 1.0, %v1832_v53  ;;  %v1281_v32 = vsub.s32 0, %v1280_v44 }
 0x1f5   :  { %1531 = vmatpush1.msra.mxu0 %v1238_v58  ;;  %v1271_v9 = vmul.f32 %v1231_v19, %v951_v28  ;;  %v1836_v24 = vpop.eup %1835  ;;  %v1221_v2 = vadd.f32 1.0, %v1834_v46  ;;  %v1661_v30 = vsub.s32 %v1658_v43, %v1280_v44 }
 0x1f6   :  { %1756 = vmatmul.mubr.msk.f32.vlgmr.msra.gmra.mxu0 %vm1283_vm1, %v2448_v57  ;;  %v1210_v17 = vadd.f32 1.0, %v1836_v24  ;;  %v1260_v51 = vmul.f32 %v1220_v16, %v940_v48  ;;  %v1282_v5 = vrot.slane %v1277_v50, %v1281_v32 }
 0x1f7   :  { %1595 = vmatprep.subr.mxu1 %v1271_v9  ;;  %v1838_v41 = vpop.eup %1837  ;;  %v1261_v55 = vmul.f32 %v1221_v2, %v941_v54 }
 0x1f8   :  { %1596 = vmatpush1.msra.mxu1 %v1270_v22  ;;  %v1840_v3 = vpop.eup %1839  ;;  %v1211_v21 = vadd.f32 1.0, %v1838_v41  ;;  %v1250_v47 = vmul.f32 %v1210_v17, %v930_v56 }
 0x1f9   :  { %1597 = vmatprep.subr.mxu1 %v1261_v55  ;;  %v1200_v10 = vadd.f32 1.0, %v1840_v3 }
 0x1fa   :  { %v1842_v39 = vpop.eup %1841  ;;  %1598 = vmatpush1.msra.mxu1 %v1260_v51  ;;  %v1251_v15 = vmul.f32 %v1211_v21, %v931_v35 }
 0x1fb   :  { %v1201_v4 = vadd.f32 1.0, %v1842_v39  ;;  %v1240_v29 = vmul.f32 %v1200_v10, %v920_v26 }
 0x1fc   :  { %1599 = vmatprep.subr.mxu1 %v1251_v15 }
 0x1fd   :  { %1600 = vmatpush1.msra.mxu1 %v1250_v47  ;;  %v1241_v12 = vmul.f32 %v1201_v4, %v921_v42 }
 0x1ff   :  { %1601 = vmatprep.subr.mxu1 %v1241_v12 }
 0x200   :  { %1602 = vmatpush1.msra.mxu1 %v1240_v29 }
 0x201   :  { %1757 = vmatmul.mubr.msk.f32.vlgmr.msra.gmra.mxu1 %vm1283_vm1, %v2448_v57 }
 0x293   :  { %v1353_v6 = vpop.f32.mrf.mxu0 }
 0x294   :  { %v1354_v27 = vadd.f32 %v1353_v6, %v1282_v5 }
 0x295   :  { %v1355_v8 = vpop.f32.mrf.mxu0 }
 0x296   :  { %v1356_v36 = vadd.f32 %v1355_v8, %v1282_v5 }
 0x298   :  { %v1652_v7 = vcombine.low %v1354_v27, %v1356_v36 }
 0x29a   :  { %v1662_v33 = vrot.slane %v1652_v7, %v1661_v30 }
 0x29d   :  { %v1424_v60 = vpop.f32.mrf.mxu0 }
 0x29e   :  { %v1425_v45 = vadd.f32 %v1424_v60, %v1282_v5 }
 0x29f   :  { %v1426_v34 = vpop.f32.mrf.mxu0 }
 0x2a0   :  { %v1427_v62 = vadd.f32 %v1426_v34, %v1282_v5 }
 0x2a2   :  { %v1653_v38 = vcombine.low %v1425_v45, %v1427_v62 }
 0x2a4   :  { %v1669_v59 = vrot.slane %v1653_v38, %v1661_v30 }
 0x2a6   :  { %v1684_v37 = vcombine.low %v1662_v33, %v1669_v59 }
 0x2a8   :  { %v1692_v58 = vrot.slane %v1684_v37, %v1661_v30 }
 0x2b3   :  { %v1495_v18 = vpop.f32.mrf.mxu1 }
 0x2b4   :  { %v1496_v57 = vadd.f32 %v1495_v18, %v1282_v5 }
 0x2b5   :  { %v1497_v61 = vpop.f32.mrf.mxu1 }
 0x2b6   :  { %v1566_v14 = vpop.f32.mrf.mxu0  ;;  %v1498_v25 = vadd.f32 %v1497_v61, %v1282_v5 }
 0x2b7   :  { %v1567_v11 = vadd.f32 %v1566_v14, %v1282_v5 }
 0x2b8   :  { %v1654_v0 = vcombine.low %v1496_v57, %v1498_v25  ;;  %v1568_v52 = vpop.f32.mrf.mxu0 }
 0x2b9   :  { %v1569_v31 = vadd.f32 %v1568_v52, %v1282_v5 }
 0x2ba   :  { %v1676_v63 = vrot.slane %v1654_v0, %v1661_v30 }
 0x2bb   :  { %v1655_v40 = vcombine.low %v1567_v11, %v1569_v31 }
 0x2bd   :  { %v1683_v20 = vrot.slane %v1655_v40, %v1661_v30 }
 0x2bf   :  { %v1685_v53 = vcombine.low %v1676_v63, %v1683_v20 }
 0x2c1   :  { %v1699_v28 = vrot.slane %v1685_v53, %v1661_v30  ;;  %v1637_v19 = vpop.f32.mrf.mxu1 }
 0x2c2   :  { %v1638_v9 = vadd.f32 %v1637_v19, %v1282_v5 }
 0x2c3   :  { %v1700_v1 = vcombine.low %v1692_v58, %v1699_v28  ;;  %v1639_v46 = vpop.f32.mrf.mxu1 }
 0x2c4   :  { %v1640_v16 = vadd.f32 %v1639_v46, %v1282_v5 }
 0x2c5   :  { %1718 = vst [vmem:[%s2542_s8] sm:$0xff] %v1700_v1 }
 0x2c6   :  { %v1701_v24 = vcombine.low %v1638_v9, %v1640_v16 }
 0x2c8   :  { %v1708_v22 = vrot.slane %v1701_v24, %v1661_v30 }
 0x2ca   :  { %v1715_v54 = vrot.slane %v1708_v22, %v1661_v30 }
 0x2cc   :  { %1723 = vst.msk [vmem:[%s2542_s8 + $0x8] sm:$0x3] %vm1721_vm2, %v1715_v54 }

</bundles_post_ra>
